<compile_context>
chip_gen: v7x
topology: tpu7x:2x2x1
jax: 0.10.0
libtpu: 0.0.40
codegen_flags: <defaults>
</compile_context>

<pallas_src>
import functools

import jax
import jax.numpy as jnp
from jax.experimental import pallas as pl
from jax.experimental.pallas import tpu as pltpu


_SLAB = 32          # per-layer lane slab width (latent dims padded to 32)
_NL = 4             # number of GCN layers
_STREAM_TILE = 512  # A tile for the streaming fallback (256-aligned, >=512)


def _round_up(x, m):
    return ((x + m - 1) // m) * m


def _tpu_vmem_capacity_bytes():
    try:
        cap = int(pltpu.get_tpu_info().vmem_capacity_bytes)
        if cap > 0:
            return cap
    except Exception:
        pass
    return 64 * 1024 * 1024  # conservative (v7x physical VMEM)


def _full_spec(shape):
    nd = len(shape)
    return pl.BlockSpec(shape, lambda i, _nd=nd: (0,) * _nd)


# ---------------------------------------------------------------------------
# Kernel A (resident-fused): all 4 GCN layers + pooling + lin1/relu/lin2 in
# one kernel with A_hat fully VMEM resident.  grid = (1,).
# ---------------------------------------------------------------------------
def _fused_gnn_kernel(a_ref, h0_ref, w_ref, b_ref, p_ref, wl1_ref, bl1_ref,
                      wl2_ref, bl2_ref, o_ref):
    nb = p_ref.shape[0]
    a = a_ref[...]                      # [Np, Np] bf16, resident
    p = p_ref[...]                      # [B, Np]  bf16
    h = h0_ref[...]                     # [Np, 32] bf16

    # pre-activation of lin1, accumulated per layer slab (no [N,128] concat).
    zpre = jnp.zeros((nb, 128), jnp.float32) + bl1_ref[...]

    for l in range(w_ref.shape[0]):
        hw = jnp.dot(h, w_ref[l], preferred_element_type=jnp.float32)
        agg = jnp.dot(a, hw.astype(jnp.bfloat16),
                      preferred_element_type=jnp.float32)
        h = jnp.tanh(agg + b_ref[l]).astype(jnp.bfloat16)          # [Np, 32]
        g_l = jnp.dot(p, h, preferred_element_type=jnp.float32)    # [B, 32]
        zpre = zpre + jnp.dot(g_l, wl1_ref[l],
                              preferred_element_type=jnp.float32)  # [B, 128]

    z = jnp.maximum(zpre, 0.0)
    o_ref[...] = (jnp.dot(z, wl2_ref[...], preferred_element_type=jnp.float32)
                  + bl2_ref[...])


def gnn_fused(a_bf, h0_bf, wstack, bstack, p_bf, wl1s, bl1, wl2p, bl2p,
              *, vmem_limit_bytes):
    nb = p_bf.shape[0]
    operands = (a_bf, h0_bf, wstack, bstack, p_bf, wl1s, bl1, wl2p, bl2p)
    return pl.pallas_call(
        _fused_gnn_kernel,
        out_shape=jax.ShapeDtypeStruct((nb, 128), jnp.float32),
        grid=(1,),
        in_specs=[_full_spec(op.shape) for op in operands],
        out_specs=_full_spec((nb, 128)),
        compiler_params=pltpu.CompilerParams(
            dimension_semantics=("arbitrary",),
            vmem_limit_bytes=int(vmem_limit_bytes)),
    )(*operands)


# ---------------------------------------------------------------------------
# Kernel B (streaming fallback, one GCN layer):  o = tanh(A @ HW + b)
#   HW = h @ W is precomputed (hoisted out of the (i,k) body).
#   grid = (row tiles ["parallel"], contraction tiles ["arbitrary"])
# ---------------------------------------------------------------------------
def _gcn_agg_kernel(a_ref, hw_ref, b_ref, o_ref, acc_ref):
    k = pl.program_id(1)

    @pl.when(k == 0)
    def _():
        acc_ref[...] = jnp.zeros_like(acc_ref)

    acc_ref[...] += jnp.dot(a_ref[...], hw_ref[...],
                            preferred_element_type=jnp.float32)

    @pl.when(k == pl.num_programs(1) - 1)
    def _():
        o_ref[...] = jnp.tanh(acc_ref[...] + b_ref[...]).astype(o_ref.dtype)


def gcn_layer_streaming(a_bf, hw_bf, b_f32, *, tile):
    np_ = a_bf.shape[0]
    fout = hw_bf.shape[1]
    grid = (np_ // tile, np_ // tile)
    return pl.pallas_call(
        _gcn_agg_kernel,
        out_shape=jax.ShapeDtypeStruct((np_, fout), jnp.bfloat16),
        grid=grid,
        in_specs=[
            pl.BlockSpec((tile, tile), lambda i, k: (i, k)),   # A tile (bf16)
            pl.BlockSpec((tile, fout), lambda i, k: (k, 0)),   # HW k-slab
            pl.BlockSpec((1, fout), lambda i, k: (0, 0)),      # bias
        ],
        out_specs=pl.BlockSpec((tile, fout), lambda i, k: (i, 0)),
        scratch_shapes=[pltpu.VMEM((tile, fout), jnp.float32)],
        compiler_params=pltpu.CompilerParams(
            dimension_semantics=("parallel", "arbitrary")),
    )(a_bf, hw_bf, b_f32)


# ---------------------------------------------------------------------------
# Kernel C (streaming fallback): global_add_pool + lin1 + relu + lin2, fused.
# ---------------------------------------------------------------------------
def _pool_mlp_kernel(p_ref, cat_ref, wl1_ref, bl1_ref, wl2_ref, bl2_ref,
                     o_ref, acc_ref):
    k = pl.program_id(0)

    @pl.when(k == 0)
    def _():
        acc_ref[...] = jnp.zeros_like(acc_ref)

    acc_ref[...] += jnp.dot(p_ref[...], cat_ref[...],
                            preferred_element_type=jnp.float32)

    @pl.when(k == pl.num_programs(0) - 1)
    def _():
        z = jnp.maximum(
            jnp.dot(acc_ref[...], wl1_ref[...],
                    preferred_element_type=jnp.float32) + bl1_ref[...], 0.0)
        o_ref[...] = (jnp.dot(z, wl2_ref[...],
                              preferred_element_type=jnp.float32)
                      + bl2_ref[...])


def pool_mlp(p_bf, cat_bf, wl1p, bl1, wl2p, bl2p, *, tile):
    nb, np_ = p_bf.shape
    grid = (np_ // tile,)
    return pl.pallas_call(
        _pool_mlp_kernel,
        out_shape=jax.ShapeDtypeStruct((nb, 128), jnp.float32),
        grid=grid,
        in_specs=[
            pl.BlockSpec((nb, tile), lambda k: (0, k)),     # pooling one-hot
            pl.BlockSpec((tile, 128), lambda k: (k, 0)),    # concat slab
            pl.BlockSpec((128, 128), lambda k: (0, 0)),     # lin1 (padded)
            pl.BlockSpec((1, 128), lambda k: (0, 0)),
            pl.BlockSpec((128, 128), lambda k: (0, 0)),     # lin2 (padded)
            pl.BlockSpec((1, 128), lambda k: (0, 0)),
        ],
        out_specs=pl.BlockSpec((nb, 128), lambda k: (0, 0)),
        scratch_shapes=[pltpu.VMEM((nb, 128), jnp.float32)],
        compiler_params=pltpu.CompilerParams(
            dimension_semantics=("arbitrary",)),
    )(p_bf, cat_bf, wl1p, bl1, wl2p, bl2p)


# ---------------------------------------------------------------------------
# Full forward (generation-aware residency gating).
# ---------------------------------------------------------------------------
def gnn_forward(a_hat, x, pool, kp, n_classes, *, force_streaming=False):
    n = a_hat.shape[0]
    nb = pool.shape[0]

    cap = _tpu_vmem_capacity_bytes()
    budget = int(cap * 0.55)

    np_res = _round_up(max(n, 128), 128)
    # A (double-buffered by the pipeline) + h/hw/agg temporaries + slack.
    resident_bytes = 2 * (np_res * np_res * 2) + 8 * np_res * _SLAB * 4 + (2 << 20)
    use_resident = (not force_streaming) and (resident_bytes <= budget)

    np_ = np_res if use_resident else _round_up(max(n, _STREAM_TILE), _STREAM_TILE)

    # Zero-padding of A rows/cols, node features and pooling columns is
    # semantically inert (padded rows never reach real rows or the pooled sum).
    a_p = (jnp.zeros((np_, np_), jnp.float32).at[:n, :n].set(a_hat)
           .astype(jnp.bfloat16))
    h0 = (jnp.zeros((np_, _SLAB), jnp.float32).at[:n, :x.shape[1]].set(x)
          .astype(jnp.bfloat16))
    p_p = (jnp.zeros((nb, np_), jnp.float32).at[:, :n].set(pool)
           .astype(jnp.bfloat16))

    if use_resident:
        out = gnn_fused(a_p, h0, kp["w"], kp["b"], p_p, kp["wl1s"], kp["bl1"],
                        kp["wl2p"], kp["bl2p"],
                        vmem_limit_bytes=int(cap * 0.9))
        return out[:, :n_classes]

    # Streaming fallback: A is streamed once per layer with 512-wide tiles.
    tile = _STREAM_TILE
    h = h0
    slabs = []
    for l in range(_NL):
        hw = jnp.dot(h, kp["w"][l],
                     preferred_element_type=jnp.float32).astype(jnp.bfloat16)
        h = gcn_layer_streaming(a_p, hw, kp["b"][l], tile=tile)
        slabs.append(h)
    # TODO(synk): write each layer slab straight into a shared [Np,128] buffer
    # (out_specs column block + input_output_aliases) to drop this concat pass.
    cat = jnp.concatenate(slabs, axis=1)                       # [Np, 128] bf16
    wl1p = kp["wl1s"].reshape(_NL * _SLAB, 128)
    out = pool_mlp(p_p, cat, wl1p, kp["bl1"], kp["wl2p"], kp["bl2p"],
                   tile=tile)
    return out[:, :n_classes]


# ---------------------------------------------------------------------------
# Parameter init / packing and pure-JAX references.
# ---------------------------------------------------------------------------
def init_params(key, f0, latent, n_classes, scale=0.1):
    ks = jax.random.split(key, 12)

    def nrm(k, shape):
        return scale * jax.random.normal(k, shape, jnp.float32)

    dims = [f0] + list(latent)
    convs = [(nrm(ks[2 * l], (dims[l], dims[l + 1])),
              nrm(ks[2 * l + 1], (1, dims[l + 1])))
             for l in range(len(latent))]
    return {
        "convs": convs,
        "wl1": nrm(ks[8], (sum(latent), 128)),
        "bl1": nrm(ks[9], (1, 128)),
        "wl2": nrm(ks[10], (128, n_classes)),
        "bl2": nrm(ks[11], (1, n_classes)),
    }


def pack_params(raw, latent, n_classes, f0):
    """Zero-pad everything to lane-dense 32-/128-wide slabs for the kernels."""
    assert f0 <= _SLAB  # TODO(synk): tile the first layer if num_features > 32
    nl = len(latent)
    wstack = jnp.zeros((nl, _SLAB, _SLAB), jnp.float32)
    bstack = jnp.zeros((nl, 1, _SLAB), jnp.float32)
    for l, (w, b) in enumerate(raw["convs"]):
        fin, fout = w.shape
        wstack = wstack.at[l, :fin, :fout].set(w)
        bstack = bstack.at[l, :, :fout].set(b)
    # lin1 rows grouped per layer slab (row 97 layout -> [4, 32, 128] padded).
    wl1s = jnp.zeros((nl, _SLAB, 128), jnp.float32)
    row = 0
    for l, d in enumerate(latent):
        wl1s = wl1s.at[l, :d, :].set(raw["wl1"][row:row + d, :])
        row += d
    wl2p = jnp.zeros((128, 128), jnp.float32).at[:, :n_classes].set(raw["wl2"])
    bl2p = jnp.zeros((1, 128), jnp.float32).at[:, :n_classes].set(raw["bl2"])
    return {"w": wstack.astype(jnp.bfloat16), "b": bstack,
            "wl1s": wl1s, "bl1": raw["bl1"], "wl2p": wl2p, "bl2p": bl2p}


def ref_forward_f32(a_hat, x, pool, raw):
    """Pure-f32 reference mirroring the PyTorch forward (eval mode)."""
    h = x
    cats = []
    for w, b in raw["convs"]:
        h = jnp.tanh(a_hat @ (h @ w) + b)
        cats.append(h)
    cat = jnp.concatenate(cats, axis=1)                 # [N, 97]
    g = pool @ cat                                      # [B, 97]
    z = jax.nn.relu(g @ raw["wl1"] + raw["bl1"])
    return z @ raw["wl2"] + raw["bl2"]


def ref_forward_bf16(a_hat, x, pool, kp, n_classes):
    """Replicates the kernels' bf16/f32 mixed-precision math."""
    bf16, f32 = jnp.bfloat16, jnp.float32
    n = a_hat.shape[0]
    a = a_hat.astype(bf16)
    h = (jnp.zeros((n, _SLAB), f32).at[:, :x.shape[1]].set(x)).astype(bf16)
    p = pool.astype(bf16)
    g_blocks = []
    for l in range(_NL):
        hw = jnp.dot(h, kp["w"][l], preferred_element_type=f32).astype(bf16)
        agg = jnp.dot(a, hw, preferred_element_type=f32)
        h = jnp.tanh(agg + kp["b"][l]).astype(bf16)
        g_blocks.append(jnp.dot(p, h, preferred_element_type=f32))
    g = jnp.concatenate(g_blocks, axis=1)               # [B, 128]
    z = jnp.maximum(jnp.dot(g, kp["wl1s"].reshape(_NL * _SLAB, 128),
                            preferred_element_type=f32) + kp["bl1"], 0.0)
    out = jnp.dot(z, kp["wl2p"], preferred_element_type=f32) + kp["bl2p"]
    return out[:, :n_classes]


if __name__ == "__main__":
    key = jax.random.PRNGKey(0)
    ks = jax.random.split(key, 8)

    latent = [32, 32, 32, 1]
    n_classes = 2                    # class_values=2, regression=False
    F0 = 16

    def build_graph(k_src, k_dst, k_x, n, e, b):
        src = jax.random.randint(k_src, (e,), 0, n)
        dst = jax.random.randint(k_dst, (e,), 0, n)
        A = jnp.zeros((n, n), jnp.float32).at[dst, src].set(1.0)   # row=target
        A_t = jnp.maximum(A, jnp.eye(n, dtype=jnp.float32))        # self-loops
        deg = A_t.sum(axis=1)
        d_is = 1.0 / jnp.sqrt(deg)
        a_hat = d_is[:, None] * A_t * d_is[None, :]        # D^-1/2 (A+I) D^-1/2
        x = jax.random.normal(k_x, (n, F0), jnp.float32)
        batch = jnp.arange(n) // (n // b)                  # node -> graph id
        pool = (batch[None, :] == jnp.arange(b)[:, None]).astype(jnp.float32)
        return a_hat, x, pool

    raw = init_params(ks[6], F0, latent, n_classes)
    kp = pack_params(raw, latent, n_classes, F0)

    # ---- Test 1: resident-fused path (A fits VMEM; single pallas_call) ----
    N1, E1, B1 = 384, 3072, 4
    a1, x1, p1 = build_graph(ks[0], ks[1], ks[2], N1, E1, B1)
    fwd_res = jax.jit(functools.partial(gnn_forward, n_classes=n_classes))
    out1 = jax.block_until_ready(fwd_res(a1, x1, p1, kp))
    assert out1.shape == (B1, n_classes)
    ref1 = ref_forward_bf16(a1, x1, p1, kp, n_classes)
    assert jnp.allclose(out1, ref1, rtol=1e-2, atol=1e-2), (out1, ref1)
    ref1_32 = ref_forward_f32(a1, x1, p1, raw)
    assert jnp.allclose(out1, ref1_32, rtol=1e-1, atol=1e-1), (out1, ref1_32)

    # ---- Test 2: forced streaming fallback (512-tile grid, accumulators) ----
    N2, E2, B2 = 640, 4096, 4
    a2, x2, p2 = build_graph(ks[3], ks[4], ks[5], N2, E2, B2)
    fwd_str = jax.jit(functools.partial(gnn_forward, n_classes=n_classes,
                                        force_streaming=True))
    out2 = jax.block_until_ready(fwd_str(a2, x2, p2, kp))
    assert out2.shape == (B2, n_classes)
    ref2 = ref_forward_bf16(a2, x2, p2, kp, n_classes)
    assert jnp.allclose(out2, ref2, rtol=1e-2, atol=1e-2), (out2, ref2)

    print("KERNEL_OK")
</pallas_src>

<mosaic_0001>
module attributes {stable_mosaic.version = 11 : i64} {
  func.func @_fused_gnn_kernel(%arg0: i32, %arg1: memref<384x384xbf16, #tpu.memory_space<vmem>>, %arg2: memref<384x32xbf16, #tpu.memory_space<vmem>>, %arg3: memref<4x32x32xbf16, #tpu.memory_space<vmem>>, %arg4: memref<4x1x32xf32, #tpu.memory_space<vmem>>, %arg5: memref<4x384xbf16, #tpu.memory_space<vmem>>, %arg6: memref<4x32x128xf32, #tpu.memory_space<vmem>>, %arg7: memref<1x128xf32, #tpu.memory_space<vmem>>, %arg8: memref<128x128xf32, #tpu.memory_space<vmem>>, %arg9: memref<1x128xf32, #tpu.memory_space<vmem>>, %arg10: memref<4x128xf32, #tpu.memory_space<vmem>>) attributes {dimension_semantics = [#tpu.dimension_semantics<arbitrary>], iteration_bounds = array<i64: 1>, scalar_prefetch = 0 : i64, scratch_operands = 0 : i64, tpu.core_type = #tpu.core_type<tc>, window_params = [{pipeline_mode = #tpu.pipeline_mode<synchronous>, transform_indices = @transform_0, window_bounds = array<i64: 384, 384>}, {pipeline_mode = #tpu.pipeline_mode<synchronous>, transform_indices = @transform_1, window_bounds = array<i64: 384, 32>}, {pipeline_mode = #tpu.pipeline_mode<synchronous>, transform_indices = @transform_2, window_bounds = array<i64: 4, 32, 32>}, {pipeline_mode = #tpu.pipeline_mode<synchronous>, transform_indices = @transform_3, window_bounds = array<i64: 4, 1, 32>}, {pipeline_mode = #tpu.pipeline_mode<synchronous>, transform_indices = @transform_4, window_bounds = array<i64: 4, 384>}, {pipeline_mode = #tpu.pipeline_mode<synchronous>, transform_indices = @transform_5, window_bounds = array<i64: 4, 32, 128>}, {pipeline_mode = #tpu.pipeline_mode<synchronous>, transform_indices = @transform_6, window_bounds = array<i64: 1, 128>}, {pipeline_mode = #tpu.pipeline_mode<synchronous>, transform_indices = @transform_7, window_bounds = array<i64: 128, 128>}, {pipeline_mode = #tpu.pipeline_mode<synchronous>, transform_indices = @transform_8, window_bounds = array<i64: 1, 128>}, {pipeline_mode = #tpu.pipeline_mode<synchronous>, transform_indices = @transform_9, window_bounds = array<i64: 4, 128>}]} {
    %c0 = arith.constant 0 : index
    %c0_0 = arith.constant 0 : index
    %0 = vector.load %arg1[%c0, %c0_0] : memref<384x384xbf16, #tpu.memory_space<vmem>>, vector<384x384xbf16>
    %c0_1 = arith.constant 0 : index
    %c0_2 = arith.constant 0 : index
    %1 = vector.load %arg5[%c0_1, %c0_2] : memref<4x384xbf16, #tpu.memory_space<vmem>>, vector<4x384xbf16>
    %c0_3 = arith.constant 0 : index
    %c0_4 = arith.constant 0 : index
    %2 = vector.load %arg2[%c0_3, %c0_4] : memref<384x32xbf16, #tpu.memory_space<vmem>>, vector<384x32xbf16>
    %cst = arith.constant 0.000000e+00 : f32
    %3 = vector.broadcast %cst : f32 to vector<4x128xf32>
    %c0_5 = arith.constant 0 : index
    %c0_6 = arith.constant 0 : index
    %4 = vector.load %arg7[%c0_5, %c0_6] : memref<1x128xf32, #tpu.memory_space<vmem>>, vector<1x128xf32>
    %5 = vector.broadcast %4 : vector<1x128xf32> to vector<4x128xf32>
    %6 = arith.addf %3, %5 : vector<4x128xf32>
    %c0_7 = arith.constant 0 : index
    %c0_8 = arith.constant 0 : index
    %c0_9 = arith.constant 0 : index
    %7 = vector.load %arg3[%c0_7, %c0_8, %c0_9] : memref<4x32x32xbf16, #tpu.memory_space<vmem>>, vector<1x32x32xbf16>
    %8 = vector.shape_cast %7 : vector<1x32x32xbf16> to vector<32x32xbf16>
    %cst_10 = arith.constant dense<0.000000e+00> : vector<384x32xf32>
    %9 = tpu.matmul %2, %8, %cst_10 {dimension_numbers = #tpu.dot_dimension_numbers<[1], [0], [0], [1], [0, 0, 1, 1], [], []>} : vector<384x32xbf16>, vector<32x32xbf16>, vector<384x32xf32> -> vector<384x32xf32>
    %10 = arith.truncf %9 : vector<384x32xf32> to vector<384x32xbf16>
    %cst_11 = arith.constant dense<0.000000e+00> : vector<384x32xf32>
    %11 = tpu.matmul %0, %10, %cst_11 {dimension_numbers = #tpu.dot_dimension_numbers<[1], [0], [0], [1], [0, 0, 1, 1], [], []>} : vector<384x384xbf16>, vector<384x32xbf16>, vector<384x32xf32> -> vector<384x32xf32>
    %c0_12 = arith.constant 0 : index
    %c0_13 = arith.constant 0 : index
    %c0_14 = arith.constant 0 : index
    %12 = vector.load %arg4[%c0_12, %c0_13, %c0_14] : memref<4x1x32xf32, #tpu.memory_space<vmem>>, vector<1x1x32xf32>
    %13 = vector.shape_cast %12 : vector<1x1x32xf32> to vector<1x32xf32>
    %14 = vector.broadcast %13 : vector<1x32xf32> to vector<384x32xf32>
    %15 = arith.addf %11, %14 : vector<384x32xf32>
    %16 = math.tanh %15 : vector<384x32xf32>
    %17 = arith.truncf %16 : vector<384x32xf32> to vector<384x32xbf16>
    %cst_15 = arith.constant dense<0.000000e+00> : vector<4x32xf32>
    %18 = tpu.matmul %1, %17, %cst_15 {dimension_numbers = #tpu.dot_dimension_numbers<[1], [0], [0], [1], [0, 0, 1, 1], [], []>} : vector<4x384xbf16>, vector<384x32xbf16>, vector<4x32xf32> -> vector<4x32xf32>
    %c0_16 = arith.constant 0 : index
    %c0_17 = arith.constant 0 : index
    %c0_18 = arith.constant 0 : index
    %19 = vector.load %arg6[%c0_16, %c0_17, %c0_18] : memref<4x32x128xf32, #tpu.memory_space<vmem>>, vector<1x32x128xf32>
    %20 = vector.shape_cast %19 : vector<1x32x128xf32> to vector<32x128xf32>
    %cst_19 = arith.constant dense<0.000000e+00> : vector<4x128xf32>
    %21 = tpu.matmul %18, %20, %cst_19 {dimension_numbers = #tpu.dot_dimension_numbers<[1], [0], [0], [1], [0, 0, 1, 1], [], []>} : vector<4x32xf32>, vector<32x128xf32>, vector<4x128xf32> -> vector<4x128xf32>
    %22 = arith.addf %6, %21 : vector<4x128xf32>
    %c1 = arith.constant 1 : index
    %c0_20 = arith.constant 0 : index
    %c0_21 = arith.constant 0 : index
    %23 = vector.load %arg3[%c1, %c0_20, %c0_21] : memref<4x32x32xbf16, #tpu.memory_space<vmem>>, vector<1x32x32xbf16>
    %24 = vector.shape_cast %23 : vector<1x32x32xbf16> to vector<32x32xbf16>
    %cst_22 = arith.constant dense<0.000000e+00> : vector<384x32xf32>
    %25 = tpu.matmul %17, %24, %cst_22 {dimension_numbers = #tpu.dot_dimension_numbers<[1], [0], [0], [1], [0, 0, 1, 1], [], []>} : vector<384x32xbf16>, vector<32x32xbf16>, vector<384x32xf32> -> vector<384x32xf32>
    %26 = arith.truncf %25 : vector<384x32xf32> to vector<384x32xbf16>
    %cst_23 = arith.constant dense<0.000000e+00> : vector<384x32xf32>
    %27 = tpu.matmul %0, %26, %cst_23 {dimension_numbers = #tpu.dot_dimension_numbers<[1], [0], [0], [1], [0, 0, 1, 1], [], []>} : vector<384x384xbf16>, vector<384x32xbf16>, vector<384x32xf32> -> vector<384x32xf32>
    %c1_24 = arith.constant 1 : index
    %c0_25 = arith.constant 0 : index
    %c0_26 = arith.constant 0 : index
    %28 = vector.load %arg4[%c1_24, %c0_25, %c0_26] : memref<4x1x32xf32, #tpu.memory_space<vmem>>, vector<1x1x32xf32>
    %29 = vector.shape_cast %28 : vector<1x1x32xf32> to vector<1x32xf32>
    %30 = vector.broadcast %29 : vector<1x32xf32> to vector<384x32xf32>
    %31 = arith.addf %27, %30 : vector<384x32xf32>
    %32 = math.tanh %31 : vector<384x32xf32>
    %33 = arith.truncf %32 : vector<384x32xf32> to vector<384x32xbf16>
    %cst_27 = arith.constant dense<0.000000e+00> : vector<4x32xf32>
    %34 = tpu.matmul %1, %33, %cst_27 {dimension_numbers = #tpu.dot_dimension_numbers<[1], [0], [0], [1], [0, 0, 1, 1], [], []>} : vector<4x384xbf16>, vector<384x32xbf16>, vector<4x32xf32> -> vector<4x32xf32>
    %c1_28 = arith.constant 1 : index
    %c0_29 = arith.constant 0 : index
    %c0_30 = arith.constant 0 : index
    %35 = vector.load %arg6[%c1_28, %c0_29, %c0_30] : memref<4x32x128xf32, #tpu.memory_space<vmem>>, vector<1x32x128xf32>
    %36 = vector.shape_cast %35 : vector<1x32x128xf32> to vector<32x128xf32>
    %cst_31 = arith.constant dense<0.000000e+00> : vector<4x128xf32>
    %37 = tpu.matmul %34, %36, %cst_31 {dimension_numbers = #tpu.dot_dimension_numbers<[1], [0], [0], [1], [0, 0, 1, 1], [], []>} : vector<4x32xf32>, vector<32x128xf32>, vector<4x128xf32> -> vector<4x128xf32>
    %38 = arith.addf %22, %37 : vector<4x128xf32>
    %c2 = arith.constant 2 : index
    %c0_32 = arith.constant 0 : index
    %c0_33 = arith.constant 0 : index
    %39 = vector.load %arg3[%c2, %c0_32, %c0_33] : memref<4x32x32xbf16, #tpu.memory_space<vmem>>, vector<1x32x32xbf16>
    %40 = vector.shape_cast %39 : vector<1x32x32xbf16> to vector<32x32xbf16>
    %cst_34 = arith.constant dense<0.000000e+00> : vector<384x32xf32>
    %41 = tpu.matmul %33, %40, %cst_34 {dimension_numbers = #tpu.dot_dimension_numbers<[1], [0], [0], [1], [0, 0, 1, 1], [], []>} : vector<384x32xbf16>, vector<32x32xbf16>, vector<384x32xf32> -> vector<384x32xf32>
    %42 = arith.truncf %41 : vector<384x32xf32> to vector<384x32xbf16>
    %cst_35 = arith.constant dense<0.000000e+00> : vector<384x32xf32>
    %43 = tpu.matmul %0, %42, %cst_35 {dimension_numbers = #tpu.dot_dimension_numbers<[1], [0], [0], [1], [0, 0, 1, 1], [], []>} : vector<384x384xbf16>, vector<384x32xbf16>, vector<384x32xf32> -> vector<384x32xf32>
    %c2_36 = arith.constant 2 : index
    %c0_37 = arith.constant 0 : index
    %c0_38 = arith.constant 0 : index
    %44 = vector.load %arg4[%c2_36, %c0_37, %c0_38] : memref<4x1x32xf32, #tpu.memory_space<vmem>>, vector<1x1x32xf32>
    %45 = vector.shape_cast %44 : vector<1x1x32xf32> to vector<1x32xf32>
    %46 = vector.broadcast %45 : vector<1x32xf32> to vector<384x32xf32>
    %47 = arith.addf %43, %46 : vector<384x32xf32>
    %48 = math.tanh %47 : vector<384x32xf32>
    %49 = arith.truncf %48 : vector<384x32xf32> to vector<384x32xbf16>
    %cst_39 = arith.constant dense<0.000000e+00> : vector<4x32xf32>
    %50 = tpu.matmul %1, %49, %cst_39 {dimension_numbers = #tpu.dot_dimension_numbers<[1], [0], [0], [1], [0, 0, 1, 1], [], []>} : vector<4x384xbf16>, vector<384x32xbf16>, vector<4x32xf32> -> vector<4x32xf32>
    %c2_40 = arith.constant 2 : index
    %c0_41 = arith.constant 0 : index
    %c0_42 = arith.constant 0 : index
    %51 = vector.load %arg6[%c2_40, %c0_41, %c0_42] : memref<4x32x128xf32, #tpu.memory_space<vmem>>, vector<1x32x128xf32>
    %52 = vector.shape_cast %51 : vector<1x32x128xf32> to vector<32x128xf32>
    %cst_43 = arith.constant dense<0.000000e+00> : vector<4x128xf32>
    %53 = tpu.matmul %50, %52, %cst_43 {dimension_numbers = #tpu.dot_dimension_numbers<[1], [0], [0], [1], [0, 0, 1, 1], [], []>} : vector<4x32xf32>, vector<32x128xf32>, vector<4x128xf32> -> vector<4x128xf32>
    %54 = arith.addf %38, %53 : vector<4x128xf32>
    %c3 = arith.constant 3 : index
    %c0_44 = arith.constant 0 : index
    %c0_45 = arith.constant 0 : index
    %55 = vector.load %arg3[%c3, %c0_44, %c0_45] : memref<4x32x32xbf16, #tpu.memory_space<vmem>>, vector<1x32x32xbf16>
    %56 = vector.shape_cast %55 : vector<1x32x32xbf16> to vector<32x32xbf16>
    %cst_46 = arith.constant dense<0.000000e+00> : vector<384x32xf32>
    %57 = tpu.matmul %49, %56, %cst_46 {dimension_numbers = #tpu.dot_dimension_numbers<[1], [0], [0], [1], [0, 0, 1, 1], [], []>} : vector<384x32xbf16>, vector<32x32xbf16>, vector<384x32xf32> -> vector<384x32xf32>
    %58 = arith.truncf %57 : vector<384x32xf32> to vector<384x32xbf16>
    %cst_47 = arith.constant dense<0.000000e+00> : vector<384x32xf32>
    %59 = tpu.matmul %0, %58, %cst_47 {dimension_numbers = #tpu.dot_dimension_numbers<[1], [0], [0], [1], [0, 0, 1, 1], [], []>} : vector<384x384xbf16>, vector<384x32xbf16>, vector<384x32xf32> -> vector<384x32xf32>
    %c3_48 = arith.constant 3 : index
    %c0_49 = arith.constant 0 : index
    %c0_50 = arith.constant 0 : index
    %60 = vector.load %arg4[%c3_48, %c0_49, %c0_50] : memref<4x1x32xf32, #tpu.memory_space<vmem>>, vector<1x1x32xf32>
    %61 = vector.shape_cast %60 : vector<1x1x32xf32> to vector<1x32xf32>
    %62 = vector.broadcast %61 : vector<1x32xf32> to vector<384x32xf32>
    %63 = arith.addf %59, %62 : vector<384x32xf32>
    %64 = math.tanh %63 : vector<384x32xf32>
    %65 = arith.truncf %64 : vector<384x32xf32> to vector<384x32xbf16>
    %cst_51 = arith.constant dense<0.000000e+00> : vector<4x32xf32>
    %66 = tpu.matmul %1, %65, %cst_51 {dimension_numbers = #tpu.dot_dimension_numbers<[1], [0], [0], [1], [0, 0, 1, 1], [], []>} : vector<4x384xbf16>, vector<384x32xbf16>, vector<4x32xf32> -> vector<4x32xf32>
    %c3_52 = arith.constant 3 : index
    %c0_53 = arith.constant 0 : index
    %c0_54 = arith.constant 0 : index
    %67 = vector.load %arg6[%c3_52, %c0_53, %c0_54] : memref<4x32x128xf32, #tpu.memory_space<vmem>>, vector<1x32x128xf32>
    %68 = vector.shape_cast %67 : vector<1x32x128xf32> to vector<32x128xf32>
    %cst_55 = arith.constant dense<0.000000e+00> : vector<4x128xf32>
    %69 = tpu.matmul %66, %68, %cst_55 {dimension_numbers = #tpu.dot_dimension_numbers<[1], [0], [0], [1], [0, 0, 1, 1], [], []>} : vector<4x32xf32>, vector<32x128xf32>, vector<4x128xf32> -> vector<4x128xf32>
    %70 = arith.addf %54, %69 : vector<4x128xf32>
    %cst_56 = arith.constant 0.000000e+00 : f32
    %71 = vector.broadcast %cst_56 : f32 to vector<4x128xf32>
    %72 = arith.maximumf %70, %71 : vector<4x128xf32>
    %c0_57 = arith.constant 0 : index
    %c0_58 = arith.constant 0 : index
    %73 = vector.load %arg8[%c0_57, %c0_58] : memref<128x128xf32, #tpu.memory_space<vmem>>, vector<128x128xf32>
    %cst_59 = arith.constant dense<0.000000e+00> : vector<4x128xf32>
    %74 = tpu.matmul %72, %73, %cst_59 {dimension_numbers = #tpu.dot_dimension_numbers<[1], [0], [0], [1], [0, 0, 1, 1], [], []>} : vector<4x128xf32>, vector<128x128xf32>, vector<4x128xf32> -> vector<4x128xf32>
    %c0_60 = arith.constant 0 : index
    %c0_61 = arith.constant 0 : index
    %75 = vector.load %arg9[%c0_60, %c0_61] : memref<1x128xf32, #tpu.memory_space<vmem>>, vector<1x128xf32>
    %76 = vector.broadcast %75 : vector<1x128xf32> to vector<4x128xf32>
    %77 = arith.addf %74, %76 : vector<4x128xf32>
    %c0_62 = arith.constant 0 : index
    %c0_63 = arith.constant 0 : index
    %78 = vector.load %arg10[%c0_62, %c0_63] : memref<4x128xf32, #tpu.memory_space<vmem>>, vector<4x128xf32>
    tpu.vector_store %arg10[%c0_62, %c0_63], %77 {strides = array<i32>} : memref<4x128xf32, #tpu.memory_space<vmem>>, vector<4x128xf32>,
    return
  }
  func.func @transform_0(%arg0: i32) -> (i32, i32) {
    %c0_i32 = arith.constant 0 : i32
    %c0_i32_0 = arith.constant 0 : i32
    %c0_i32_1 = arith.constant 0 : i32
    return %c0_i32, %c0_i32_0 : i32, i32
  }
  func.func @transform_1(%arg0: i32) -> (i32, i32) {
    %c0_i32 = arith.constant 0 : i32
    %c0_i32_0 = arith.constant 0 : i32
    %c0_i32_1 = arith.constant 0 : i32
    return %c0_i32, %c0_i32_0 : i32, i32
  }
  func.func @transform_2(%arg0: i32) -> (i32, i32, i32) {
    %c0_i32 = arith.constant 0 : i32
    %c0_i32_0 = arith.constant 0 : i32
    %c0_i32_1 = arith.constant 0 : i32
    %c0_i32_2 = arith.constant 0 : i32
    return %c0_i32, %c0_i32_0, %c0_i32_1 : i32, i32, i32
  }
  func.func @transform_3(%arg0: i32) -> (i32, i32, i32) {
    %c0_i32 = arith.constant 0 : i32
    %c0_i32_0 = arith.constant 0 : i32
    %c0_i32_1 = arith.constant 0 : i32
    %c0_i32_2 = arith.constant 0 : i32
    return %c0_i32, %c0_i32_0, %c0_i32_1 : i32, i32, i32
  }
  func.func @transform_4(%arg0: i32) -> (i32, i32) {
    %c0_i32 = arith.constant 0 : i32
    %c0_i32_0 = arith.constant 0 : i32
    %c0_i32_1 = arith.constant 0 : i32
    return %c0_i32, %c0_i32_0 : i32, i32
  }
  func.func @transform_5(%arg0: i32) -> (i32, i32, i32) {
    %c0_i32 = arith.constant 0 : i32
    %c0_i32_0 = arith.constant 0 : i32
    %c0_i32_1 = arith.constant 0 : i32
    %c0_i32_2 = arith.constant 0 : i32
    return %c0_i32, %c0_i32_0, %c0_i32_1 : i32, i32, i32
  }
  func.func @transform_6(%arg0: i32) -> (i32, i32) {
    %c0_i32 = arith.constant 0 : i32
    %c0_i32_0 = arith.constant 0 : i32
    %c0_i32_1 = arith.constant 0 : i32
    return %c0_i32, %c0_i32_0 : i32, i32
  }
  func.func @transform_7(%arg0: i32) -> (i32, i32) {
    %c0_i32 = arith.constant 0 : i32
    %c0_i32_0 = arith.constant 0 : i32
    %c0_i32_1 = arith.constant 0 : i32
    return %c0_i32, %c0_i32_0 : i32, i32
  }
  func.func @transform_8(%arg0: i32) -> (i32, i32) {
    %c0_i32 = arith.constant 0 : i32
    %c0_i32_0 = arith.constant 0 : i32
    %c0_i32_1 = arith.constant 0 : i32
    return %c0_i32, %c0_i32_0 : i32, i32
  }
  func.func @transform_9(%arg0: i32) -> (i32, i32) {
    %c0_i32 = arith.constant 0 : i32
    %c0_i32_0 = arith.constant 0 : i32
    %c0_i32_1 = arith.constant 0 : i32
    return %c0_i32, %c0_i32_0 : i32, i32
  }
}

</mosaic_0001>

<bundles_post_ra>
// kernel: gnn_forward.1
= control target key start
LH: loop header
LB: loop body
LE: loop exit
PB: predicated region body
PF: predicated region fallthrough
CT: control target
= control target key end

     0   :  { %vm322_vm0 = vcmask 261120   ;;  %v6960_v26 = vmov 0   ;;  %vm6963_vm1 = vmmov 0   ;;  %s9200_s2 = inlined_call_operand.vmem [shape: bf16[4,32,32], index: 2, kind: input, shape index: {}]   ;;  %s9201_s1 = inlined_call_operand.vmem [shape: bf16[384,32], index: 1, kind: input, shape index: {}]   ;;  %s9202_s0 = inlined_call_operand.vmem [shape: bf16[384,384], index: 0, kind: input, shape index: {}]   ;;  %s9203_s3 = inlined_call_operand.vmem [shape: f32[4,1,32], index: 3, kind: input, shape index: {}]   ;;  %s9204_s4 = inlined_call_operand.vmem [shape: bf16[4,384], index: 4, kind: input, shape index: {}]   ;;  %s9205_s5 = inlined_call_operand.vmem [shape: f32[4,32,128], index: 5, kind: input, shape index: {}]   ;;  %s9206_s7 = inlined_call_operand.vmem [shape: f32[128,128], index: 7, kind: input, shape index: {}]   ;;  %s9207_s6 = inlined_call_operand.vmem [shape: f32[1,128], index: 6, kind: input, shape index: {}]   ;;  %s9208_s8 = inlined_call_operand.vmem [shape: f32[1,128], index: 8, kind: input, shape index: {}]   ;;  %s9209_s9 = inlined_call_operand.vmem [shape: f32[4,128], index: 9, kind: output, shape index: {}]  }
   0x1   :  { %v6232_v0 = vld [vmem:[%s9200_s2] sm:$0xff]   ;;  %v6233_v1 = vld [vmem:[%s9200_s2 + $0x8] sm:$0xff]   ;;  %v6238_v6 = vld [vmem:[%s9201_s1 + $0x10] sm:$0xff]  }
   0x2   :  { %5545 = vmatprep.subr.bf16.mxu0 %v6232_v0  ;;  %6216 = vmatprep.subr.bf16.mxu1 %v6232_v0  ;;  %v6234_v2 = vld [vmem:[%s9201_s1] sm:$0xff]   ;;  %v6236_v4 = vld [vmem:[%s9201_s1 + $0x8] sm:$0xff]   ;;  %v6239_v7 = vld [vmem:[%s9201_s1 + $0x50] sm:$0xff]  }
   0x3   :  { %5546 = vmatpush3.bf16.msra.mxu0 %v6232_v0  ;;  %6218 = vmatpush3.bf16.msra.mxu1 %v6232_v0  ;;  %v6235_v3 = vld [vmem:[%s9201_s1 + $0x40] sm:$0xff]   ;;  %v6237_v5 = vld [vmem:[%s9201_s1 + $0x48] sm:$0xff]   ;;  %v6240_v8 = vld [vmem:[%s9201_s1 + $0x18] sm:$0xff]  }
   0x4   :  { %5547 = vmatprep.subr.bf16.mxu0 %v6233_v1  ;;  %6217 = vmatprep.subr.bf16.mxu1 %v6233_v1  ;;  %v6241_v9 = vld [vmem:[%s9201_s1 + $0x58] sm:$0xff]   ;;  %v6242_v10 = vld [vmem:[%s9201_s1 + $0x20] sm:$0xff]   ;;  %v6244_v12 = vld [vmem:[%s9201_s1 + $0x28] sm:$0xff]  }
   0x5   :  { %5549 = vmatprep.mubr.msk.bf16.mxu0 %vm322_vm0, %v6234_v2  ;;  %5565 = vmatprep.mubr.msk.bf16.mxu1 %vm322_vm0, %v6235_v3  ;;  %v6243_v11 = vld [vmem:[%s9201_s1 + $0x60] sm:$0xff]   ;;  %v6245_v13 = vld [vmem:[%s9201_s1 + $0x68] sm:$0xff]   ;;  %v6246_v14 = vld [vmem:[%s9201_s1 + $0x30] sm:$0xff]  }
   0x6   :  { %v6247_v15 = vld [vmem:[%s9201_s1 + $0x70] sm:$0xff]   ;;  %v6248_v16 = vld [vmem:[%s9201_s1 + $0x38] sm:$0xff]   ;;  %v6250_v18 = vld [vmem:[%s9201_s1 + $0x80] sm:$0xff]  }
   0x7   :  { %5548 = vmatpush3.bf16.msra.mxu0 %v6233_v1  ;;  %6219 = vmatpush3.bf16.msra.mxu1 %v6233_v1  ;;  %v6249_v17 = vld [vmem:[%s9201_s1 + $0x78] sm:$0xff]   ;;  %v6251_v19 = vld [vmem:[%s9201_s1 + $0x88] sm:$0xff]   ;;  %v6252_v20 = vld [vmem:[%s9201_s1 + $0x90] sm:$0xff]  }
   0x8   :  { %v6253_v21 = vld [vmem:[%s9201_s1 + $0x98] sm:$0xff]   ;;  %v6254_v22 = vld [vmem:[%s9201_s1 + $0xa0] sm:$0xff]   ;;  %v6255_v23 = vld [vmem:[%s9201_s1 + $0xa8] sm:$0xff]   ;;  %1035 = vmatprep.subr.bf16.mxu1 %v6960_v26 }
   0x9   :  { %v6256_v24 = vld [vmem:[%s9201_s1 + $0xb0] sm:$0xff]   ;;  %v6257_v25 = vld [vmem:[%s9201_s1 + $0xb8] sm:$0xff]  }
   0xa   :  { %5550 = vmatmul.mubr.msk.bf16.vlgmr.msra.gmra.mrb[0].mxu0 %vm322_vm0, %v6236_v4  ;;  %5566 = vmatmul.mubr.msk.bf16.vlgmr.msra.gmra.mrb[0].mxu1 %vm322_vm0, %v6237_v5  ;;  %v7121_v27 = vld [vmem:[%s9202_s0 + $0x4] ss:$12 sps:$4 sm:$0xff]   ;;  %v6261_v28 = vld [vmem:[%s9202_s0 + $0x8] ss:$12 sps:$4 sm:$0xff]  }
   0xb   :  { %5553 = vmatprep.mubr.msk.bf16.mxu0 %vm322_vm0, %v6238_v6  ;;  %5569 = vmatprep.mubr.msk.bf16.mxu1 %vm322_vm0, %v6239_v7 }
  0x12   :  { %5554 = vmatmul.mubr.msk.bf16.gmra.mrb[4].mxu0 %vm322_vm0, %v6240_v8  ;;  %5570 = vmatmul.mubr.msk.bf16.gmra.mrb[4].mxu1 %vm322_vm0, %v6241_v9 }
  0x13   :  { %5557 = vmatprep.mubr.msk.bf16.mxu0 %vm322_vm0, %v6242_v10  ;;  %5573 = vmatprep.mubr.msk.bf16.mxu1 %vm322_vm0, %v6243_v11 }
  0x1a   :  { %5558 = vmatmul.mubr.msk.bf16.gmra.mrb[8].mxu0 %vm322_vm0, %v6244_v12  ;;  %5574 = vmatmul.mubr.msk.bf16.gmra.mrb[8].mxu1 %vm322_vm0, %v6245_v13 }
  0x1b   :  { %5561 = vmatprep.mubr.msk.bf16.mxu0 %vm322_vm0, %v6246_v14  ;;  %5577 = vmatprep.mubr.msk.bf16.mxu1 %vm322_vm0, %v6247_v15 }
  0x22   :  { %5562 = vmatmul.mubr.msk.bf16.gmra.mrb[12].mxu0 %vm322_vm0, %v6248_v16  ;;  %5578 = vmatmul.mubr.msk.bf16.gmra.mrb[12].mxu1 %vm322_vm0, %v6249_v17 }
  0x23   :  { %5581 = vmatprep.mubr.msk.bf16.mxu1 %vm322_vm0, %v6250_v18  ;;  %5613 = vmatprep.mubr.bf16.mxu0 %v6261_v28 }
  0x2a   :  { %5582 = vmatmul.mubr.msk.bf16.gmra.mrb[16].mxu1 %vm322_vm0, %v6251_v19 }
  0x2b   :  { %5585 = vmatprep.mubr.msk.bf16.mxu1 %vm322_vm0, %v6252_v20 }
  0x32   :  { %5586 = vmatmul.mubr.msk.bf16.gmra.mrb[20].mxu1 %vm322_vm0, %v6253_v21 }
  0x33   :  { %5589 = vmatprep.mubr.msk.bf16.mxu1 %vm322_vm0, %v6254_v22 }
  0x3a   :  { %5590 = vmatmul.mubr.msk.bf16.gmra.mrb[24].mxu1 %vm322_vm0, %v6255_v23 }
  0x3b   :  { %5593 = vmatprep.mubr.msk.bf16.mxu1 %vm322_vm0, %v6256_v24 }
  0x42   :  { %5594 = vmatmul.mubr.msk.bf16.gmra.mrb[28].mxu1 %vm322_vm0, %v6257_v25 }
  0x43   :  { %1067 = vmatprep.mubr.bf16.mxu1 %v7121_v27 }
  0xdd   :  { %v5551_v29 = vpop.f32.mrb[0].mxu0  ;;  %v7127_v30 = vpop.f32.mrb[0].mxu1 }
  0xde   :  { %v429_v31 = vpop.f32.mrb[1].mxu0  ;;  %v7129_v32 = vpop.f32.mrb[1].mxu1 }
  0xdf   :  { %v5552_v33 = vpop.f32.mrb[2].mxu0  ;;  %v7131_v34 = vpop.f32.mrb[2].mxu1 }
  0xe0   :  { %v621_v35 = vpack.c.bf16 %v5552_v33, %v5551_v29  ;;  %v432_v36 = vpop.f32.mrb[3].mxu0  ;;  %v629_v37 = vpack.c.bf16 %v7131_v34, %v7127_v30  ;;  %v496_v38 = vpop.f32.mrb[3].mxu1 }
  0xe1   :  { %v620_v39 = vpack.c.bf16 %v432_v36, %v429_v31  ;;  %v628_v40 = vpack.c.bf16 %v496_v38, %v7129_v32 }
  0xe3   :  { %1036 = vmatpush1.bf16.msra.mxu1 %v620_v39  ;;  %v6258_v39 = vld [vmem:[%s9202_s0] ss:$12 sps:$4 sm:$0xff]  }
  0xe4   :  { %1037 = vmatprep.subr.bf16.mxu1 %v6960_v26 }
  0xe5   :  { %v5555_v41 = vpop.f32.mrb[4].mxu0  ;;  %v7137_v42 = vpop.f32.mrb[4].mxu1 }
  0xe6   :  { %v445_v43 = vpop.f32.mrb[5].mxu0  ;;  %v7139_v44 = vpop.f32.mrb[5].mxu1 }
  0xe7   :  { %v5556_v45 = vpop.f32.mrb[6].mxu0  ;;  %1038 = vmatpush1.bf16.msra.mxu1 %v621_v35  ;;  %v7141_v46 = vpop.f32.mrb[6].mxu1 }
  0xe8   :  { %v623_v47 = vpack.c.bf16 %v5556_v45, %v5555_v41  ;;  %v448_v48 = vpop.f32.mrb[7].mxu0  ;;  %1039 = vmatprep.subr.bf16.mxu1 %v6960_v26  ;;  %v631_v49 = vpack.c.bf16 %v7141_v46, %v7137_v42  ;;  %v512_v50 = vpop.f32.mrb[7].mxu1  ;;  %v6263_v41 = vld [vmem:[%s9202_s0 + $0x1c] ss:$12 sps:$4 sm:$0xff]   ;;  %v6269_v42 = vld [vmem:[%s9202_s0 + $0x38] ss:$12 sps:$4 sm:$0xff]  }
  0xe9   :  { %v622_v51 = vpack.c.bf16 %v448_v48, %v445_v43  ;;  %v630_v52 = vpack.c.bf16 %v512_v50, %v7139_v44  ;;  %v6265_v43 = vld [vmem:[%s9202_s0 + $0x18] ss:$12 sps:$4 sm:$0xff]   ;;  %v6266_v44 = vld [vmem:[%s9202_s0 + $0x34] ss:$12 sps:$4 sm:$0xff]   ;;  %v6270_v45 = vld [vmem:[%s9202_s0 + $0x50] ss:$12 sps:$4 sm:$0xff]  }
  0xea   :  { %v6277_v46 = vld [vmem:[%s9202_s0 + $0x68] ss:$12 sps:$4 sm:$0xff]   ;;  %v6271_v48 = vld [vmem:[%s9202_s0 + $0x4c] ss:$12 sps:$4 sm:$0xff]  }
  0xeb   :  { %1040 = vmatpush1.bf16.msra.mxu1 %v622_v51  ;;  %v6285_v50 = vld [vmem:[%s9202_s0 + $0x98] ss:$12 sps:$4 sm:$0xff]   ;;  %v6273_v51 = vld [vmem:[%s9202_s0 + $0x48] ss:$12 sps:$4 sm:$0xff]  }
  0xec   :  { %1041 = vmatprep.subr.bf16.mxu1 %v6960_v26 }
  0xed   :  { %v5559_v53 = vpop.f32.mrb[8].mxu0  ;;  %v7148_v54 = vpop.f32.mrb[8].mxu1 }
  0xee   :  { %v461_v55 = vpop.f32.mrb[9].mxu0  ;;  %v7150_v56 = vpop.f32.mrb[9].mxu1 }
  0xef   :  { %v5560_v57 = vpop.f32.mrb[10].mxu0  ;;  %1042 = vmatpush1.bf16.msra.mxu1 %v623_v47  ;;  %v7152_v58 = vpop.f32.mrb[10].mxu1  ;;  %v6268_v47 = vld [vmem:[%s9202_s0 + $0x30] ss:$12 sps:$4 sm:$0xff]  }
  0xf0   :  { %v625_v59 = vpack.c.bf16 %v5560_v57, %v5559_v53  ;;  %v464_v60 = vpop.f32.mrb[11].mxu0  ;;  %1043 = vmatprep.subr.bf16.mxu1 %v6960_v26  ;;  %v633_v61 = vpack.c.bf16 %v7152_v58, %v7148_v54  ;;  %v528_v62 = vpop.f32.mrb[11].mxu1  ;;  %v6286_v53 = vld [vmem:[%s9202_s0 + $0xb0] ss:$12 sps:$4 sm:$0xff]   ;;  %v6293_v54 = vld [vmem:[%s9202_s0 + $0xc8] ss:$12 sps:$4 sm:$0xff]  }
  0xf1   :  { %v624_v63 = vpack.c.bf16 %v464_v60, %v461_v55  ;;  %v632_v0 = vpack.c.bf16 %v528_v62, %v7150_v56  ;;  %v6276_v55 = vld [vmem:[%s9202_s0 + $0x60] ss:$12 sps:$4 sm:$0xff]   ;;  %v6279_v56 = vld [vmem:[%s9202_s0 + $0x7c] ss:$12 sps:$4 sm:$0xff]   ;;  %v6301_v58 = vld [vmem:[%s9202_s0 + $0xf8] ss:$12 sps:$4 sm:$0xff]  }
  0xf2   :  { %v6294_v57 = vld [vmem:[%s9202_s0 + $0xe0] ss:$12 sps:$4 sm:$0xff]   ;;  %v6309_v62 = vld [vmem:[%s9202_s0 + $0x128] ss:$12 sps:$4 sm:$0xff]  }
  0xf3   :  { %1044 = vmatpush1.bf16.msra.mxu1 %v624_v63  ;;  %v6282_v60 = vld [vmem:[%s9202_s0 + $0x94] ss:$12 sps:$4 sm:$0xff]   ;;  %v6284_v63 = vld [vmem:[%s9202_s0 + $0x90] ss:$12 sps:$4 sm:$0xff]  }
  0xf4   :  { %1045 = vmatprep.subr.bf16.mxu1 %v6960_v26 }
  0xf5   :  { %v5563_v1 = vpop.f32.mrb[12].mxu0  ;;  %v7159_v2 = vpop.f32.mrb[12].mxu1 }
  0xf6   :  { %v477_v3 = vpop.f32.mrb[13].mxu0  ;;  %v7161_v4 = vpop.f32.mrb[13].mxu1 }
  0xf7   :  { %v5564_v5 = vpop.f32.mrb[14].mxu0  ;;  %1046 = vmatpush1.bf16.msra.mxu1 %v625_v59  ;;  %v7163_v6 = vpop.f32.mrb[14].mxu1  ;;  %v6281_v59 = vld [vmem:[%s9202_s0 + $0x78] ss:$12 sps:$4 sm:$0xff]  }
  0xf8   :  { %v627_v7 = vpack.c.bf16 %v5564_v5, %v5563_v1  ;;  %v480_v8 = vpop.f32.mrb[15].mxu0  ;;  %1047 = vmatprep.subr.bf16.mxu1 %v6960_v26  ;;  %v635_v9 = vpack.c.bf16 %v7163_v6, %v7159_v2  ;;  %v544_v10 = vpop.f32.mrb[15].mxu1  ;;  %v6310_v1 = vld [vmem:[%s9202_s0 + $0x140] ss:$12 sps:$4 sm:$0xff]   ;;  %v6317_v2 = vld [vmem:[%s9202_s0 + $0x158] ss:$12 sps:$4 sm:$0xff]  }
  0xf9   :  { %v626_v11 = vpack.c.bf16 %v480_v8, %v477_v3  ;;  %v634_v12 = vpack.c.bf16 %v544_v10, %v7161_v4  ;;  %v6289_v3 = vld [vmem:[%s9202_s0 + $0xa8] ss:$12 sps:$4 sm:$0xff]   ;;  %v6290_v4 = vld [vmem:[%s9202_s0 + $0xc4] ss:$12 sps:$4 sm:$0xff]  }
  0xfa   :  { %v6318_v5 = vld [vmem:[%s9202_s0 + $0x170] ss:$12 sps:$4 sm:$0xff]   ;;  %v6325_v6 = vld [vmem:[%s9202_s0 + $0x188] ss:$12 sps:$4 sm:$0xff]   ;;  %v6333_v10 = vld [vmem:[%s9202_s0 + $0x1b8] ss:$12 sps:$4 sm:$0xff]  }
  0xfb   :  { %1048 = vmatpush1.bf16.msra.mxu1 %v626_v11  ;;  %v6295_v8 = vld [vmem:[%s9202_s0 + $0xdc] ss:$12 sps:$4 sm:$0xff]   ;;  %v6297_v11 = vld [vmem:[%s9202_s0 + $0xd8] ss:$12 sps:$4 sm:$0xff]  }
  0xfc   :  { %1049 = vmatprep.subr.bf16.mxu1 %v6960_v26 }
  0xfd   :  { %v5583_v13 = vpop.f32.mrb[16].mxu1 }
  0xfe   :  { %v557_v14 = vpop.f32.mrb[17].mxu1 }
  0xff   :  { %v5584_v15 = vpop.f32.mrb[18].mxu1  ;;  %1050 = vmatpush1.bf16.msra.mxu1 %v627_v7  ;;  %v6292_v7 = vld [vmem:[%s9202_s0 + $0xc0] ss:$12 sps:$4 sm:$0xff]  }
 0x100   :  { %v637_v16 = vpack.c.bf16 %v5584_v15, %v5583_v13  ;;  %v560_v17 = vpop.f32.mrb[19].mxu1  ;;  %1051 = vmatprep.subr.bf16.mxu1 %v6960_v26  ;;  %v6334_v13 = vld [vmem:[%s9202_s0 + $0x1d0] ss:$12 sps:$4 sm:$0xff]  }
 0x101   :  { %v636_v18 = vpack.c.bf16 %v560_v17, %v557_v14  ;;  %v6341_v14 = vld [vmem:[%s9202_s0 + $0x1e8] ss:$12 sps:$4 sm:$0xff]   ;;  %v6300_v15 = vld [vmem:[%s9202_s0 + $0xf0] ss:$12 sps:$4 sm:$0xff]   ;;  %v6342_v17 = vld [vmem:[%s9202_s0 + $0x200] ss:$12 sps:$4 sm:$0xff]  }
 0x103   :  { %1052 = vmatpush1.bf16.msra.mxu1 %v628_v40  ;;  %5597 = vmatprep.subr.bf16.mxu0 %v636_v18  ;;  %v6262_v40 = vld [vmem:[%s9202_s0 + $0x20] ss:$12 sps:$4 sm:$0xff]  }
 0x104   :  { %5598 = vmatpush3.bf16.msra.mxu0 %v636_v18  ;;  %1053 = vmatprep.subr.bf16.mxu1 %v6960_v26  ;;  %v6349_v18 = vld [vmem:[%s9202_s0 + $0x218] ss:$12 sps:$4 sm:$0xff]  }
 0x105   :  { %v5587_v19 = vpop.f32.mrb[20].mxu1  ;;  %5599 = vmatprep.subr.bf16.mxu0 %v637_v16 }
 0x106   :  { %v573_v20 = vpop.f32.mrb[21].mxu1 }
 0x107   :  { %v5588_v21 = vpop.f32.mrb[22].mxu1  ;;  %1054 = vmatpush1.bf16.msra.mxu1 %v629_v37 }
 0x108   :  { %v639_v22 = vpack.c.bf16 %v5588_v21, %v5587_v19  ;;  %v576_v23 = vpop.f32.mrb[23].mxu1  ;;  %5600 = vmatpush3.bf16.msra.mxu0 %v637_v16  ;;  %1055 = vmatprep.subr.bf16.mxu1 %v6960_v26  ;;  %v6303_v16 = vld [vmem:[%s9202_s0 + $0x10c] ss:$12 sps:$4 sm:$0xff]   ;;  %v6305_v19 = vld [vmem:[%s9202_s0 + $0x108] ss:$12 sps:$4 sm:$0xff]  }
 0x109   :  { %v638_v24 = vpack.c.bf16 %v576_v23, %v573_v20  ;;  %v6306_v20 = vld [vmem:[%s9202_s0 + $0x124] ss:$12 sps:$4 sm:$0xff]   ;;  %v6311_v23 = vld [vmem:[%s9202_s0 + $0x13c] ss:$12 sps:$4 sm:$0xff]  }
 0x10a   :  { %v6350_v21 = vld [vmem:[%s9202_s0 + $0x230] ss:$12 sps:$4 sm:$0xff]  }
 0x10b   :  { %1056 = vmatpush1.bf16.msra.mxu1 %v630_v52  ;;  %5601 = vmatprep.subr.bf16.mxu0 %v638_v24  ;;  %v6274_v52 = vld [vmem:[%s9202_s0 + $0x64] ss:$12 sps:$4 sm:$0xff]  }
 0x10c   :  { %5602 = vmatpush3.bf16.msra.mxu0 %v638_v24  ;;  %1057 = vmatprep.subr.bf16.mxu1 %v6960_v26  ;;  %v6313_v24 = vld [vmem:[%s9202_s0 + $0x138] ss:$12 sps:$4 sm:$0xff]  }
 0x10d   :  { %v5591_v25 = vpop.f32.mrb[24].mxu1  ;;  %5603 = vmatprep.subr.bf16.mxu0 %v639_v22 }
 0x10e   :  { %v589_v28 = vpop.f32.mrb[25].mxu1 }
 0x10f   :  { %v5592_v29 = vpop.f32.mrb[26].mxu1  ;;  %1058 = vmatpush1.bf16.msra.mxu1 %v631_v49  ;;  %v6278_v49 = vld [vmem:[%s9202_s0 + $0x80] ss:$12 sps:$4 sm:$0xff]  }
 0x110   :  { %v641_v30 = vpack.c.bf16 %v5592_v29, %v5591_v25  ;;  %v592_v31 = vpop.f32.mrb[27].mxu1  ;;  %5604 = vmatpush3.bf16.msra.mxu0 %v639_v22  ;;  %1059 = vmatprep.subr.bf16.mxu1 %v6960_v26  ;;  %v6308_v22 = vld [vmem:[%s9202_s0 + $0x120] ss:$12 sps:$4 sm:$0xff]  }
 0x111   :  { %v640_v32 = vpack.c.bf16 %v592_v31, %v589_v28  ;;  %v6314_v25 = vld [vmem:[%s9202_s0 + $0x154] ss:$12 sps:$4 sm:$0xff]   ;;  %v6316_v28 = vld [vmem:[%s9202_s0 + $0x150] ss:$12 sps:$4 sm:$0xff]   ;;  %v6319_v29 = vld [vmem:[%s9202_s0 + $0x16c] ss:$12 sps:$4 sm:$0xff]  }
 0x112   :  { %v6322_v31 = vld [vmem:[%s9202_s0 + $0x184] ss:$12 sps:$4 sm:$0xff]  }
 0x113   :  { %1060 = vmatpush1.bf16.msra.mxu1 %v632_v0  ;;  %5605 = vmatprep.subr.bf16.mxu0 %v640_v32  ;;  %v6287_v0 = vld [vmem:[%s9202_s0 + $0xac] ss:$12 sps:$4 sm:$0xff]  }
 0x114   :  { %5606 = vmatpush3.bf16.msra.mxu0 %v640_v32  ;;  %1061 = vmatprep.subr.bf16.mxu1 %v6960_v26  ;;  %v6324_v32 = vld [vmem:[%s9202_s0 + $0x180] ss:$12 sps:$4 sm:$0xff]  }
 0x115   :  { %v5595_v33 = vpop.f32.mrb[28].mxu1  ;;  %5607 = vmatprep.subr.bf16.mxu0 %v641_v30 }
 0x116   :  { %v605_v34 = vpop.f32.mrb[29].mxu1 }
 0x117   :  { %v5596_v35 = vpop.f32.mrb[30].mxu1  ;;  %1062 = vmatpush1.bf16.msra.mxu1 %v633_v61  ;;  %v6302_v61 = vld [vmem:[%s9202_s0 + $0x110] ss:$12 sps:$4 sm:$0xff]  }
 0x118   :  { %v643_v36 = vpack.c.bf16 %v5596_v35, %v5595_v33  ;;  %v608_v37 = vpop.f32.mrb[31].mxu1  ;;  %5608 = vmatpush3.bf16.msra.mxu0 %v641_v30  ;;  %1063 = vmatprep.subr.bf16.mxu1 %v6960_v26  ;;  %v6321_v30 = vld [vmem:[%s9202_s0 + $0x168] ss:$12 sps:$4 sm:$0xff]  }
 0x119   :  { %v642_v38 = vpack.c.bf16 %v608_v37, %v605_v34  ;;  %v6327_v33 = vld [vmem:[%s9202_s0 + $0x19c] ss:$12 sps:$4 sm:$0xff]   ;;  %v6329_v34 = vld [vmem:[%s9202_s0 + $0x198] ss:$12 sps:$4 sm:$0xff]   ;;  %v6330_v35 = vld [vmem:[%s9202_s0 + $0x1b4] ss:$12 sps:$4 sm:$0xff]  }
 0x11a   :  { %v6335_v37 = vld [vmem:[%s9202_s0 + $0x1cc] ss:$12 sps:$4 sm:$0xff]  }
 0x11b   :  { %1064 = vmatpush1.bf16.msra.mxu1 %v634_v12  ;;  %5609 = vmatprep.subr.bf16.mxu0 %v642_v38  ;;  %v6298_v12 = vld [vmem:[%s9202_s0 + $0xf4] ss:$12 sps:$4 sm:$0xff]  }
 0x11c   :  { %5610 = vmatpush3.bf16.msra.mxu0 %v642_v38  ;;  %1065 = vmatprep.subr.bf16.mxu1 %v6960_v26  ;;  %v6337_v38 = vld [vmem:[%s9202_s0 + $0x1c8] ss:$12 sps:$4 sm:$0xff]  }
 0x11d   :  { %5611 = vmatprep.subr.bf16.mxu0 %v643_v36 }
 0x11f   :  { %1066 = vmatpush1.bf16.msra.mxu1 %v635_v9  ;;  %v6326_v9 = vld [vmem:[%s9202_s0 + $0x1a0] ss:$12 sps:$4 sm:$0xff]  }
 0x120   :  { %5612 = vmatpush3.bf16.msra.mxu0 %v643_v36  ;;  %2081 = vmatprep.subr.bf16.mxu1 %v6960_v26  ;;  %v6332_v36 = vld [vmem:[%s9202_s0 + $0x1b0] ss:$12 sps:$4 sm:$0xff]  }
 0x122   :  { %1068 = vmatmul.mubr.bf16.vlgmr.msra.gmra.mrb[32].mxu1 %v6258_v39  ;;  %v6338_v39 = vld [vmem:[%s9202_s0 + $0x1e4] ss:$12 sps:$4 sm:$0xff]  }
 0x123   :  { %5614 = vmatmul.mubr.bf16.vlgmr.msra.gmra.mrb[16].mxu0 %v6262_v40  ;;  %1075 = vmatprep.mubr.bf16.mxu1 %v6263_v41  ;;  %v6340_v40 = vld [vmem:[%s9202_s0 + $0x1e0] ss:$12 sps:$4 sm:$0xff]   ;;  %v6343_v41 = vld [vmem:[%s9202_s0 + $0x1fc] ss:$12 sps:$4 sm:$0xff]  }
 0x124   :  { %5617 = vmatprep.mubr.bf16.mxu0 %v6269_v42  ;;  %v6345_v42 = vld [vmem:[%s9202_s0 + $0x1f8] ss:$12 sps:$4 sm:$0xff]  }
 0x12a   :  { %1076 = vmatmul.mubr.bf16.gmra.mrb[36].mxu1 %v6265_v43  ;;  %v6346_v43 = vld [vmem:[%s9202_s0 + $0x214] ss:$12 sps:$4 sm:$0xff]  }
 0x12b   :  { %1083 = vmatprep.mubr.bf16.mxu1 %v6266_v44  ;;  %5618 = vmatmul.mubr.bf16.gmra.mrb[20].mxu0 %v6270_v45  ;;  %v6348_v44 = vld [vmem:[%s9202_s0 + $0x210] ss:$12 sps:$4 sm:$0xff]   ;;  %v6351_v45 = vld [vmem:[%s9202_s0 + $0x22c] ss:$12 sps:$4 sm:$0xff]  }
 0x12c   :  { %5621 = vmatprep.mubr.bf16.mxu0 %v6277_v46  ;;  %v6353_v46 = vld [vmem:[%s9202_s0 + $0x228] ss:$12 sps:$4 sm:$0xff]  }
 0x132   :  { %1084 = vmatmul.mubr.bf16.gmra.mrb[40].mxu1 %v6268_v47  ;;  %v7402_v47 = vld [vmem:[%s9203_s3] ss:$0 sm:$0xff] }
 0x133   :  { %1091 = vmatprep.mubr.bf16.mxu1 %v6271_v48  ;;  %5622 = vmatmul.mubr.bf16.gmra.mrb[24].mxu0 %v6278_v49 }
 0x134   :  { %5625 = vmatprep.mubr.bf16.mxu0 %v6285_v50 }
 0x13a   :  { %1092 = vmatmul.mubr.bf16.gmra.mrb[44].mxu1 %v6273_v51 }
 0x13b   :  { %1099 = vmatprep.mubr.bf16.mxu1 %v6274_v52  ;;  %5626 = vmatmul.mubr.bf16.gmra.mrb[28].mxu0 %v6286_v53 }
 0x13c   :  { %5629 = vmatprep.mubr.bf16.mxu0 %v6293_v54 }
 0x142   :  { %1100 = vmatmul.mubr.bf16.gmra.mrb[48].mxu1 %v6276_v55 }
 0x143   :  { %1107 = vmatprep.mubr.bf16.mxu1 %v6279_v56  ;;  %5630 = vmatmul.mubr.bf16.gmra.mrb[32].mxu0 %v6294_v57 }
 0x144   :  { %5633 = vmatprep.mubr.bf16.mxu0 %v6301_v58 }
 0x14a   :  { %1108 = vmatmul.mubr.bf16.gmra.mrb[52].mxu1 %v6281_v59 }
 0x14b   :  { %1115 = vmatprep.mubr.bf16.mxu1 %v6282_v60  ;;  %5634 = vmatmul.mubr.bf16.gmra.mrb[36].mxu0 %v6302_v61 }
 0x14c   :  { %5637 = vmatprep.mubr.bf16.mxu0 %v6309_v62 }
 0x152   :  { %1116 = vmatmul.mubr.bf16.gmra.mrb[56].mxu1 %v6284_v63  ;;  %v6961_v63 = vmov 1983009808  }
 0x153   :  { %1123 = vmatprep.mubr.bf16.mxu1 %v6287_v0  ;;  %5638 = vmatmul.mubr.bf16.gmra.mrb[40].mxu0 %v6310_v1  ;;  %v1560_v0 = vunpack.c.l.s4 %v6961_v63  ;;  %v1562_v1 = vlaneseq }
 0x154   :  { %5641 = vmatprep.mubr.bf16.mxu0 %v6317_v2 }
 0x15a   :  { %1124 = vmatmul.mubr.bf16.gmra.mrb[60].mxu1 %v6289_v3 }
 0x15b   :  { %1131 = vmatprep.mubr.bf16.mxu1 %v6290_v4  ;;  %5642 = vmatmul.mubr.bf16.gmra.mrb[44].mxu0 %v6318_v5 }
 0x15c   :  { %5645 = vmatprep.mubr.bf16.mxu0 %v6325_v6 }
 0x162   :  { %1132 = vmatmul.mubr.bf16.gmra.mrb[64].mxu1 %v6292_v7 }
 0x163   :  { %1139 = vmatprep.mubr.bf16.mxu1 %v6295_v8  ;;  %5646 = vmatmul.mubr.bf16.gmra.mrb[48].mxu0 %v6326_v9  ;;  %v1561_v8 = vunpack.c.0.s8 %v1560_v0  ;;  %v1563_v9 = vshrl.u32 %v1562_v1, 7 }
 0x164   :  { %5649 = vmatprep.mubr.bf16.mxu0 %v6333_v10 }
 0x16a   :  { %1140 = vmatmul.mubr.bf16.gmra.mrb[68].mxu1 %v6297_v11 }
 0x16b   :  { %1147 = vmatprep.mubr.bf16.mxu1 %v6298_v12  ;;  %5650 = vmatmul.mubr.bf16.gmra.mrb[52].mxu0 %v6334_v13  ;;  %v7408_v12 = vsub.s32 %v1561_v8, %v1563_v9  ;;  %v7413_v13 = vld [vmem:[%s9204_s4] sm:$0x3f] }
 0x16c   :  { %5653 = vmatprep.mubr.bf16.mxu0 %v6341_v14 }
 0x16d   :  { %v7417_v14 = vrot.slane %v7413_v13, %v7408_v12 }
 0x172   :  { %1148 = vmatmul.mubr.bf16.gmra.mrb[72].mxu1 %v6300_v15 }
 0x173   :  { %1155 = vmatprep.mubr.bf16.mxu1 %v6303_v16  ;;  %5654 = vmatmul.mubr.bf16.gmra.mrb[56].mxu0 %v6342_v17 }
 0x174   :  { %5657 = vmatprep.mubr.bf16.mxu0 %v6349_v18 }
 0x17a   :  { %1156 = vmatmul.mubr.bf16.gmra.mrb[76].mxu1 %v6305_v19 }
 0x17b   :  { %1163 = vmatprep.mubr.bf16.mxu1 %v6306_v20  ;;  %5658 = vmatmul.mubr.bf16.gmra.mrb[60].mxu0 %v6350_v21  ;;  %v7422_v21 = vcombine.high %v7417_v14, %v7417_v14 }
 0x17d   :  { %1609 = vmatprep.mubr.bf16.mxu0 %v7422_v21 }
 0x182   :  { %1164 = vmatmul.mubr.bf16.gmra.mrb[80].mxu1 %v6308_v22 }
 0x183   :  { %1171 = vmatprep.mubr.bf16.mxu1 %v6311_v23 }
 0x18a   :  { %1172 = vmatmul.mubr.bf16.gmra.mrb[84].mxu1 %v6313_v24 }
 0x18b   :  { %1179 = vmatprep.mubr.bf16.mxu1 %v6314_v25 }
 0x192   :  { %1180 = vmatmul.mubr.bf16.gmra.mrb[88].mxu1 %v6316_v28 }
 0x193   :  { %1187 = vmatprep.mubr.bf16.mxu1 %v6319_v29 }
 0x19a   :  { %1188 = vmatmul.mubr.bf16.gmra.mrb[92].mxu1 %v6321_v30 }
 0x19b   :  { %1195 = vmatprep.mubr.bf16.mxu1 %v6322_v31 }
 0x1a2   :  { %1196 = vmatmul.mubr.bf16.gmra.mrb[96].mxu1 %v6324_v32 }
 0x1a3   :  { %1203 = vmatprep.mubr.bf16.mxu1 %v6327_v33 }
 0x1aa   :  { %1204 = vmatmul.mubr.bf16.gmra.mrb[100].mxu1 %v6329_v34 }
 0x1ab   :  { %1211 = vmatprep.mubr.bf16.mxu1 %v6330_v35 }
 0x1b2   :  { %1212 = vmatmul.mubr.bf16.gmra.mrb[104].mxu1 %v6332_v36 }
 0x1b3   :  { %1219 = vmatprep.mubr.bf16.mxu1 %v6335_v37 }
 0x1ba   :  { %1220 = vmatmul.mubr.bf16.gmra.mrb[108].mxu1 %v6337_v38 }
 0x1bb   :  { %1227 = vmatprep.mubr.bf16.mxu1 %v6338_v39 }
 0x1c2   :  { %1228 = vmatmul.mubr.bf16.gmra.mrb[112].mxu1 %v6340_v40 }
 0x1c3   :  { %1235 = vmatprep.mubr.bf16.mxu1 %v6343_v41 }
 0x1ca   :  { %1236 = vmatmul.mubr.bf16.gmra.mrb[116].mxu1 %v6345_v42 }
 0x1cb   :  { %1243 = vmatprep.mubr.bf16.mxu1 %v6346_v43 }
 0x1d2   :  { %1244 = vmatmul.mubr.bf16.gmra.mrb[120].mxu1 %v6348_v44 }
 0x1d3   :  { %1251 = vmatprep.mubr.bf16.mxu1 %v6351_v45 }
 0x1da   :  { %1252 = vmatmul.mubr.bf16.gmra.mrb[124].mxu1 %v6353_v46 }
 0x1db   :  { %2113 = vmatprep.mubr.bf16.mxu1 %v7121_v27 }
 0x1f5   :  { %v1069_v48 = vpop.f32.mrb[32].mxu1 }
 0x1f6   :  { %v1070_v49 = vadd.f32 %v7402_v47, %v1069_v48  ;;  %v1071_v50 = vpop.f32.mrb[33].mxu1  ;;  %v5615_v51 = vpop.f32.mrb[16].mxu0 }
 0x1f7   :  { %v1072_v52 = vpop.f32.mrb[34].mxu1  ;;  %v1294_v53 = vpop.f32.mrb[17].mxu0 }
 0x1f8   :  { %v1073_v54 = vadd.f32 %v7402_v47, %v1072_v52  ;;  %v1295_v55 = vadd.f32 %v1294_v53, %v1070_v49  ;;  %v1074_v56 = vpop.f32.mrb[35].mxu1  ;;  %v5616_v57 = vpop.f32.mrb[18].mxu0 }
 0x1f9   :  { %v1297_v58 = vpop.f32.mrb[19].mxu0 }
 0x1fa   :  { %v1298_v59 = vadd.f32 %v1297_v58, %v1073_v54  ;;  %6361 = vtanh.f32 %v1295_v55 }
 0x1fc   :  { %6363 = vtanh.f32 %v1298_v59 }
 0x1fd   :  { %v1077_v27 = vpop.f32.mrb[36].mxu1 }
 0x1fe   :  { %v1078_v60 = vadd.f32 %v7402_v47, %v1077_v27  ;;  %v1079_v61 = vpop.f32.mrb[37].mxu1  ;;  %v5619_v62 = vpop.f32.mrb[20].mxu0 }
 0x1ff   :  { %v1080_v2 = vpop.f32.mrb[38].mxu1  ;;  %v1310_v3 = vpop.f32.mrb[21].mxu0 }
 0x200   :  { %v1303_v4 = vadd.f32 %v5615_v51, %v1078_v60  ;;  %v1081_v5 = vadd.f32 %v7402_v47, %v1080_v2  ;;  %v1082_v6 = vpop.f32.mrb[39].mxu1  ;;  %v5620_v7 = vpop.f32.mrb[22].mxu0 }
 0x201   :  { %v1313_v10 = vpop.f32.mrb[23].mxu0 }
 0x202   :  { %v1306_v11 = vadd.f32 %v5616_v57, %v1081_v5  ;;  %6365 = vtanh.f32 %v1303_v4 }
 0x204   :  { %6367 = vtanh.f32 %v1306_v11  ;;  %v6362_v15 = vpop.eup %6361 }
 0x205   :  { %v1085_v16 = vpop.f32.mrb[40].mxu1 }
 0x206   :  { %v6364_v17 = vpop.eup %6363  ;;  %v1086_v18 = vadd.f32 %v7402_v47, %v1085_v16  ;;  %v1087_v19 = vpop.f32.mrb[41].mxu1 }
 0x207   :  { %v5623_v20 = vpop.f32.mrb[24].mxu0  ;;  %v1088_v22 = vpop.f32.mrb[42].mxu1  ;;  %v7424_v24 = vpack.c.bf16 %v6364_v17, %v6362_v15 }
 0x208   :  { %v1326_v23 = vpop.f32.mrb[25].mxu0  ;;  %v1089_v25 = vadd.f32 %v7402_v47, %v1088_v22  ;;  %v1311_v28 = vadd.f32 %v1310_v3, %v1086_v18  ;;  %v1090_v29 = vpop.f32.mrb[43].mxu1 }
 0x209   :  { %v5624_v30 = vpop.f32.mrb[26].mxu0 }
 0x20a   :  { %v1329_v31 = vpop.f32.mrb[27].mxu0  ;;  %v1314_v32 = vadd.f32 %v1313_v10, %v1089_v25  ;;  %6369 = vtanh.f32 %v1311_v28 }
 0x20c   :  { %6371 = vtanh.f32 %v1314_v32  ;;  %v6366_v33 = vpop.eup %6365 }
 0x20d   :  { %v1093_v34 = vpop.f32.mrb[44].mxu1 }
 0x20e   :  { %v6368_v35 = vpop.eup %6367  ;;  %v1094_v36 = vadd.f32 %v7402_v47, %v1093_v34  ;;  %v1095_v37 = vpop.f32.mrb[45].mxu1 }
 0x20f   :  { %v7429_v38 = vpop.f32.mrb[28].mxu0  ;;  %v1096_v39 = vpop.f32.mrb[46].mxu1  ;;  %v7431_v41 = vpack.c.bf16 %v6368_v35, %v6366_v33 }
 0x210   :  { %v1342_v40 = vpop.f32.mrb[29].mxu0  ;;  %v1319_v42 = vadd.f32 %v5619_v62, %v1094_v36  ;;  %v1097_v43 = vadd.f32 %v7402_v47, %v1096_v39  ;;  %v1098_v44 = vpop.f32.mrb[47].mxu1 }
 0x211   :  { %v7434_v45 = vpop.f32.mrb[30].mxu0 }
 0x212   :  { %v1345_v46 = vpop.f32.mrb[31].mxu0  ;;  %v1322_v48 = vadd.f32 %v5620_v7, %v1097_v43  ;;  %6373 = vtanh.f32 %v1319_v42 }
 0x214   :  { %6375 = vtanh.f32 %v1322_v48  ;;  %v6370_v49 = vpop.eup %6369 }
 0x215   :  { %v1101_v50 = vpop.f32.mrb[48].mxu1 }
 0x216   :  { %v6372_v51 = vpop.eup %6371  ;;  %v1102_v52 = vadd.f32 %v7402_v47, %v1101_v50  ;;  %v1103_v53 = vpop.f32.mrb[49].mxu1 }
 0x217   :  { %v7437_v54 = vpop.f32.mrb[32].mxu0  ;;  %v1104_v55 = vpop.f32.mrb[50].mxu1  ;;  %v7441_v57 = vpack.c.bf16 %v6372_v51, %v6370_v49 }
 0x218   :  { %v7439_v56 = vpop.f32.mrb[33].mxu0  ;;  %v1105_v58 = vadd.f32 %v7402_v47, %v1104_v55  ;;  %v1327_v59 = vadd.f32 %v1326_v23, %v1102_v52  ;;  %v1106_v27 = vpop.f32.mrb[51].mxu1 }
 0x219   :  { %v7444_v60 = vpop.f32.mrb[34].mxu0 }
 0x21a   :  { %v7446_v61 = vpop.f32.mrb[35].mxu0  ;;  %v1330_v62 = vadd.f32 %v1329_v31, %v1105_v58  ;;  %6377 = vtanh.f32 %v1327_v59 }
 0x21c   :  { %6379 = vtanh.f32 %v1330_v62  ;;  %v6374_v63 = vpop.eup %6373 }
 0x21d   :  { %v1109_v0 = vpop.f32.mrb[52].mxu1 }
 0x21e   :  { %v6376_v1 = vpop.eup %6375  ;;  %v1110_v2 = vadd.f32 %v7402_v47, %v1109_v0  ;;  %v1111_v3 = vpop.f32.mrb[53].mxu1 }
 0x21f   :  { %v7449_v4 = vpop.f32.mrb[36].mxu0  ;;  %v1112_v5 = vpop.f32.mrb[54].mxu1  ;;  %v7453_v7 = vpack.c.bf16 %v6376_v1, %v6374_v63 }
 0x220   :  { %v7451_v6 = vpop.f32.mrb[37].mxu0  ;;  %v1335_v8 = vadd.f32 %v5623_v20, %v1110_v2  ;;  %v1113_v9 = vadd.f32 %v7402_v47, %v1112_v5  ;;  %v1114_v10 = vpop.f32.mrb[55].mxu1 }
 0x221   :  { %v7456_v11 = vpop.f32.mrb[38].mxu0 }
 0x222   :  { %v7458_v15 = vpop.f32.mrb[39].mxu0  ;;  %v1338_v16 = vadd.f32 %v5624_v30, %v1113_v9  ;;  %6381 = vtanh.f32 %v1335_v8 }
 0x224   :  { %6383 = vtanh.f32 %v1338_v16  ;;  %v6378_v17 = vpop.eup %6377 }
 0x225   :  { %v1117_v18 = vpop.f32.mrb[56].mxu1 }
 0x226   :  { %v6380_v19 = vpop.eup %6379  ;;  %v1118_v22 = vadd.f32 %v7402_v47, %v1117_v18  ;;  %v1119_v23 = vpop.f32.mrb[57].mxu1 }
 0x227   :  { %v7461_v25 = vpop.f32.mrb[40].mxu0  ;;  %v1120_v28 = vpop.f32.mrb[58].mxu1  ;;  %v7465_v29 = vpack.c.bf16 %v6380_v19, %v6378_v17 }
 0x228   :  { %v7463_v20 = vpop.f32.mrb[41].mxu0  ;;  %v1121_v31 = vadd.f32 %v7402_v47, %v1120_v28  ;;  %v1343_v32 = vadd.f32 %v1342_v40, %v1118_v22  ;;  %v1122_v33 = vpop.f32.mrb[59].mxu1 }
 0x229   :  { %v7468_v30 = vpop.f32.mrb[42].mxu0 }
 0x22a   :  { %v7470_v34 = vpop.f32.mrb[43].mxu0  ;;  %v1346_v35 = vadd.f32 %v1345_v46, %v1121_v31  ;;  %6385 = vtanh.f32 %v1343_v32 }
 0x22c   :  { %6387 = vtanh.f32 %v1346_v35  ;;  %v6382_v36 = vpop.eup %6381 }
 0x22d   :  { %v1125_v37 = vpop.f32.mrb[60].mxu1 }
 0x22e   :  { %v6384_v39 = vpop.eup %6383  ;;  %v1126_v42 = vadd.f32 %v7402_v47, %v1125_v37  ;;  %v1127_v43 = vpop.f32.mrb[61].mxu1 }
 0x22f   :  { %v7473_v44 = vpop.f32.mrb[44].mxu0  ;;  %v1128_v48 = vpop.f32.mrb[62].mxu1  ;;  %v7477_v40 = vpack.c.bf16 %v6384_v39, %v6382_v36  ;;  %v1558_v36 = vcombine.high %v7413_v13, %v7413_v13 }
 0x230   :  { %v7475_v49 = vpop.f32.mrb[45].mxu0  ;;  %v1351_v50 = vadd.f32 %v7429_v38, %v1126_v42  ;;  %v1129_v51 = vadd.f32 %v7402_v47, %v1128_v48  ;;  %v1130_v46 = vpop.f32.mrb[63].mxu1 }
 0x231   :  { %v7481_v52 = vpop.f32.mrb[46].mxu0  ;;  %v7517_v42 = vrot.slane %v1558_v36, %v7408_v12 }
 0x232   :  { %v7483_v53 = vpop.f32.mrb[47].mxu0  ;;  %v1354_v55 = vadd.f32 %v7434_v45, %v1129_v51  ;;  %6389 = vtanh.f32 %v1351_v50 }
 0x234   :  { %6391 = vtanh.f32 %v1354_v55  ;;  %v6386_v58 = vpop.eup %6385 }
 0x235   :  { %v1133_v59 = vpop.f32.mrb[64].mxu1 }
 0x236   :  { %v6388_v27 = vpop.eup %6387  ;;  %v1134_v62 = vadd.f32 %v7402_v47, %v1133_v59  ;;  %v1135_v63 = vpop.f32.mrb[65].mxu1 }
 0x237   :  { %v7487_v0 = vpop.f32.mrb[48].mxu0  ;;  %v1136_v38 = vpop.f32.mrb[66].mxu1  ;;  %v7491_v2 = vpack.c.bf16 %v6388_v27, %v6386_v58 }
 0x238   :  { %v7489_v1 = vpop.f32.mrb[49].mxu0  ;;  %v1137_v3 = vadd.f32 %v7402_v47, %v1136_v38  ;;  %v1359_v5 = vadd.f32 %v7439_v56, %v1134_v62  ;;  %v1138_v45 = vpop.f32.mrb[67].mxu1 }
 0x239   :  { %v7495_v8 = vpop.f32.mrb[50].mxu0 }
 0x23a   :  { %v7497_v9 = vpop.f32.mrb[51].mxu0  ;;  %v1362_v10 = vadd.f32 %v7446_v61, %v1137_v3  ;;  %6393 = vtanh.f32 %v1359_v5 }
 0x23c   :  { %6395 = vtanh.f32 %v1362_v10  ;;  %v6390_v16 = vpop.eup %6389 }
 0x23d   :  { %v1141_v17 = vpop.f32.mrb[68].mxu1 }
 0x23e   :  { %v6392_v18 = vpop.eup %6391  ;;  %v1142_v19 = vadd.f32 %v7402_v47, %v1141_v17  ;;  %v1143_v22 = vpop.f32.mrb[69].mxu1 }
 0x23f   :  { %v7501_v23 = vpop.f32.mrb[52].mxu0  ;;  %v1144_v28 = vpop.f32.mrb[70].mxu1  ;;  %v7503_v31 = vpack.c.bf16 %v6392_v18, %v6390_v16 }
 0x240   :  { %v7505_v56 = vpop.f32.mrb[53].mxu0  ;;  %v1367_v32 = vadd.f32 %v7437_v54, %v1142_v19  ;;  %v1145_v33 = vadd.f32 %v7402_v47, %v1144_v28  ;;  %v1146_v61 = vpop.f32.mrb[71].mxu1 }
 0x241   :  { %v7509_v35 = vpop.f32.mrb[54].mxu0 }
 0x242   :  { %v7513_v37 = vpop.f32.mrb[55].mxu0  ;;  %v1370_v39 = vadd.f32 %v7444_v60, %v1145_v33  ;;  %6397 = vtanh.f32 %v1367_v32 }
 0x244   :  { %6399 = vtanh.f32 %v1370_v39  ;;  %v6394_v43 = vpop.eup %6393 }
 0x245   :  { %v1149_v48 = vpop.f32.mrb[72].mxu1 }
 0x246   :  { %v6396_v54 = vpop.eup %6395  ;;  %v1150_v50 = vadd.f32 %v7402_v47, %v1149_v48  ;;  %v1151_v51 = vpop.f32.mrb[73].mxu1 }
 0x247   :  { %v7520_v46 = vpop.f32.mrb[56].mxu0  ;;  %v1152_v55 = vpop.f32.mrb[74].mxu1  ;;  %v7522_v58 = vpack.c.bf16 %v6396_v54, %v6394_v43 }
 0x248   :  { %v7524_v13 = vpop.f32.mrb[57].mxu0  ;;  %v1153_v60 = vadd.f32 %v7402_v47, %v1152_v55  ;;  %v1375_v12 = vadd.f32 %v7451_v6, %v1150_v50  ;;  %v1154_v59 = vpop.f32.mrb[75].mxu1 }
 0x249   :  { %v7528_v27 = vpop.f32.mrb[58].mxu0  ;;  %5210 = vmatprep.subr.bf16.mxu0 %v7522_v58 }
 0x24a   :  { %v7531_v62 = vpop.f32.mrb[59].mxu0  ;;  %v1378_v63 = vadd.f32 %v7458_v15, %v1153_v60  ;;  %5211 = vmatpush3.bf16.msra.mxu0 %v7424_v24  ;;  %6401 = vtanh.f32 %v1375_v12 }
 0x24c   :  { %6403 = vtanh.f32 %v1378_v63  ;;  %v6398_v38 = vpop.eup %6397 }
 0x24d   :  { %v1157_v3 = vpop.f32.mrb[76].mxu1 }
 0x24e   :  { %v6400_v5 = vpop.eup %6399  ;;  %v1158_v45 = vadd.f32 %v7402_v47, %v1157_v3  ;;  %v1159_v10 = vpop.f32.mrb[77].mxu1 }
 0x24f   :  { %v7536_v6 = vpop.f32.mrb[60].mxu0  ;;  %v1160_v16 = vpop.f32.mrb[78].mxu1  ;;  %v7538_v17 = vpack.c.bf16 %v6400_v5, %v6398_v38 }
 0x250   :  { %v7540_v18 = vpop.f32.mrb[61].mxu0  ;;  %v1383_v19 = vadd.f32 %v7449_v4, %v1158_v45  ;;  %v1161_v15 = vadd.f32 %v7402_v47, %v1160_v16  ;;  %v1162_v22 = vpop.f32.mrb[79].mxu1 }
 0x251   :  { %v7544_v28 = vpop.f32.mrb[62].mxu0  ;;  %5212 = vmatprep.subr.bf16.mxu0 %v7538_v17 }
 0x252   :  { %v7547_v32 = vpop.f32.mrb[63].mxu0  ;;  %v1386_v33 = vadd.f32 %v7456_v11, %v1161_v15  ;;  %5213 = vmatpush3.bf16.msra.mxu0 %v7431_v41  ;;  %6405 = vtanh.f32 %v1383_v19 }
 0x254   :  { %6407 = vtanh.f32 %v1386_v33  ;;  %v6402_v61 = vpop.eup %6401 }
 0x255   :  { %v1165_v36 = vpop.f32.mrb[80].mxu1 }
 0x256   :  { %v6404_v39 = vpop.eup %6403  ;;  %v1166_v4 = vadd.f32 %v7402_v47, %v1165_v36  ;;  %v1167_v43 = vpop.f32.mrb[81].mxu1 }
 0x257   :  { %v1168_v48 = vpop.f32.mrb[82].mxu1  ;;  %v7552_v54 = vpack.c.bf16 %v6404_v39, %v6402_v61 }
 0x258   :  { %v1169_v50 = vadd.f32 %v7402_v47, %v1168_v48  ;;  %v1391_v51 = vadd.f32 %v7463_v20, %v1166_v4  ;;  %v1170_v55 = vpop.f32.mrb[83].mxu1 }
 0x259   :  { %5214 = vmatprep.subr.bf16.mxu0 %v7552_v54 }
 0x25a   :  { %v1394_v11 = vadd.f32 %v7470_v34, %v1169_v50  ;;  %5215 = vmatpush3.bf16.msra.mxu0 %v7441_v57  ;;  %6409 = vtanh.f32 %v1391_v51 }
 0x25c   :  { %6411 = vtanh.f32 %v1394_v11  ;;  %v6406_v60 = vpop.eup %6405 }
 0x25d   :  { %v1173_v12 = vpop.f32.mrb[84].mxu1 }
 0x25e   :  { %v6408_v59 = vpop.eup %6407  ;;  %v1174_v63 = vadd.f32 %v7402_v47, %v1173_v12  ;;  %v1175_v38 = vpop.f32.mrb[85].mxu1 }
 0x25f   :  { %v1176_v3 = vpop.f32.mrb[86].mxu1  ;;  %v7560_v5 = vpack.c.bf16 %v6408_v59, %v6406_v60 }
 0x260   :  { %v1399_v20 = vadd.f32 %v7461_v25, %v1174_v63  ;;  %v1177_v45 = vadd.f32 %v7402_v47, %v1176_v3  ;;  %v1178_v10 = vpop.f32.mrb[87].mxu1 }
 0x261   :  { %5216 = vmatprep.subr.bf16.mxu0 %v7560_v5 }
 0x262   :  { %v1402_v34 = vadd.f32 %v7468_v30, %v1177_v45  ;;  %5217 = vmatpush3.bf16.msra.mxu0 %v7453_v7  ;;  %6413 = vtanh.f32 %v1399_v20 }
 0x264   :  { %6415 = vtanh.f32 %v1402_v34  ;;  %v6410_v16 = vpop.eup %6409 }
 0x265   :  { %v1181_v19 = vpop.f32.mrb[88].mxu1 }
 0x266   :  { %v6412_v15 = vpop.eup %6411  ;;  %v1182_v22 = vadd.f32 %v7402_v47, %v1181_v19  ;;  %v1183_v33 = vpop.f32.mrb[89].mxu1 }
 0x267   :  { %v1184_v61 = vpop.f32.mrb[90].mxu1  ;;  %v7568_v36 = vpack.c.bf16 %v6412_v15, %v6410_v16 }
 0x268   :  { %v1185_v25 = vadd.f32 %v7402_v47, %v1184_v61  ;;  %v1407_v39 = vadd.f32 %v7475_v49, %v1182_v22  ;;  %v1186_v4 = vpop.f32.mrb[91].mxu1 }
 0x269   :  { %5218 = vmatprep.subr.bf16.mxu0 %v7568_v36 }
 0x26a   :  { %v1410_v30 = vadd.f32 %v7483_v53, %v1185_v25  ;;  %5219 = vmatpush3.bf16.msra.mxu0 %v7465_v29  ;;  %6417 = vtanh.f32 %v1407_v39 }
 0x26c   :  { %6419 = vtanh.f32 %v1410_v30  ;;  %v6414_v43 = vpop.eup %6413 }
 0x26d   :  { %v1189_v48 = vpop.f32.mrb[92].mxu1 }
 0x26e   :  { %v6416_v50 = vpop.eup %6415  ;;  %v1190_v51 = vadd.f32 %v7402_v47, %v1189_v48  ;;  %v1191_v55 = vpop.f32.mrb[93].mxu1  ;;  %v6962_v48 = vmov 0.0  }
 0x26f   :  { %v1192_v11 = vpop.f32.mrb[94].mxu1  ;;  %v7576_v60 = vpack.c.bf16 %v6416_v50, %v6414_v43 }
 0x270   :  { %v1415_v49 = vadd.f32 %v7473_v44, %v1190_v51  ;;  %v1193_v12 = vadd.f32 %v7402_v47, %v1192_v11  ;;  %v1194_v59 = vpop.f32.mrb[95].mxu1 }
 0x271   :  { %5220 = vmatprep.subr.bf16.mxu0 %v7576_v60 }
 0x272   :  { %v1418_v53 = vadd.f32 %v7481_v52, %v1193_v12  ;;  %5221 = vmatpush3.bf16.msra.mxu0 %v7477_v40  ;;  %6421 = vtanh.f32 %v1415_v49 }
 0x274   :  { %6423 = vtanh.f32 %v1418_v53  ;;  %v6418_v63 = vpop.eup %6417 }
 0x275   :  { %v1197_v38 = vpop.f32.mrb[96].mxu1 }
 0x276   :  { %v6420_v3 = vpop.eup %6419  ;;  %v1198_v20 = vadd.f32 %v7402_v47, %v1197_v38  ;;  %v1199_v45 = vpop.f32.mrb[97].mxu1 }
 0x277   :  { %v1200_v10 = vpop.f32.mrb[98].mxu1  ;;  %v7584_v34 = vpack.c.bf16 %v6420_v3, %v6418_v63 }
 0x278   :  { %v1201_v44 = vadd.f32 %v7402_v47, %v1200_v10  ;;  %v1423_v16 = vadd.f32 %v7489_v1, %v1198_v20  ;;  %v1202_v19 = vpop.f32.mrb[99].mxu1 }
 0x279   :  { %5222 = vmatprep.subr.bf16.mxu0 %v7584_v34 }
 0x27a   :  { %v1426_v52 = vadd.f32 %v7497_v9, %v1201_v44  ;;  %5223 = vmatpush3.bf16.msra.mxu0 %v7491_v2  ;;  %6425 = vtanh.f32 %v1423_v16 }
 0x27c   :  { %6427 = vtanh.f32 %v1426_v52  ;;  %v6422_v15 = vpop.eup %6421 }
 0x27d   :  { %v1205_v22 = vpop.f32.mrb[100].mxu1 }
 0x27e   :  { %v6424_v33 = vpop.eup %6423  ;;  %v1206_v61 = vadd.f32 %v7402_v47, %v1205_v22  ;;  %v1207_v25 = vpop.f32.mrb[101].mxu1 }
 0x27f   :  { %v1208_v39 = vpop.f32.mrb[102].mxu1  ;;  %v7592_v4 = vpack.c.bf16 %v6424_v33, %v6422_v15 }
 0x280   :  { %v1431_v1 = vadd.f32 %v7487_v0, %v1206_v61  ;;  %v1209_v30 = vadd.f32 %v7402_v47, %v1208_v39  ;;  %v1210_v43 = vpop.f32.mrb[103].mxu1 }
 0x281   :  { %5224 = vmatprep.subr.bf16.mxu0 %v7592_v4 }
 0x282   :  { %v1434_v9 = vadd.f32 %v7495_v8, %v1209_v30  ;;  %5225 = vmatpush3.bf16.msra.mxu0 %v7503_v31  ;;  %6429 = vtanh.f32 %v1431_v1 }
 0x283   :  { %5661 = vmatprep.subr.bf16.mxu0 %v6962_v48 }
 0x284   :  { %6431 = vtanh.f32 %v1434_v9  ;;  %v6426_v50 = vpop.eup %6425 }
 0x285   :  { %v1213_v51 = vpop.f32.mrb[104].mxu1  ;;  %1610 = vmatmul.mubr.bf16.vlgmr.msra.gmra.mrb[64].mxu0 %v7417_v14 }
 0x286   :  { %v6428_v55 = vpop.eup %6427  ;;  %v1214_v0 = vadd.f32 %v7402_v47, %v1213_v51  ;;  %v1215_v11 = vpop.f32.mrb[105].mxu1  ;;  %5677 = vmatprep.mubr.msk.bf16.mxu0 %vm6963_vm1, %v6962_v48 }
 0x287   :  { %v1216_v8 = vpop.f32.mrb[106].mxu1  ;;  %v7604_v49 = vpack.c.bf16 %v6428_v55, %v6426_v50 }
 0x288   :  { %v1217_v12 = vadd.f32 %v7402_v47, %v1216_v8  ;;  %v1439_v59 = vadd.f32 %v7505_v56, %v1214_v0  ;;  %v1218_v53 = vpop.f32.mrb[107].mxu1 }
 0x289   :  { %5662 = vmatpush3.bf16.msra.mxu0 %v7604_v49 }
 0x28a   :  { %v1442_v63 = vadd.f32 %v7513_v37, %v1217_v12  ;;  %5663 = vmatprep.subr.bf16.mxu0 %v6962_v48  ;;  %6433 = vtanh.f32 %v1439_v59 }
 0x28c   :  { %6435 = vtanh.f32 %v1442_v63  ;;  %v6430_v38 = vpop.eup %6429 }
 0x28d   :  { %v1221_v3 = vpop.f32.mrb[108].mxu1 }
 0x28e   :  { %v6432_v20 = vpop.eup %6431  ;;  %v1222_v45 = vadd.f32 %v7402_v47, %v1221_v3  ;;  %v1223_v10 = vpop.f32.mrb[109].mxu1 }
 0x28f   :  { %v1224_v44 = vpop.f32.mrb[110].mxu1  ;;  %v7612_v16 = vpack.c.bf16 %v6432_v20, %v6430_v38 }
 0x290   :  { %v1447_v56 = vadd.f32 %v7501_v23, %v1222_v45  ;;  %v1225_v19 = vadd.f32 %v7402_v47, %v1224_v44  ;;  %v1226_v52 = vpop.f32.mrb[111].mxu1 }
 0x291   :  { %5664 = vmatpush3.bf16.msra.mxu0 %v7612_v16 }
 0x292   :  { %v1450_v37 = vadd.f32 %v7509_v35, %v1225_v19  ;;  %5665 = vmatprep.subr.bf16.mxu0 %v6962_v48  ;;  %6437 = vtanh.f32 %v1447_v56 }
 0x294   :  { %6439 = vtanh.f32 %v1450_v37  ;;  %v6434_v15 = vpop.eup %6433 }
 0x295   :  { %v1229_v22 = vpop.f32.mrb[112].mxu1 }
 0x296   :  { %v6436_v33 = vpop.eup %6435  ;;  %v1230_v61 = vadd.f32 %v7402_v47, %v1229_v22  ;;  %v1231_v25 = vpop.f32.mrb[113].mxu1 }
 0x297   :  { %v1232_v39 = vpop.f32.mrb[114].mxu1  ;;  %v7620_v1 = vpack.c.bf16 %v6436_v33, %v6434_v15 }
 0x298   :  { %v1233_v23 = vadd.f32 %v7402_v47, %v1232_v39  ;;  %v1455_v30 = vadd.f32 %v7524_v13, %v1230_v61  ;;  %v1234_v43 = vpop.f32.mrb[115].mxu1 }
 0x299   :  { %5666 = vmatpush3.bf16.msra.mxu0 %v7620_v1 }
 0x29a   :  { %v1458_v35 = vadd.f32 %v7531_v62, %v1233_v23  ;;  %5667 = vmatprep.subr.bf16.mxu0 %v6962_v48  ;;  %6441 = vtanh.f32 %v1455_v30 }
 0x29c   :  { %6443 = vtanh.f32 %v1458_v35  ;;  %v6438_v9 = vpop.eup %6437 }
 0x29d   :  { %v1237_v50 = vpop.f32.mrb[116].mxu1 }
 0x29e   :  { %v6440_v51 = vpop.eup %6439  ;;  %v1238_v55 = vadd.f32 %v7402_v47, %v1237_v50  ;;  %v1239_v0 = vpop.f32.mrb[117].mxu1  ;;  %v1658_v50 = vld [vmem:[%s9205_s5 + $0x8] sm:$0xff] }
 0x29f   :  { %v1240_v11 = vpop.f32.mrb[118].mxu1  ;;  %v7628_v8 = vpack.c.bf16 %v6440_v51, %v6438_v9  ;;  %v1659_v51 = vld [vmem:[%s9205_s5 + $0x10] sm:$0xff]  ;;  %v1660_v0 = vld [vmem:[%s9205_s5 + $0x18] sm:$0xff] }
 0x2a0   :  { %v1463_v13 = vadd.f32 %v7520_v46, %v1238_v55  ;;  %v1241_v12 = vadd.f32 %v7402_v47, %v1240_v11  ;;  %v1242_v59 = vpop.f32.mrb[119].mxu1  ;;  %v6172_v11 = vpack.c.bf16 %v1660_v0, %v1659_v51 }
 0x2a1   :  { %5668 = vmatpush3.bf16.msra.mxu0 %v7628_v8 }
 0x2a2   :  { %v1466_v62 = vadd.f32 %v7528_v27, %v1241_v12  ;;  %5669 = vmatprep.subr.bf16.mxu0 %v6962_v48  ;;  %6445 = vtanh.f32 %v1463_v13  ;;  %v6355_v13 = vld [vmem:[%s9200_s2 + $0x10] sm:$0xff]  }
 0x2a4   :  { %6447 = vtanh.f32 %v1466_v62  ;;  %v6442_v53 = vpop.eup %6441 }
 0x2a5   :  { %v1245_v63 = vpop.f32.mrb[120].mxu1 }
 0x2a6   :  { %v6444_v38 = vpop.eup %6443  ;;  %v1246_v3 = vadd.f32 %v7402_v47, %v1245_v63  ;;  %v1247_v20 = vpop.f32.mrb[121].mxu1 }
 0x2a7   :  { %v1248_v45 = vpop.f32.mrb[122].mxu1  ;;  %v7636_v10 = vpack.c.bf16 %v6444_v38, %v6442_v53 }
 0x2a8   :  { %v1249_v46 = vadd.f32 %v7402_v47, %v1248_v45  ;;  %v1471_v44 = vadd.f32 %v7540_v18, %v1246_v3  ;;  %v1250_v56 = vpop.f32.mrb[123].mxu1  ;;  %v6356_v45 = vld [vmem:[%s9200_s2 + $0x18] sm:$0xff]  }
 0x2a9   :  { %5670 = vmatpush3.bf16.msra.mxu0 %v7636_v10 }
 0x2aa   :  { %v1474_v27 = vadd.f32 %v7547_v32, %v1249_v46  ;;  %5671 = vmatprep.subr.bf16.mxu0 %v6962_v48  ;;  %6449 = vtanh.f32 %v1471_v44 }
 0x2ac   :  { %6451 = vtanh.f32 %v1474_v27  ;;  %v6446_v19 = vpop.eup %6445 }
 0x2ad   :  { %v1253_v52 = vpop.f32.mrb[124].mxu1 }
 0x2ae   :  { %v6448_v37 = vpop.eup %6447  ;;  %v1254_v15 = vadd.f32 %v7402_v47, %v1253_v52  ;;  %v1255_v22 = vpop.f32.mrb[125].mxu1 }
 0x2af   :  { %v1256_v33 = vpop.f32.mrb[126].mxu1  ;;  %v7644_v61 = vpack.c.bf16 %v6448_v37, %v6446_v19 }
 0x2b0   :  { %v1479_v18 = vadd.f32 %v7536_v6, %v1254_v15  ;;  %v1257_v25 = vadd.f32 %v7402_v47, %v1256_v33  ;;  %v1258_v39 = vpop.f32.mrb[127].mxu1  ;;  %v6964_v47 = vmov 0.0|0.0  }
 0x2b1   :  { %5672 = vmatpush3.bf16.msra.mxu0 %v7644_v61 }
 0x2b2   :  { %v1482_v32 = vadd.f32 %v7544_v28, %v1257_v25  ;;  %5673 = vmatprep.subr.bf16.mxu0 %v6962_v48  ;;  %6453 = vtanh.f32 %v1479_v18  ;;  %v1657_v28 = vld [vmem:[%s9205_s5] sm:$0xff] }
 0x2b3   :  { %v6169_v55 = vpack.c.bf16 %v1658_v50, %v1657_v28 }
 0x2b4   :  { %6455 = vtanh.f32 %v1482_v32  ;;  %v6450_v23 = vpop.eup %6449 }
 0x2b6   :  { %v6452_v30 = vpop.eup %6451 }
 0x2b7   :  { %v1555_v43 = vpack.c.bf16 %v6452_v30, %v6450_v23 }
 0x2b9   :  { %5674 = vmatpush3.bf16.msra.mxu0 %v1555_v43 }
 0x2ba   :  { %5675 = vmatprep.subr.bf16.mxu0 %v6962_v48 }
 0x2bc   :  { %v6454_v35 = vpop.eup %6453 }
 0x2be   :  { %v6456_v9 = vpop.eup %6455 }
 0x2bf   :  { %v1556_v6 = vpack.c.bf16 %v6456_v9, %v6454_v35 }
 0x2c1   :  { %5676 = vmatpush3.bf16.msra.mxu0 %v1556_v6 }
 0x2c2   :  { %6168 = vmatprep.subr.bf16.mxu0 %v6964_v47 }
 0x2c4   :  { %5678 = vmatmul.mubr.bf16.vlgmr.msra.gmra.mrb[68].mxu0 %v7517_v42 }
 0x2c5   :  { %5689 = vmatprep.mubr.msk.f32.mxu0 %vm6963_vm1, %v6962_v48  ;;  %6170 = vmatpush3.bf16.msra.mxu0 %v6169_v55 }
 0x2c6   :  { %6171 = vmatprep.subr.bf16.mxu0 %v6964_v47 }
 0x2c9   :  { %6173 = vmatpush3.bf16.msra.mxu0 %v6172_v11 }
 0x2ca   :  { %5692 = vmatprep.subr.bf16.mxu0 %v6355_v13 }
 0x358   :  { %v5226_v12 = vpop.f32.mrb[64].mxu0 }
 0x359   :  { %v5227_v59 = vpop.f32.mrb[65].mxu0 }
 0x35a   :  { %v5228_v62 = vadd.f32 %v5227_v59, %v5226_v12  ;;  %v5229_v53 = vpop.f32.mrb[66].mxu0 }
 0x35b   :  { %v5230_v63 = vpop.f32.mrb[67].mxu0 }
 0x397   :  { %v1651_v38 = vpop.f32.mrb[68].mxu0 }
 0x398   :  { %v1652_v3 = vadd.f32 %v5228_v62, %v1651_v38  ;;  %v5679_v20 = vpop.f32.mrb[69].mxu0 }
 0x399   :  { %v1654_v46 = vpop.f32.mrb[70].mxu0 }
 0x39a   :  { %v5680_v44 = vpop.f32.mrb[71].mxu0  ;;  %5690 = vmatmul.mubr.msk.f32.vlgmr.msra.gmra.mrb[72].mxu0 %vm322_vm0, %v1652_v3  ;;  %v6747_v46 = vld [vmem:[%s9202_s0 + $0x1c] ss:$12 sps:$4 sm:$0xff]  }
 0x39b   :  { %5693 = vmatpush3.bf16.msra.mxu0 %v6355_v13  ;;  %5696 = vmatprep.mubr.msk.bf16.mxu0 %vm322_vm0, %v7424_v24  ;;  %v6745_v24 = vld [vmem:[%s9202_s0 + $0x8] ss:$12 sps:$4 sm:$0xff]  }
 0x39c   :  { %5694 = vmatprep.subr.bf16.mxu0 %v6356_v45 }
 0x39f   :  { %5695 = vmatpush3.bf16.msra.mxu0 %v6356_v45  ;;  %v6746_v45 = vld [vmem:[%s9202_s0] ss:$12 sps:$4 sm:$0xff]  }
 0x3a2   :  { %5697 = vmatmul.mubr.msk.bf16.vlgmr.msra.gmra.mrb[76].mxu0 %vm322_vm0, %v7431_v41 }
 0x3a3   :  { %5700 = vmatprep.mubr.msk.bf16.mxu0 %vm322_vm0, %v7441_v57 }
 0x3aa   :  { %5701 = vmatmul.mubr.msk.bf16.gmra.mrb[80].mxu0 %vm322_vm0, %v7453_v7 }
 0x3ab   :  { %5704 = vmatprep.mubr.msk.bf16.mxu0 %vm322_vm0, %v7465_v29 }
 0x3b2   :  { %5705 = vmatmul.mubr.msk.bf16.gmra.mrb[84].mxu0 %vm322_vm0, %v7477_v40 }
 0x3b3   :  { %5708 = vmatprep.mubr.msk.bf16.mxu0 %vm322_vm0, %v7491_v2 }
 0x3ba   :  { %5709 = vmatmul.mubr.msk.bf16.gmra.mrb[88].mxu0 %vm322_vm0, %v7503_v31 }
 0x3bb   :  { %5712 = vmatprep.mubr.msk.bf16.mxu0 %vm322_vm0, %v7522_v58 }
 0x3c2   :  { %5713 = vmatmul.mubr.msk.bf16.gmra.mrb[92].mxu0 %vm322_vm0, %v7538_v17 }
 0x3c3   :  { %5716 = vmatprep.mubr.msk.bf16.mxu0 %vm322_vm0, %v7552_v54 }
 0x3ca   :  { %5717 = vmatmul.mubr.msk.bf16.gmra.mrb[96].mxu0 %vm322_vm0, %v7560_v5 }
 0x3cb   :  { %5720 = vmatprep.mubr.msk.bf16.mxu0 %vm322_vm0, %v7568_v36 }
 0x3d2   :  { %5721 = vmatmul.mubr.msk.bf16.gmra.mrb[100].mxu0 %vm322_vm0, %v7576_v60 }
 0x3d3   :  { %5724 = vmatprep.mubr.msk.bf16.mxu0 %vm322_vm0, %v7584_v34 }
 0x3da   :  { %5725 = vmatmul.mubr.msk.bf16.gmra.mrb[104].mxu0 %vm322_vm0, %v7592_v4 }
 0x3db   :  { %5728 = vmatprep.mubr.msk.bf16.mxu0 %vm322_vm0, %v7604_v49 }
 0x3e2   :  { %5729 = vmatmul.mubr.msk.bf16.gmra.mrb[108].mxu0 %vm322_vm0, %v7612_v16 }
 0x3e3   :  { %5732 = vmatprep.mubr.msk.bf16.mxu0 %vm322_vm0, %v7620_v1 }
 0x3ea   :  { %5733 = vmatmul.mubr.msk.bf16.gmra.mrb[112].mxu0 %vm322_vm0, %v7628_v8 }
 0x3eb   :  { %5736 = vmatprep.mubr.msk.bf16.mxu0 %vm322_vm0, %v7636_v10 }
 0x3f2   :  { %5737 = vmatmul.mubr.msk.bf16.gmra.mrb[116].mxu0 %vm322_vm0, %v7644_v61 }
 0x3f3   :  { %5740 = vmatprep.mubr.msk.bf16.mxu0 %vm322_vm0, %v1555_v43 }
 0x3fa   :  { %5741 = vmatmul.mubr.msk.bf16.gmra.mrb[120].mxu0 %vm322_vm0, %v1556_v6 }
 0x3fb   :  { %5760 = vmatprep.mubr.bf16.mxu0 %v6745_v24 }
 0x475   :  { %v5698_v41 = vpop.f32.mrb[76].mxu0 }
 0x476   :  { %v1858_v57 = vpop.f32.mrb[77].mxu0 }
 0x477   :  { %v5699_v7 = vpop.f32.mrb[78].mxu0 }
 0x478   :  { %v2050_v29 = vpack.c.bf16 %v5699_v7, %v5698_v41  ;;  %v1861_v40 = vpop.f32.mrb[79].mxu0 }
 0x479   :  { %v2049_v2 = vpack.c.bf16 %v1861_v40, %v1858_v57  ;;  %v6748_v40 = vld [vmem:[%s9202_s0 + $0x18] ss:$12 sps:$4 sm:$0xff]  }
 0x47b   :  { %2082 = vmatpush1.bf16.msra.mxu1 %v2049_v2  ;;  %v6749_v2 = vld [vmem:[%s9202_s0 + $0x34] ss:$12 sps:$4 sm:$0xff]  }
 0x47c   :  { %2083 = vmatprep.subr.bf16.mxu1 %v6960_v26 }
 0x47d   :  { %v5702_v31 = vpop.f32.mrb[80].mxu0 }
 0x47e   :  { %v1874_v58 = vpop.f32.mrb[81].mxu0 }
 0x47f   :  { %v5703_v17 = vpop.f32.mrb[82].mxu0  ;;  %2084 = vmatpush1.bf16.msra.mxu1 %v2050_v29 }
 0x480   :  { %v2052_v54 = vpack.c.bf16 %v5703_v17, %v5702_v31  ;;  %v1877_v5 = vpop.f32.mrb[83].mxu0  ;;  %2085 = vmatprep.subr.bf16.mxu1 %v6960_v26 }
 0x481   :  { %v2051_v36 = vpack.c.bf16 %v1877_v5, %v1874_v58 }
 0x483   :  { %2086 = vmatpush1.bf16.msra.mxu1 %v2051_v36 }
 0x484   :  { %2087 = vmatprep.subr.bf16.mxu1 %v6960_v26 }
 0x485   :  { %v5706_v60 = vpop.f32.mrb[84].mxu0 }
 0x486   :  { %v1890_v34 = vpop.f32.mrb[85].mxu0 }
 0x487   :  { %v5707_v4 = vpop.f32.mrb[86].mxu0  ;;  %2088 = vmatpush1.bf16.msra.mxu1 %v2052_v54 }
 0x488   :  { %v2054_v49 = vpack.c.bf16 %v5707_v4, %v5706_v60  ;;  %v1893_v16 = vpop.f32.mrb[87].mxu0  ;;  %2089 = vmatprep.subr.bf16.mxu1 %v6960_v26  ;;  %v6750_v60 = vld [vmem:[%s9202_s0 + $0x30] ss:$12 sps:$4 sm:$0xff]  }
 0x489   :  { %v2053_v1 = vpack.c.bf16 %v1893_v16, %v1890_v34  ;;  %v6751_v34 = vld [vmem:[%s9202_s0 + $0x4c] ss:$12 sps:$4 sm:$0xff]  }
 0x48b   :  { %2090 = vmatpush1.bf16.msra.mxu1 %v2053_v1 }
 0x48c   :  { %2091 = vmatprep.subr.bf16.mxu1 %v6960_v26 }
 0x48d   :  { %v5710_v8 = vpop.f32.mrb[88].mxu0 }
 0x48e   :  { %v1906_v10 = vpop.f32.mrb[89].mxu0 }
 0x48f   :  { %v5711_v56 = vpop.f32.mrb[90].mxu0  ;;  %2092 = vmatpush1.bf16.msra.mxu1 %v2054_v49 }
 0x490   :  { %v2056_v27 = vpack.c.bf16 %v5711_v56, %v5710_v8  ;;  %v1909_v19 = vpop.f32.mrb[91].mxu0  ;;  %2093 = vmatprep.subr.bf16.mxu1 %v6960_v26  ;;  %v6752_v56 = vld [vmem:[%s9202_s0 + $0x48] ss:$12 sps:$4 sm:$0xff]  }
 0x491   :  { %v2055_v52 = vpack.c.bf16 %v1909_v19, %v1906_v10  ;;  %v6754_v19 = vld [vmem:[%s9202_s0 + $0x60] ss:$12 sps:$4 sm:$0xff]  }
 0x493   :  { %2094 = vmatpush1.bf16.msra.mxu1 %v2055_v52  ;;  %v6755_v52 = vld [vmem:[%s9202_s0 + $0x20] ss:$12 sps:$4 sm:$0xff]  }
 0x494   :  { %2095 = vmatprep.subr.bf16.mxu1 %v6960_v26 }
 0x495   :  { %v5714_v37 = vpop.f32.mrb[92].mxu0 }
 0x496   :  { %v1922_v15 = vpop.f32.mrb[93].mxu0 }
 0x497   :  { %v5715_v22 = vpop.f32.mrb[94].mxu0  ;;  %2096 = vmatpush1.bf16.msra.mxu1 %v2056_v27  ;;  %v6753_v27 = vld [vmem:[%s9202_s0 + $0x64] ss:$12 sps:$4 sm:$0xff]  }
 0x498   :  { %v2058_v33 = vpack.c.bf16 %v5715_v22, %v5714_v37  ;;  %v1925_v61 = vpop.f32.mrb[95].mxu0  ;;  %2097 = vmatprep.subr.bf16.mxu1 %v6960_v26  ;;  %v6756_v37 = vld [vmem:[%s9202_s0 + $0x7c] ss:$12 sps:$4 sm:$0xff]   ;;  %v6758_v22 = vld [vmem:[%s9202_s0 + $0x78] ss:$12 sps:$4 sm:$0xff]  }
 0x499   :  { %v2057_v18 = vpack.c.bf16 %v1925_v61, %v1922_v15  ;;  %v6757_v15 = vld [vmem:[%s9202_s0 + $0x38] ss:$12 sps:$4 sm:$0xff]   ;;  %v6760_v61 = vld [vmem:[%s9202_s0 + $0x94] ss:$12 sps:$4 sm:$0xff]  }
 0x49b   :  { %2098 = vmatpush1.bf16.msra.mxu1 %v2057_v18  ;;  %v6761_v18 = vld [vmem:[%s9202_s0 + $0x68] ss:$12 sps:$4 sm:$0xff]  }
 0x49c   :  { %2099 = vmatprep.subr.bf16.mxu1 %v6960_v26 }
 0x49d   :  { %v5718_v25 = vpop.f32.mrb[96].mxu0 }
 0x49e   :  { %v1938_v39 = vpop.f32.mrb[97].mxu0 }
 0x49f   :  { %v5719_v32 = vpop.f32.mrb[98].mxu0  ;;  %2100 = vmatpush1.bf16.msra.mxu1 %v2058_v33  ;;  %v6759_v33 = vld [vmem:[%s9202_s0 + $0x50] ss:$12 sps:$4 sm:$0xff]  }
 0x4a0   :  { %v2060_v23 = vpack.c.bf16 %v5719_v32, %v5718_v25  ;;  %v1941_v30 = vpop.f32.mrb[99].mxu0  ;;  %2101 = vmatprep.subr.bf16.mxu1 %v6960_v26  ;;  %v6762_v25 = vld [vmem:[%s9202_s0 + $0x90] ss:$12 sps:$4 sm:$0xff]   ;;  %v6764_v32 = vld [vmem:[%s9202_s0 + $0xac] ss:$12 sps:$4 sm:$0xff]  }
 0x4a1   :  { %v2059_v43 = vpack.c.bf16 %v1941_v30, %v1938_v39  ;;  %v6763_v39 = vld [vmem:[%s9202_s0 + $0x80] ss:$12 sps:$4 sm:$0xff]   ;;  %v6766_v30 = vld [vmem:[%s9202_s0 + $0xa8] ss:$12 sps:$4 sm:$0xff]  }
 0x4a3   :  { %2102 = vmatpush1.bf16.msra.mxu1 %v2059_v43  ;;  %v6767_v43 = vld [vmem:[%s9202_s0 + $0xb0] ss:$12 sps:$4 sm:$0xff]  }
 0x4a4   :  { %2103 = vmatprep.subr.bf16.mxu1 %v6960_v26 }
 0x4a5   :  { %v5722_v35 = vpop.f32.mrb[100].mxu0 }
 0x4a6   :  { %v1954_v9 = vpop.f32.mrb[101].mxu0 }
 0x4a7   :  { %v5723_v6 = vpop.f32.mrb[102].mxu0  ;;  %2104 = vmatpush1.bf16.msra.mxu1 %v2060_v23  ;;  %v6765_v23 = vld [vmem:[%s9202_s0 + $0x98] ss:$12 sps:$4 sm:$0xff]  }
 0x4a8   :  { %v2062_v28 = vpack.c.bf16 %v5723_v6, %v5722_v35  ;;  %v1957_v50 = vpop.f32.mrb[103].mxu0  ;;  %2105 = vmatprep.subr.bf16.mxu1 %v6960_v26  ;;  %v6768_v35 = vld [vmem:[%s9202_s0 + $0xc4] ss:$12 sps:$4 sm:$0xff]   ;;  %v6770_v6 = vld [vmem:[%s9202_s0 + $0xc0] ss:$12 sps:$4 sm:$0xff]  }
 0x4a9   :  { %v2061_v51 = vpack.c.bf16 %v1957_v50, %v1954_v9  ;;  %v6769_v9 = vld [vmem:[%s9202_s0 + $0xc8] ss:$12 sps:$4 sm:$0xff]  }
 0x4aa   :  { %v6772_v50 = vld [vmem:[%s9202_s0 + $0xdc] ss:$12 sps:$4 sm:$0xff]  }
 0x4ab   :  { %2106 = vmatpush1.bf16.msra.mxu1 %v2061_v51  ;;  %v6773_v51 = vld [vmem:[%s9202_s0 + $0xf8] ss:$12 sps:$4 sm:$0xff]  }
 0x4ac   :  { %2107 = vmatprep.subr.bf16.mxu1 %v6960_v26 }
 0x4ad   :  { %v5726_v55 = vpop.f32.mrb[104].mxu0 }
 0x4ae   :  { %v1970_v0 = vpop.f32.mrb[105].mxu0 }
 0x4af   :  { %v5727_v11 = vpop.f32.mrb[106].mxu0  ;;  %2108 = vmatpush1.bf16.msra.mxu1 %v2062_v28  ;;  %v6771_v28 = vld [vmem:[%s9202_s0 + $0xe0] ss:$12 sps:$4 sm:$0xff]  }
 0x4b0   :  { %v2064_v13 = vpack.c.bf16 %v5727_v11, %v5726_v55  ;;  %v1973_v12 = vpop.f32.mrb[107].mxu0  ;;  %2109 = vmatprep.subr.bf16.mxu1 %v6960_v26  ;;  %v6774_v55 = vld [vmem:[%s9202_s0 + $0xd8] ss:$12 sps:$4 sm:$0xff]   ;;  %v6776_v11 = vld [vmem:[%s9202_s0 + $0x110] ss:$12 sps:$4 sm:$0xff]  }
 0x4b1   :  { %v2063_v59 = vpack.c.bf16 %v1973_v12, %v1970_v0  ;;  %v6775_v0 = vld [vmem:[%s9202_s0 + $0xf4] ss:$12 sps:$4 sm:$0xff]   ;;  %v6778_v12 = vld [vmem:[%s9202_s0 + $0xf0] ss:$12 sps:$4 sm:$0xff]  }
 0x4b3   :  { %2110 = vmatpush1.bf16.msra.mxu1 %v2063_v59  ;;  %v6779_v59 = vld [vmem:[%s9202_s0 + $0x10c] ss:$12 sps:$4 sm:$0xff]  }
 0x4b4   :  { %2111 = vmatprep.subr.bf16.mxu1 %v6960_v26 }
 0x4b5   :  { %v5730_v62 = vpop.f32.mrb[108].mxu0 }
 0x4b6   :  { %v1986_v53 = vpop.f32.mrb[109].mxu0 }
 0x4b7   :  { %v5731_v63 = vpop.f32.mrb[110].mxu0  ;;  %2112 = vmatpush1.bf16.msra.mxu1 %v2064_v13  ;;  %v6777_v13 = vld [vmem:[%s9202_s0 + $0x128] ss:$12 sps:$4 sm:$0xff]  }
 0x4b8   :  { %v2066_v38 = vpack.c.bf16 %v5731_v63, %v5730_v62  ;;  %v1989_v3 = vpop.f32.mrb[111].mxu0  ;;  %3108 = vmatprep.subr.bf16.mxu1 %v6960_v26  ;;  %v6780_v62 = vld [vmem:[%s9202_s0 + $0x140] ss:$12 sps:$4 sm:$0xff]   ;;  %v6782_v63 = vld [vmem:[%s9202_s0 + $0x108] ss:$12 sps:$4 sm:$0xff]  }
 0x4b9   :  { %v2065_v20 = vpack.c.bf16 %v1989_v3, %v1986_v53  ;;  %v6781_v53 = vld [vmem:[%s9202_s0 + $0x158] ss:$12 sps:$4 sm:$0xff]   ;;  %v6784_v3 = vld [vmem:[%s9202_s0 + $0x170] ss:$12 sps:$4 sm:$0xff]  }
 0x4ba   :  { %2114 = vmatmul.mubr.bf16.vlgmr.msra.gmra.mrb[128].mxu1 %v6746_v45  ;;  %v6786_v45 = vld [vmem:[%s9202_s0 + $0x120] ss:$12 sps:$4 sm:$0xff]  }
 0x4bb   :  { %5744 = vmatprep.subr.bf16.mxu0 %v2065_v20  ;;  %2121 = vmatprep.mubr.bf16.mxu1 %v6747_v46  ;;  %v6787_v46 = vld [vmem:[%s9202_s0 + $0x13c] ss:$12 sps:$4 sm:$0xff]  }
 0x4bc   :  { %5745 = vmatpush3.bf16.msra.mxu0 %v2065_v20  ;;  %v6785_v20 = vld [vmem:[%s9202_s0 + $0x188] ss:$12 sps:$4 sm:$0xff]  }
 0x4bd   :  { %v5734_v44 = vpop.f32.mrb[112].mxu0  ;;  %5746 = vmatprep.subr.bf16.mxu0 %v2066_v38 }
 0x4be   :  { %v2002_v24 = vpop.f32.mrb[113].mxu0 }
 0x4bf   :  { %v5735_v41 = vpop.f32.mrb[114].mxu0 }
 0x4c0   :  { %v2068_v57 = vpack.c.bf16 %v5735_v41, %v5734_v44  ;;  %v2005_v7 = vpop.f32.mrb[115].mxu0  ;;  %5747 = vmatpush3.bf16.msra.mxu0 %v2066_v38  ;;  %v6783_v38 = vld [vmem:[%s9202_s0 + $0x124] ss:$12 sps:$4 sm:$0xff]   ;;  %v6788_v44 = vld [vmem:[%s9202_s0 + $0x1a0] ss:$12 sps:$4 sm:$0xff]  }
 0x4c1   :  { %v2067_v29 = vpack.c.bf16 %v2005_v7, %v2002_v24  ;;  %v6789_v24 = vld [vmem:[%s9202_s0 + $0x1b8] ss:$12 sps:$4 sm:$0xff]   ;;  %v6792_v7 = vld [vmem:[%s9202_s0 + $0x1d0] ss:$12 sps:$4 sm:$0xff]  }
 0x4c2   :  { %2122 = vmatmul.mubr.bf16.gmra.mrb[132].mxu1 %v6748_v40  ;;  %v6790_v41 = vld [vmem:[%s9202_s0 + $0x138] ss:$12 sps:$4 sm:$0xff]   ;;  %v6794_v40 = vld [vmem:[%s9202_s0 + $0x150] ss:$12 sps:$4 sm:$0xff]  }
 0x4c3   :  { %5748 = vmatprep.subr.bf16.mxu0 %v2067_v29  ;;  %2129 = vmatprep.mubr.bf16.mxu1 %v6749_v2  ;;  %v6795_v2 = vld [vmem:[%s9202_s0 + $0x16c] ss:$12 sps:$4 sm:$0xff]  }
 0x4c4   :  { %5749 = vmatpush3.bf16.msra.mxu0 %v2067_v29  ;;  %v6793_v29 = vld [vmem:[%s9202_s0 + $0x1e8] ss:$12 sps:$4 sm:$0xff]  }
 0x4c5   :  { %v5738_v31 = vpop.f32.mrb[116].mxu0  ;;  %5750 = vmatprep.subr.bf16.mxu0 %v2068_v57 }
 0x4c6   :  { %v2018_v58 = vpop.f32.mrb[117].mxu0 }
 0x4c7   :  { %v5739_v17 = vpop.f32.mrb[118].mxu0 }
 0x4c8   :  { %v2070_v54 = vpack.c.bf16 %v5739_v17, %v5738_v31  ;;  %v2021_v5 = vpop.f32.mrb[119].mxu0  ;;  %5751 = vmatpush3.bf16.msra.mxu0 %v2068_v57  ;;  %v6791_v57 = vld [vmem:[%s9202_s0 + $0x154] ss:$12 sps:$4 sm:$0xff]  }
 0x4c9   :  { %v2069_v36 = vpack.c.bf16 %v2021_v5, %v2018_v58  ;;  %v6796_v31 = vld [vmem:[%s9202_s0 + $0x200] ss:$12 sps:$4 sm:$0xff]   ;;  %v6797_v58 = vld [vmem:[%s9202_s0 + $0x218] ss:$12 sps:$4 sm:$0xff]   ;;  %v6798_v17 = vld [vmem:[%s9202_s0 + $0x168] ss:$12 sps:$4 sm:$0xff]  }
 0x4ca   :  { %2130 = vmatmul.mubr.bf16.gmra.mrb[136].mxu1 %v6750_v60  ;;  %v6800_v5 = vld [vmem:[%s9202_s0 + $0x230] ss:$12 sps:$4 sm:$0xff]  }
 0x4cb   :  { %5752 = vmatprep.subr.bf16.mxu0 %v2069_v36  ;;  %2137 = vmatprep.mubr.bf16.mxu1 %v6751_v34  ;;  %v6802_v60 = vld [vmem:[%s9202_s0 + $0x19c] ss:$12 sps:$4 sm:$0xff]   ;;  %v6803_v34 = vld [vmem:[%s9202_s0 + $0x198] ss:$12 sps:$4 sm:$0xff]  }
 0x4cc   :  { %5753 = vmatpush3.bf16.msra.mxu0 %v2069_v36  ;;  %v6801_v36 = vld [vmem:[%s9202_s0 + $0x180] ss:$12 sps:$4 sm:$0xff]  }
 0x4cd   :  { %v5742_v4 = vpop.f32.mrb[120].mxu0  ;;  %5754 = vmatprep.subr.bf16.mxu0 %v2070_v54 }
 0x4ce   :  { %v2034_v49 = vpop.f32.mrb[121].mxu0 }
 0x4cf   :  { %v5743_v16 = vpop.f32.mrb[122].mxu0 }
 0x4d0   :  { %v2072_v1 = vpack.c.bf16 %v5743_v16, %v5742_v4  ;;  %v2037_v8 = vpop.f32.mrb[123].mxu0  ;;  %5755 = vmatpush3.bf16.msra.mxu0 %v2070_v54  ;;  %v6799_v54 = vld [vmem:[%s9202_s0 + $0x184] ss:$12 sps:$4 sm:$0xff]   ;;  %v6804_v4 = vld [vmem:[%s9202_s0 + $0x1b4] ss:$12 sps:$4 sm:$0xff]  }
 0x4d1   :  { %v2071_v10 = vpack.c.bf16 %v2037_v8, %v2034_v49  ;;  %v6805_v49 = vld [vmem:[%s9202_s0 + $0x1b0] ss:$12 sps:$4 sm:$0xff]   ;;  %v6806_v16 = vld [vmem:[%s9202_s0 + $0x1cc] ss:$12 sps:$4 sm:$0xff]  }
 0x4d2   :  { %2138 = vmatmul.mubr.bf16.gmra.mrb[140].mxu1 %v6752_v56  ;;  %v6808_v8 = vld [vmem:[%s9202_s0 + $0x1e4] ss:$12 sps:$4 sm:$0xff]   ;;  %v6810_v56 = vld [vmem:[%s9202_s0 + $0x1fc] ss:$12 sps:$4 sm:$0xff]  }
 0x4d3   :  { %5756 = vmatprep.subr.bf16.mxu0 %v2071_v10  ;;  %2145 = vmatprep.mubr.bf16.mxu1 %v6753_v27  ;;  %v6811_v27 = vld [vmem:[%s9202_s0 + $0x1f8] ss:$12 sps:$4 sm:$0xff]  }
 0x4d4   :  { %5757 = vmatpush3.bf16.msra.mxu0 %v2071_v10  ;;  %v6809_v10 = vld [vmem:[%s9202_s0 + $0x1e0] ss:$12 sps:$4 sm:$0xff]  }
 0x4d5   :  { %5758 = vmatprep.subr.bf16.mxu0 %v2072_v1 }
 0x4d8   :  { %5759 = vmatpush3.bf16.msra.mxu0 %v2072_v1  ;;  %v6807_v1 = vld [vmem:[%s9202_s0 + $0x1c8] ss:$12 sps:$4 sm:$0xff]  }
 0x4da   :  { %2146 = vmatmul.mubr.bf16.gmra.mrb[144].mxu1 %v6754_v19  ;;  %v6812_v19 = vld [vmem:[%s9202_s0 + $0x214] ss:$12 sps:$4 sm:$0xff]  }
 0x4db   :  { %5761 = vmatmul.mubr.bf16.vlgmr.msra.gmra.mrb[124].mxu0 %v6755_v52  ;;  %2153 = vmatprep.mubr.bf16.mxu1 %v6756_v37  ;;  %v6813_v52 = vld [vmem:[%s9202_s0 + $0x210] ss:$12 sps:$4 sm:$0xff]   ;;  %v6814_v37 = vld [vmem:[%s9202_s0 + $0x22c] ss:$12 sps:$4 sm:$0xff]  }
 0x4dc   :  { %5764 = vmatprep.mubr.bf16.mxu0 %v6757_v15  ;;  %v6815_v15 = vld [vmem:[%s9202_s0 + $0x228] ss:$12 sps:$4 sm:$0xff]  }
 0x4e2   :  { %2154 = vmatmul.mubr.bf16.gmra.mrb[148].mxu1 %v6758_v22  ;;  %v6816_v22 = vld [vmem:[%s9202_s0 + $0x4] ss:$12 sps:$4 sm:$0xff]  }
 0x4e3   :  { %5765 = vmatmul.mubr.bf16.gmra.mrb[128].mxu0 %v6759_v33  ;;  %2161 = vmatprep.mubr.bf16.mxu1 %v6760_v61 }
 0x4e4   :  { %5768 = vmatprep.mubr.bf16.mxu0 %v6761_v18 }
 0x4ea   :  { %2162 = vmatmul.mubr.bf16.gmra.mrb[152].mxu1 %v6762_v25 }
 0x4eb   :  { %5769 = vmatmul.mubr.bf16.gmra.mrb[132].mxu0 %v6763_v39  ;;  %2169 = vmatprep.mubr.bf16.mxu1 %v6764_v32 }
 0x4ec   :  { %5772 = vmatprep.mubr.bf16.mxu0 %v6765_v23 }
 0x4f2   :  { %2170 = vmatmul.mubr.bf16.gmra.mrb[156].mxu1 %v6766_v30 }
 0x4f3   :  { %5773 = vmatmul.mubr.bf16.gmra.mrb[136].mxu0 %v6767_v43  ;;  %2177 = vmatprep.mubr.bf16.mxu1 %v6768_v35 }
 0x4f4   :  { %5776 = vmatprep.mubr.bf16.mxu0 %v6769_v9 }
 0x4fa   :  { %2178 = vmatmul.mubr.bf16.gmra.mrb[160].mxu1 %v6770_v6 }
 0x4fb   :  { %5777 = vmatmul.mubr.bf16.gmra.mrb[140].mxu0 %v6771_v28  ;;  %2185 = vmatprep.mubr.bf16.mxu1 %v6772_v50 }
 0x4fc   :  { %5780 = vmatprep.mubr.bf16.mxu0 %v6773_v51 }
 0x502   :  { %2186 = vmatmul.mubr.bf16.gmra.mrb[164].mxu1 %v6774_v55 }
 0x503   :  { %2193 = vmatprep.mubr.bf16.mxu1 %v6775_v0  ;;  %5781 = vmatmul.mubr.bf16.gmra.mrb[144].mxu0 %v6776_v11  ;;  %v7958_v0 = vld [vmem:[%s9203_s3 + $0x1] ss:$0 sm:$0xff] }
 0x504   :  { %5784 = vmatprep.mubr.bf16.mxu0 %v6777_v13 }
 0x50a   :  { %2194 = vmatmul.mubr.bf16.gmra.mrb[168].mxu1 %v6778_v12 }
 0x50b   :  { %2201 = vmatprep.mubr.bf16.mxu1 %v6779_v59  ;;  %5785 = vmatmul.mubr.bf16.gmra.mrb[148].mxu0 %v6780_v62 }
 0x50c   :  { %5788 = vmatprep.mubr.bf16.mxu0 %v6781_v53 }
 0x512   :  { %2202 = vmatmul.mubr.bf16.gmra.mrb[172].mxu1 %v6782_v63 }
 0x513   :  { %2209 = vmatprep.mubr.bf16.mxu1 %v6783_v38  ;;  %5789 = vmatmul.mubr.bf16.gmra.mrb[152].mxu0 %v6784_v3 }
 0x514   :  { %5792 = vmatprep.mubr.bf16.mxu0 %v6785_v20 }
 0x51a   :  { %2210 = vmatmul.mubr.bf16.gmra.mrb[176].mxu1 %v6786_v45 }
 0x51b   :  { %2217 = vmatprep.mubr.bf16.mxu1 %v6787_v46  ;;  %5793 = vmatmul.mubr.bf16.gmra.mrb[156].mxu0 %v6788_v44 }
 0x51c   :  { %5796 = vmatprep.mubr.bf16.mxu0 %v6789_v24 }
 0x522   :  { %2218 = vmatmul.mubr.bf16.gmra.mrb[180].mxu1 %v6790_v41 }
 0x523   :  { %2225 = vmatprep.mubr.bf16.mxu1 %v6791_v57  ;;  %5797 = vmatmul.mubr.bf16.gmra.mrb[160].mxu0 %v6792_v7 }
 0x524   :  { %5800 = vmatprep.mubr.bf16.mxu0 %v6793_v29 }
 0x52a   :  { %2226 = vmatmul.mubr.bf16.gmra.mrb[184].mxu1 %v6794_v40 }
 0x52b   :  { %2233 = vmatprep.mubr.bf16.mxu1 %v6795_v2  ;;  %5801 = vmatmul.mubr.bf16.gmra.mrb[164].mxu0 %v6796_v31 }
 0x52c   :  { %5804 = vmatprep.mubr.bf16.mxu0 %v6797_v58 }
 0x532   :  { %2234 = vmatmul.mubr.bf16.gmra.mrb[188].mxu1 %v6798_v17 }
 0x533   :  { %2241 = vmatprep.mubr.bf16.mxu1 %v6799_v54  ;;  %5805 = vmatmul.mubr.bf16.gmra.mrb[168].mxu0 %v6800_v5 }
 0x534   :  { %2635 = vmatprep.mubr.bf16.mxu0 %v7422_v21 }
 0x53a   :  { %2242 = vmatmul.mubr.bf16.gmra.mrb[192].mxu1 %v6801_v36 }
 0x53b   :  { %2249 = vmatprep.mubr.bf16.mxu1 %v6802_v60 }
 0x542   :  { %2250 = vmatmul.mubr.bf16.gmra.mrb[196].mxu1 %v6803_v34 }
 0x543   :  { %2257 = vmatprep.mubr.bf16.mxu1 %v6804_v4 }
 0x54a   :  { %2258 = vmatmul.mubr.bf16.gmra.mrb[200].mxu1 %v6805_v49 }
 0x54b   :  { %2265 = vmatprep.mubr.bf16.mxu1 %v6806_v16 }
 0x552   :  { %2266 = vmatmul.mubr.bf16.gmra.mrb[204].mxu1 %v6807_v1 }
 0x553   :  { %2273 = vmatprep.mubr.bf16.mxu1 %v6808_v8 }
 0x55a   :  { %2274 = vmatmul.mubr.bf16.gmra.mrb[208].mxu1 %v6809_v10 }
 0x55b   :  { %2281 = vmatprep.mubr.bf16.mxu1 %v6810_v56 }
 0x562   :  { %2282 = vmatmul.mubr.bf16.gmra.mrb[212].mxu1 %v6811_v27 }
 0x563   :  { %2289 = vmatprep.mubr.bf16.mxu1 %v6812_v19 }
 0x56a   :  { %2290 = vmatmul.mubr.bf16.gmra.mrb[216].mxu1 %v6813_v52 }
 0x56b   :  { %2297 = vmatprep.mubr.bf16.mxu1 %v6814_v37 }
 0x572   :  { %2298 = vmatmul.mubr.bf16.gmra.mrb[220].mxu1 %v6815_v15 }
 0x573   :  { %3140 = vmatprep.mubr.bf16.mxu1 %v6816_v22 }
 0x58d   :  { %v2115_v33 = vpop.f32.mrb[128].mxu1 }
 0x58e   :  { %v2117_v61 = vpop.f32.mrb[129].mxu1  ;;  %v2116_v12 = vadd.f32 %v7958_v0, %v2115_v33 }
 0x58f   :  { %v2118_v18 = vpop.f32.mrb[130].mxu1 }
 0x590   :  { %v2120_v25 = vpop.f32.mrb[131].mxu1  ;;  %v2119_v20 = vadd.f32 %v7958_v0, %v2118_v18 }
 0x595   :  { %v2123_v39 = vpop.f32.mrb[132].mxu1 }
 0x596   :  { %v2125_v32 = vpop.f32.mrb[133].mxu1  ;;  %v2124_v11 = vadd.f32 %v7958_v0, %v2123_v39 }
 0x597   :  { %v2126_v23 = vpop.f32.mrb[134].mxu1 }
 0x598   :  { %v2128_v30 = vpop.f32.mrb[135].mxu1  ;;  %v2127_v53 = vadd.f32 %v7958_v0, %v2126_v23 }
 0x59d   :  { %v2131_v43 = vpop.f32.mrb[136].mxu1 }
 0x59e   :  { %v2133_v35 = vpop.f32.mrb[137].mxu1  ;;  %v2132_v40 = vadd.f32 %v7958_v0, %v2131_v43 }
 0x59f   :  { %v2134_v9 = vpop.f32.mrb[138].mxu1 }
 0x5a0   :  { %v2136_v6 = vpop.f32.mrb[139].mxu1  ;;  %v2135_v36 = vadd.f32 %v7958_v0, %v2134_v9 }
 0x5a5   :  { %v2139_v28 = vpop.f32.mrb[140].mxu1 }
 0x5a6   :  { %v2141_v50 = vpop.f32.mrb[141].mxu1  ;;  %v2140_v7 = vadd.f32 %v7958_v0, %v2139_v28 }
 0x5a7   :  { %v2142_v51 = vpop.f32.mrb[142].mxu1 }
 0x5a8   :  { %v2144_v55 = vpop.f32.mrb[143].mxu1  ;;  %v2143_v58 = vadd.f32 %v7958_v0, %v2142_v51 }
 0x5ad   :  { %v2147_v13 = vpop.f32.mrb[144].mxu1 }
 0x5ae   :  { %v2149_v59 = vpop.f32.mrb[145].mxu1  ;;  %v5762_v62 = vpop.f32.mrb[124].mxu0  ;;  %v2148_v22 = vadd.f32 %v7958_v0, %v2147_v13 }
 0x5af   :  { %v2349_v63 = vadd.f32 %v5762_v62, %v2124_v11  ;;  %v2150_v38 = vpop.f32.mrb[146].mxu1  ;;  %v2340_v3 = vpop.f32.mrb[125].mxu0 }
 0x5b0   :  { %v2341_v45 = vadd.f32 %v2340_v3, %v2116_v12  ;;  %v2152_v46 = vpop.f32.mrb[147].mxu1  ;;  %v5763_v44 = vpop.f32.mrb[126].mxu0  ;;  %v2151_v35 = vadd.f32 %v7958_v0, %v2150_v38 }
 0x5b1   :  { %6457 = vtanh.f32 %v2349_v63  ;;  %v2352_v24 = vadd.f32 %v5763_v44, %v2127_v53  ;;  %v2343_v41 = vpop.f32.mrb[127].mxu0 }
 0x5b2   :  { %6459 = vtanh.f32 %v2341_v45  ;;  %v2344_v57 = vadd.f32 %v2343_v41, %v2119_v20 }
 0x5b3   :  { %6461 = vtanh.f32 %v2352_v24 }
 0x5b4   :  { %6463 = vtanh.f32 %v2344_v57 }
 0x5b5   :  { %v2155_v29 = vpop.f32.mrb[148].mxu1 }
 0x5b6   :  { %v2157_v2 = vpop.f32.mrb[149].mxu1  ;;  %v5766_v31 = vpop.f32.mrb[128].mxu0  ;;  %v2156_v19 = vadd.f32 %v7958_v0, %v2155_v29 }
 0x5b7   :  { %v2365_v17 = vadd.f32 %v5766_v31, %v2140_v7  ;;  %v2158_v54 = vpop.f32.mrb[150].mxu1  ;;  %v2356_v5 = vpop.f32.mrb[129].mxu0 }
 0x5b8   :  { %v2357_v60 = vadd.f32 %v2356_v5, %v2132_v40  ;;  %v2160_v34 = vpop.f32.mrb[151].mxu1  ;;  %v5767_v4 = vpop.f32.mrb[130].mxu0  ;;  %v2159_v39 = vadd.f32 %v7958_v0, %v2158_v54 }
 0x5b9   :  { %6465 = vtanh.f32 %v2365_v17  ;;  %v2368_v49 = vadd.f32 %v5767_v4, %v2143_v58  ;;  %v2359_v16 = vpop.f32.mrb[131].mxu0 }
 0x5ba   :  { %6467 = vtanh.f32 %v2357_v60  ;;  %v2360_v1 = vadd.f32 %v2359_v16, %v2135_v36 }
 0x5bb   :  { %v6458_v8 = vpop.eup %6457  ;;  %6469 = vtanh.f32 %v2368_v49 }
 0x5bc   :  { %v6460_v10 = vpop.eup %6459  ;;  %6471 = vtanh.f32 %v2360_v1 }
 0x5bd   :  { %v6462_v56 = vpop.eup %6461  ;;  %v2163_v27 = vpop.f32.mrb[152].mxu1 }
 0x5be   :  { %v6464_v52 = vpop.eup %6463  ;;  %v2165_v37 = vpop.f32.mrb[153].mxu1  ;;  %v7970_v33 = vpack.c.bf16 %v6462_v56, %v6458_v8  ;;  %v2164_v53 = vadd.f32 %v7958_v0, %v2163_v27 }
 0x5bf   :  { %v5770_v15 = vpop.f32.mrb[132].mxu0  ;;  %v2166_v18 = vpop.f32.mrb[154].mxu1  ;;  %v7973_v32 = vpack.c.bf16 %v6464_v52, %v6460_v10 }
 0x5c0   :  { %v2381_v61 = vadd.f32 %v5770_v15, %v2156_v19  ;;  %v2372_v25 = vpop.f32.mrb[133].mxu0  ;;  %v2168_v30 = vpop.f32.mrb[155].mxu1  ;;  %v2167_v57 = vadd.f32 %v7958_v0, %v2166_v18 }
 0x5c1   :  { %v2373_v23 = vadd.f32 %v2372_v25, %v2148_v22  ;;  %v5771_v43 = vpop.f32.mrb[134].mxu0 }
 0x5c2   :  { %6473 = vtanh.f32 %v2381_v61  ;;  %v2384_v9 = vadd.f32 %v5771_v43, %v2159_v39  ;;  %v2375_v6 = vpop.f32.mrb[135].mxu0 }
 0x5c3   :  { %6475 = vtanh.f32 %v2373_v23  ;;  %v2376_v28 = vadd.f32 %v2375_v6, %v2151_v35  ;;  %v6466_v50 = vpop.eup %6465 }
 0x5c4   :  { %6477 = vtanh.f32 %v2384_v9  ;;  %v6468_v51 = vpop.eup %6467 }
 0x5c5   :  { %6479 = vtanh.f32 %v2376_v28  ;;  %v6470_v55 = vpop.eup %6469  ;;  %v2171_v11 = vpop.f32.mrb[156].mxu1 }
 0x5c6   :  { %v6472_v13 = vpop.eup %6471  ;;  %v2173_v12 = vpop.f32.mrb[157].mxu1  ;;  %v2172_v59 = vadd.f32 %v7958_v0, %v2171_v11  ;;  %v7978_v63 = vpack.c.bf16 %v6470_v55, %v6466_v50 }
 0x5c7   :  { %v5774_v62 = vpop.f32.mrb[136].mxu0  ;;  %v2174_v38 = vpop.f32.mrb[158].mxu1  ;;  %v7980_v20 = vpack.c.bf16 %v6472_v13, %v6468_v51 }
 0x5c8   :  { %v2388_v3 = vpop.f32.mrb[137].mxu0  ;;  %v2397_v45 = vadd.f32 %v5774_v62, %v2172_v59  ;;  %v2176_v44 = vpop.f32.mrb[159].mxu1  ;;  %v2175_v24 = vadd.f32 %v7958_v0, %v2174_v38 }
 0x5c9   :  { %v2389_v46 = vadd.f32 %v2388_v3, %v2164_v53  ;;  %v5775_v41 = vpop.f32.mrb[138].mxu0 }
 0x5ca   :  { %v2391_v7 = vpop.f32.mrb[139].mxu0  ;;  %6481 = vtanh.f32 %v2397_v45  ;;  %v2400_v29 = vadd.f32 %v5775_v41, %v2175_v24 }
 0x5cb   :  { %v2392_v40 = vadd.f32 %v2391_v7, %v2167_v57  ;;  %6483 = vtanh.f32 %v2389_v46 }
 0x5cc   :  { %v6474_v2 = vpop.eup %6473  ;;  %6485 = vtanh.f32 %v2400_v29 }
 0x5cd   :  { %v6476_v31 = vpop.eup %6475  ;;  %6487 = vtanh.f32 %v2392_v40  ;;  %v2179_v17 = vpop.f32.mrb[160].mxu1 }
 0x5ce   :  { %v6478_v58 = vpop.eup %6477  ;;  %v2181_v5 = vpop.f32.mrb[161].mxu1  ;;  %v2180_v60 = vadd.f32 %v7958_v0, %v2179_v17 }
 0x5cf   :  { %v6480_v54 = vpop.eup %6479  ;;  %v5778_v36 = vpop.f32.mrb[140].mxu0  ;;  %v7985_v34 = vpack.c.bf16 %v6478_v58, %v6474_v2 }
 0x5d0   :  { %v2182_v4 = vpop.f32.mrb[162].mxu1  ;;  %v2404_v49 = vpop.f32.mrb[141].mxu0  ;;  %v7987_v16 = vpack.c.bf16 %v6480_v54, %v6476_v31 }
 0x5d1   :  { %v2405_v1 = vadd.f32 %v2404_v49, %v2180_v60  ;;  %v2184_v8 = vpop.f32.mrb[163].mxu1  ;;  %v5779_v10 = vpop.f32.mrb[142].mxu0  ;;  %v2183_v56 = vadd.f32 %v7958_v0, %v2182_v4 }
 0x5d2   :  { %v2407_v27 = vpop.f32.mrb[143].mxu0 }
 0x5d3   :  { %v2408_v19 = vadd.f32 %v2407_v27, %v2183_v56  ;;  %6489 = vtanh.f32 %v2405_v1 }
 0x5d4   :  { %v6482_v52 = vpop.eup %6481 }
 0x5d5   :  { %6491 = vtanh.f32 %v2408_v19  ;;  %v6484_v37 = vpop.eup %6483  ;;  %v2187_v15 = vpop.f32.mrb[164].mxu1 }
 0x5d6   :  { %v6486_v22 = vpop.eup %6485  ;;  %v2188_v61 = vadd.f32 %v7958_v0, %v2187_v15  ;;  %v2189_v18 = vpop.f32.mrb[165].mxu1 }
 0x5d7   :  { %v5782_v25 = vpop.f32.mrb[144].mxu0  ;;  %v6488_v39 = vpop.eup %6487  ;;  %v7991_v43 = vpack.c.bf16 %v6486_v22, %v6482_v52 }
 0x5d8   :  { %v2190_v23 = vpop.f32.mrb[166].mxu1  ;;  %v2420_v30 = vpop.f32.mrb[145].mxu0  ;;  %v2413_v35 = vadd.f32 %v5778_v36, %v2188_v61  ;;  %v7994_v50 = vpack.c.bf16 %v6488_v39, %v6484_v37 }
 0x5d9   :  { %v2191_v9 = vadd.f32 %v7958_v0, %v2190_v23  ;;  %v2192_v6 = vpop.f32.mrb[167].mxu1  ;;  %v5783_v28 = vpop.f32.mrb[146].mxu0 }
 0x5da   :  { %v2423_v51 = vpop.f32.mrb[147].mxu0  ;;  %6493 = vtanh.f32 %v2413_v35 }
 0x5db   :  { %v2416_v55 = vadd.f32 %v5779_v10, %v2191_v9 }
 0x5dd   :  { %6495 = vtanh.f32 %v2416_v55  ;;  %v6490_v11 = vpop.eup %6489  ;;  %v2195_v13 = vpop.f32.mrb[168].mxu1 }
 0x5de   :  { %v2196_v59 = vadd.f32 %v7958_v0, %v2195_v13  ;;  %v2197_v62 = vpop.f32.mrb[169].mxu1  ;;  %v5786_v53 = vpop.f32.mrb[148].mxu0 }
 0x5df   :  { %v6492_v12 = vpop.eup %6491  ;;  %v2198_v38 = vpop.f32.mrb[170].mxu1 }
 0x5e0   :  { %v7997_v3 = vpack.c.bf16 %v6492_v12, %v6490_v11  ;;  %v2436_v45 = vpop.f32.mrb[149].mxu0  ;;  %v2199_v46 = vadd.f32 %v7958_v0, %v2198_v38  ;;  %v2421_v44 = vadd.f32 %v2420_v30, %v2196_v59  ;;  %v2200_v24 = vpop.f32.mrb[171].mxu1 }
 0x5e1   :  { %v5787_v41 = vpop.f32.mrb[150].mxu0 }
 0x5e2   :  { %5304 = vmatprep.subr.bf16.mxu0 %v7997_v3  ;;  %v2439_v57 = vpop.f32.mrb[151].mxu0  ;;  %v2424_v7 = vadd.f32 %v2423_v51, %v2199_v46  ;;  %6497 = vtanh.f32 %v2421_v44 }
 0x5e3   :  { %5305 = vmatpush3.bf16.msra.mxu0 %v7973_v32 }
 0x5e4   :  { %6499 = vtanh.f32 %v2424_v7  ;;  %v6494_v29 = vpop.eup %6493 }
 0x5e5   :  { %v2203_v40 = vpop.f32.mrb[172].mxu1 }
 0x5e6   :  { %v2204_v31 = vadd.f32 %v7958_v0, %v2203_v40  ;;  %v2205_v58 = vpop.f32.mrb[173].mxu1  ;;  %v8003_v17 = vpop.f32.mrb[152].mxu0 }
 0x5e7   :  { %v6496_v2 = vpop.eup %6495  ;;  %v2206_v54 = vpop.f32.mrb[174].mxu1 }
 0x5e8   :  { %v8005_v5 = vpack.c.bf16 %v6496_v2, %v6494_v29  ;;  %v2452_v36 = vpop.f32.mrb[153].mxu0  ;;  %v2429_v60 = vadd.f32 %v5782_v25, %v2204_v31  ;;  %v2207_v4 = vadd.f32 %v7958_v0, %v2206_v54  ;;  %v2208_v49 = vpop.f32.mrb[175].mxu1 }
 0x5e9   :  { %v8008_v1 = vpop.f32.mrb[154].mxu0 }
 0x5ea   :  { %5306 = vmatprep.subr.bf16.mxu0 %v8005_v5  ;;  %v2455_v8 = vpop.f32.mrb[155].mxu0  ;;  %v2432_v10 = vadd.f32 %v5783_v28, %v2207_v4  ;;  %6501 = vtanh.f32 %v2429_v60 }
 0x5eb   :  { %5307 = vmatpush3.bf16.msra.mxu0 %v7970_v33 }
 0x5ec   :  { %6503 = vtanh.f32 %v2432_v10  ;;  %v6498_v56 = vpop.eup %6497 }
 0x5ed   :  { %v2211_v27 = vpop.f32.mrb[176].mxu1 }
 0x5ee   :  { %v6500_v19 = vpop.eup %6499  ;;  %v2212_v52 = vadd.f32 %v7958_v0, %v2211_v27  ;;  %v2213_v37 = vpop.f32.mrb[177].mxu1 }
 0x5ef   :  { %v8013_v15 = vpop.f32.mrb[156].mxu0  ;;  %v2214_v22 = vpop.f32.mrb[178].mxu1  ;;  %v8015_v61 = vpack.c.bf16 %v6500_v19, %v6498_v56 }
 0x5f0   :  { %v8017_v18 = vpop.f32.mrb[157].mxu0  ;;  %v2215_v25 = vadd.f32 %v7958_v0, %v2214_v22  ;;  %v2437_v39 = vadd.f32 %v2436_v45, %v2212_v52  ;;  %v2216_v23 = vpop.f32.mrb[179].mxu1 }
 0x5f1   :  { %v8020_v30 = vpop.f32.mrb[158].mxu0  ;;  %5308 = vmatprep.subr.bf16.mxu0 %v8015_v61 }
 0x5f2   :  { %v8023_v35 = vpop.f32.mrb[159].mxu0  ;;  %v2440_v9 = vadd.f32 %v2439_v57, %v2215_v25  ;;  %5309 = vmatpush3.bf16.msra.mxu0 %v7980_v20  ;;  %6505 = vtanh.f32 %v2437_v39 }
 0x5f4   :  { %6507 = vtanh.f32 %v2440_v9  ;;  %v6502_v6 = vpop.eup %6501 }
 0x5f5   :  { %v2219_v28 = vpop.f32.mrb[180].mxu1 }
 0x5f6   :  { %v6504_v51 = vpop.eup %6503  ;;  %v2220_v55 = vadd.f32 %v7958_v0, %v2219_v28  ;;  %v2221_v11 = vpop.f32.mrb[181].mxu1 }
 0x5f7   :  { %v8027_v13 = vpop.f32.mrb[160].mxu0  ;;  %v2222_v12 = vpop.f32.mrb[182].mxu1  ;;  %v8029_v59 = vpack.c.bf16 %v6504_v51, %v6502_v6 }
 0x5f8   :  { %v8031_v62 = vpop.f32.mrb[161].mxu0  ;;  %v2445_v38 = vadd.f32 %v5786_v53, %v2220_v55  ;;  %v2223_v45 = vadd.f32 %v7958_v0, %v2222_v12  ;;  %v2224_v46 = vpop.f32.mrb[183].mxu1 }
 0x5f9   :  { %v8034_v44 = vpop.f32.mrb[162].mxu0  ;;  %5310 = vmatprep.subr.bf16.mxu0 %v8029_v59 }
 0x5fa   :  { %v8037_v24 = vpop.f32.mrb[163].mxu0  ;;  %v2448_v57 = vadd.f32 %v5787_v41, %v2223_v45  ;;  %5311 = vmatpush3.bf16.msra.mxu0 %v7978_v63  ;;  %6509 = vtanh.f32 %v2445_v38 }
 0x5fc   :  { %6511 = vtanh.f32 %v2448_v57  ;;  %v6506_v7 = vpop.eup %6505 }
 0x5fd   :  { %v2227_v29 = vpop.f32.mrb[184].mxu1 }
 0x5fe   :  { %v6508_v40 = vpop.eup %6507  ;;  %v2228_v2 = vadd.f32 %v7958_v0, %v2227_v29  ;;  %v2229_v53 = vpop.f32.mrb[185].mxu1 }
 0x5ff   :  { %v8041_v31 = vpop.f32.mrb[164].mxu0  ;;  %v2230_v58 = vpop.f32.mrb[186].mxu1  ;;  %v8043_v54 = vpack.c.bf16 %v6508_v40, %v6506_v7 }
 0x600   :  { %v8045_v60 = vpop.f32.mrb[165].mxu0  ;;  %v2231_v4 = vadd.f32 %v7958_v0, %v2230_v58  ;;  %v2453_v41 = vadd.f32 %v2452_v36, %v2228_v2  ;;  %v2232_v49 = vpop.f32.mrb[187].mxu1 }
 0x601   :  { %v8048_v10 = vpop.f32.mrb[166].mxu0  ;;  %5312 = vmatprep.subr.bf16.mxu0 %v8043_v54 }
 0x602   :  { %v8051_v56 = vpop.f32.mrb[167].mxu0  ;;  %v2456_v27 = vadd.f32 %v2455_v8, %v2231_v4  ;;  %5313 = vmatpush3.bf16.msra.mxu0 %v7987_v16  ;;  %6513 = vtanh.f32 %v2453_v41 }
 0x604   :  { %6515 = vtanh.f32 %v2456_v27  ;;  %v6510_v19 = vpop.eup %6509 }
 0x605   :  { %v2235_v52 = vpop.f32.mrb[188].mxu1 }
 0x606   :  { %v6512_v37 = vpop.eup %6511  ;;  %v2236_v22 = vadd.f32 %v7958_v0, %v2235_v52  ;;  %v2237_v25 = vpop.f32.mrb[189].mxu1 }
 0x607   :  { %v8055_v39 = vpop.f32.mrb[168].mxu0  ;;  %v2238_v36 = vpop.f32.mrb[190].mxu1  ;;  %v8057_v23 = vpack.c.bf16 %v6512_v37, %v6510_v19 }
 0x608   :  { %v8059_v9 = vpop.f32.mrb[169].mxu0  ;;  %v2461_v6 = vadd.f32 %v8003_v17, %v2236_v22  ;;  %v2239_v8 = vadd.f32 %v7958_v0, %v2238_v36  ;;  %v2240_v28 = vpop.f32.mrb[191].mxu1 }
 0x609   :  { %v8063_v51 = vpop.f32.mrb[170].mxu0  ;;  %5314 = vmatprep.subr.bf16.mxu0 %v8057_v23 }
 0x60a   :  { %v8066_v55 = vpop.f32.mrb[171].mxu0  ;;  %v2464_v11 = vadd.f32 %v8008_v1, %v2239_v8  ;;  %5315 = vmatpush3.bf16.msra.mxu0 %v7985_v34  ;;  %6517 = vtanh.f32 %v2461_v6 }
 0x60c   :  { %6519 = vtanh.f32 %v2464_v11  ;;  %v6514_v12 = vpop.eup %6513 }
 0x60d   :  { %v2243_v38 = vpop.f32.mrb[192].mxu1 }
 0x60e   :  { %v6516_v45 = vpop.eup %6515  ;;  %v2244_v17 = vadd.f32 %v7958_v0, %v2243_v38  ;;  %v2245_v46 = vpop.f32.mrb[193].mxu1 }
 0x60f   :  { %v2246_v57 = vpop.f32.mrb[194].mxu1  ;;  %v8071_v7 = vpack.c.bf16 %v6516_v45, %v6514_v12 }
 0x610   :  { %v2247_v29 = vadd.f32 %v7958_v0, %v2246_v57  ;;  %v2469_v40 = vadd.f32 %v8017_v18, %v2244_v17  ;;  %v2248_v2 = vpop.f32.mrb[195].mxu1 }
 0x611   :  { %5316 = vmatprep.subr.bf16.mxu0 %v8071_v7 }
 0x612   :  { %v2472_v1 = vadd.f32 %v8023_v35, %v2247_v29  ;;  %5317 = vmatpush3.bf16.msra.mxu0 %v7994_v50  ;;  %6521 = vtanh.f32 %v2469_v40 }
 0x614   :  { %6523 = vtanh.f32 %v2472_v1  ;;  %v6518_v53 = vpop.eup %6517 }
 0x615   :  { %v2251_v58 = vpop.f32.mrb[196].mxu1 }
 0x616   :  { %v6520_v4 = vpop.eup %6519  ;;  %v2252_v41 = vadd.f32 %v7958_v0, %v2251_v58  ;;  %v2253_v49 = vpop.f32.mrb[197].mxu1 }
 0x617   :  { %v2254_v27 = vpop.f32.mrb[198].mxu1  ;;  %v8079_v19 = vpack.c.bf16 %v6520_v4, %v6518_v53 }
 0x618   :  { %v2477_v18 = vadd.f32 %v8013_v15, %v2252_v41  ;;  %v2255_v52 = vadd.f32 %v7958_v0, %v2254_v27  ;;  %v2256_v37 = vpop.f32.mrb[199].mxu1 }
 0x619   :  { %5318 = vmatprep.subr.bf16.mxu0 %v8079_v19 }
 0x61a   :  { %v2480_v35 = vadd.f32 %v8020_v30, %v2255_v52  ;;  %5319 = vmatpush3.bf16.msra.mxu0 %v7991_v43  ;;  %6525 = vtanh.f32 %v2477_v18 }
 0x61b   :  { %5808 = vmatprep.subr.bf16.mxu0 %v6962_v48 }
 0x61c   :  { %6527 = vtanh.f32 %v2480_v35  ;;  %v6522_v22 = vpop.eup %6521 }
 0x61d   :  { %v2259_v25 = vpop.f32.mrb[200].mxu1  ;;  %2636 = vmatmul.mubr.bf16.vlgmr.msra.gmra.mrb[172].mxu0 %v7417_v14 }
 0x61e   :  { %v6524_v36 = vpop.eup %6523  ;;  %v2260_v15 = vadd.f32 %v7958_v0, %v2259_v25  ;;  %v2261_v6 = vpop.f32.mrb[201].mxu1  ;;  %5824 = vmatprep.mubr.msk.bf16.mxu0 %vm6963_vm1, %v6962_v48 }
 0x61f   :  { %v2262_v8 = vpop.f32.mrb[202].mxu1  ;;  %v8091_v28 = vpack.c.bf16 %v6524_v36, %v6522_v22 }
 0x620   :  { %v2263_v30 = vadd.f32 %v7958_v0, %v2262_v8  ;;  %v2485_v11 = vadd.f32 %v8031_v62, %v2260_v15  ;;  %v2264_v12 = vpop.f32.mrb[203].mxu1 }
 0x621   :  { %5809 = vmatpush3.bf16.msra.mxu0 %v8091_v28 }
 0x622   :  { %v2488_v38 = vadd.f32 %v8037_v24, %v2263_v30  ;;  %5810 = vmatprep.subr.bf16.mxu0 %v6962_v48  ;;  %6529 = vtanh.f32 %v2485_v11 }
 0x624   :  { %6531 = vtanh.f32 %v2488_v38  ;;  %v6526_v45 = vpop.eup %6525 }
 0x625   :  { %v2267_v17 = vpop.f32.mrb[204].mxu1 }
 0x626   :  { %v6528_v46 = vpop.eup %6527  ;;  %v2268_v57 = vadd.f32 %v7958_v0, %v2267_v17  ;;  %v2269_v29 = vpop.f32.mrb[205].mxu1 }
 0x627   :  { %v2270_v40 = vpop.f32.mrb[206].mxu1  ;;  %v8099_v2 = vpack.c.bf16 %v6528_v46, %v6526_v45 }
 0x628   :  { %v2493_v62 = vadd.f32 %v8027_v13, %v2268_v57  ;;  %v2271_v1 = vadd.f32 %v7958_v0, %v2270_v40  ;;  %v2272_v53 = vpop.f32.mrb[207].mxu1 }
 0x629   :  { %5811 = vmatpush3.bf16.msra.mxu0 %v8099_v2 }
 0x62a   :  { %v2496_v24 = vadd.f32 %v8034_v44, %v2271_v1  ;;  %5812 = vmatprep.subr.bf16.mxu0 %v6962_v48  ;;  %6533 = vtanh.f32 %v2493_v62 }
 0x62c   :  { %6535 = vtanh.f32 %v2496_v24  ;;  %v6530_v58 = vpop.eup %6529 }
 0x62d   :  { %v2275_v4 = vpop.f32.mrb[208].mxu1 }
 0x62e   :  { %v6532_v41 = vpop.eup %6531  ;;  %v2276_v49 = vadd.f32 %v7958_v0, %v2275_v4  ;;  %v2277_v27 = vpop.f32.mrb[209].mxu1 }
 0x62f   :  { %v2278_v18 = vpop.f32.mrb[210].mxu1  ;;  %v8107_v52 = vpack.c.bf16 %v6532_v41, %v6530_v58 }
 0x630   :  { %v2279_v13 = vadd.f32 %v7958_v0, %v2278_v18  ;;  %v2501_v37 = vadd.f32 %v8045_v60, %v2276_v49  ;;  %v2280_v35 = vpop.f32.mrb[211].mxu1 }
 0x631   :  { %5813 = vmatpush3.bf16.msra.mxu0 %v8107_v52 }
 0x632   :  { %v2504_v44 = vadd.f32 %v8051_v56, %v2279_v13  ;;  %5814 = vmatprep.subr.bf16.mxu0 %v6962_v48  ;;  %6537 = vtanh.f32 %v2501_v37 }
 0x634   :  { %6539 = vtanh.f32 %v2504_v44  ;;  %v6534_v22 = vpop.eup %6533 }
 0x635   :  { %v2283_v25 = vpop.f32.mrb[212].mxu1 }
 0x636   :  { %v6536_v36 = vpop.eup %6535  ;;  %v2284_v15 = vadd.f32 %v7958_v0, %v2283_v25  ;;  %v2285_v6 = vpop.f32.mrb[213].mxu1 }
 0x637   :  { %v2286_v8 = vpop.f32.mrb[214].mxu1  ;;  %v8115_v30 = vpack.c.bf16 %v6536_v36, %v6534_v22  ;;  %v5074_v36 = vld [vmem:[%s9205_s5 + $0x30] sm:$0xff]  ;;  %v5075_v6 = vld [vmem:[%s9205_s5 + $0x38] sm:$0xff] }
 0x638   :  { %v2509_v60 = vadd.f32 %v8041_v31, %v2284_v15  ;;  %v2287_v11 = vadd.f32 %v7958_v0, %v2286_v8  ;;  %v2288_v12 = vpop.f32.mrb[215].mxu1  ;;  %v6178_v8 = vpack.c.bf16 %v5075_v6, %v5074_v36 }
 0x639   :  { %5815 = vmatpush3.bf16.msra.mxu0 %v8115_v30 }
 0x63a   :  { %v2512_v56 = vadd.f32 %v8048_v10, %v2287_v11  ;;  %5816 = vmatprep.subr.bf16.mxu0 %v6962_v48  ;;  %6541 = vtanh.f32 %v2509_v60  ;;  %v6357_v60 = vld [vmem:[%s9200_s2 + $0x20] sm:$0xff]  }
 0x63c   :  { %6543 = vtanh.f32 %v2512_v56  ;;  %v6538_v38 = vpop.eup %6537 }
 0x63d   :  { %v2291_v45 = vpop.f32.mrb[216].mxu1 }
 0x63e   :  { %v6540_v17 = vpop.eup %6539  ;;  %v2292_v46 = vadd.f32 %v7958_v0, %v2291_v45  ;;  %v2293_v57 = vpop.f32.mrb[217].mxu1 }
 0x63f   :  { %v2294_v29 = vpop.f32.mrb[218].mxu1  ;;  %v8123_v40 = vpack.c.bf16 %v6540_v17, %v6538_v38 }
 0x640   :  { %v2295_v31 = vadd.f32 %v7958_v0, %v2294_v29  ;;  %v2517_v62 = vadd.f32 %v8059_v9, %v2292_v46  ;;  %v2296_v1 = vpop.f32.mrb[219].mxu1  ;;  %v6358_v29 = vld [vmem:[%s9200_s2 + $0x28] sm:$0xff]  }
 0x641   :  { %5817 = vmatpush3.bf16.msra.mxu0 %v8123_v40 }
 0x642   :  { %v2520_v10 = vadd.f32 %v8066_v55, %v2295_v31  ;;  %5818 = vmatprep.subr.bf16.mxu0 %v6962_v48  ;;  %6545 = vtanh.f32 %v2517_v62 }
 0x644   :  { %6547 = vtanh.f32 %v2520_v10  ;;  %v6542_v53 = vpop.eup %6541 }
 0x645   :  { %v2299_v24 = vpop.f32.mrb[220].mxu1 }
 0x646   :  { %v6544_v58 = vpop.eup %6543  ;;  %v2300_v4 = vadd.f32 %v7958_v0, %v2299_v24  ;;  %v2301_v41 = vpop.f32.mrb[221].mxu1 }
 0x647   :  { %v2302_v49 = vpop.f32.mrb[222].mxu1  ;;  %v8131_v27 = vpack.c.bf16 %v6544_v58, %v6542_v53 }
 0x648   :  { %v2525_v9 = vadd.f32 %v8055_v39, %v2300_v4  ;;  %v2303_v18 = vadd.f32 %v7958_v0, %v2302_v49  ;;  %v2304_v13 = vpop.f32.mrb[223].mxu1  ;;  %v5072_v0 = vld [vmem:[%s9205_s5 + $0x20] sm:$0xff] }
 0x649   :  { %5819 = vmatpush3.bf16.msra.mxu0 %v8131_v27 }
 0x64a   :  { %v2528_v55 = vadd.f32 %v8063_v51, %v2303_v18  ;;  %5820 = vmatprep.subr.bf16.mxu0 %v6962_v48  ;;  %6549 = vtanh.f32 %v2525_v9  ;;  %v5073_v51 = vld [vmem:[%s9205_s5 + $0x28] sm:$0xff] }
 0x64b   :  { %v6175_v15 = vpack.c.bf16 %v5073_v51, %v5072_v0 }
 0x64c   :  { %6551 = vtanh.f32 %v2528_v55  ;;  %v6546_v37 = vpop.eup %6545 }
 0x64e   :  { %v6548_v35 = vpop.eup %6547 }
 0x64f   :  { %v2601_v44 = vpack.c.bf16 %v6548_v35, %v6546_v37 }
 0x651   :  { %5821 = vmatpush3.bf16.msra.mxu0 %v2601_v44 }
 0x652   :  { %5822 = vmatprep.subr.bf16.mxu0 %v6962_v48 }
 0x654   :  { %v6550_v22 = vpop.eup %6549 }
 0x656   :  { %v6552_v25 = vpop.eup %6551 }
 0x657   :  { %v2602_v39 = vpack.c.bf16 %v6552_v25, %v6550_v22 }
 0x659   :  { %5823 = vmatpush3.bf16.msra.mxu0 %v2602_v39 }
 0x65a   :  { %6174 = vmatprep.subr.bf16.mxu0 %v6964_v47 }
 0x65c   :  { %5825 = vmatmul.mubr.bf16.vlgmr.msra.gmra.mrb[176].mxu0 %v7517_v42 }
 0x65d   :  { %5836 = vmatprep.mubr.msk.f32.mxu0 %vm6963_vm1, %v6962_v48  ;;  %6176 = vmatpush3.bf16.msra.mxu0 %v6175_v15 }
 0x65e   :  { %6177 = vmatprep.subr.bf16.mxu0 %v6964_v47 }
 0x661   :  { %6179 = vmatpush3.bf16.msra.mxu0 %v6178_v8 }
 0x662   :  { %5839 = vmatprep.subr.bf16.mxu0 %v6357_v60 }
 0x6f0   :  { %v5320_v11 = vpop.f32.mrb[172].mxu0 }
 0x6f1   :  { %v5321_v12 = vpop.f32.mrb[173].mxu0 }
 0x6f2   :  { %v5322_v56 = vadd.f32 %v5321_v12, %v5320_v11  ;;  %v5323_v38 = vpop.f32.mrb[174].mxu0 }
 0x6f3   :  { %v5324_v45 = vpop.f32.mrb[175].mxu0 }
 0x72f   :  { %v2677_v17 = vpop.f32.mrb[176].mxu0 }
 0x730   :  { %v2678_v46 = vadd.f32 %v5322_v56, %v2677_v17  ;;  %v5826_v57 = vpop.f32.mrb[177].mxu0 }
 0x731   :  { %v2680_v31 = vpop.f32.mrb[178].mxu0 }
 0x732   :  { %v5827_v62 = vpop.f32.mrb[179].mxu0  ;;  %5837 = vmatmul.mubr.msk.f32.vlgmr.msra.gmra.mrb[72].mxu0 %vm322_vm0, %v2678_v46  ;;  %v6819_v31 = vld [vmem:[%s9202_s0 + $0x1c] ss:$12 sps:$4 sm:$0xff]  }
 0x733   :  { %5840 = vmatpush3.bf16.msra.mxu0 %v6357_v60  ;;  %5843 = vmatprep.mubr.msk.bf16.mxu0 %vm322_vm0, %v7973_v32 }
 0x734   :  { %5841 = vmatprep.subr.bf16.mxu0 %v6358_v29 }
 0x737   :  { %5842 = vmatpush3.bf16.msra.mxu0 %v6358_v29  ;;  %v6818_v29 = vld [vmem:[%s9202_s0] ss:$12 sps:$4 sm:$0xff]  }
 0x73a   :  { %5844 = vmatmul.mubr.msk.bf16.vlgmr.msra.gmra.mrb[180].mxu0 %vm322_vm0, %v7970_v33  ;;  %v6817_v33 = vld [vmem:[%s9202_s0 + $0x8] ss:$12 sps:$4 sm:$0xff]  }
 0x73b   :  { %5847 = vmatprep.mubr.msk.bf16.mxu0 %vm322_vm0, %v7980_v20 }
 0x742   :  { %5848 = vmatmul.mubr.msk.bf16.gmra.mrb[184].mxu0 %vm322_vm0, %v7978_v63 }
 0x743   :  { %5851 = vmatprep.mubr.msk.bf16.mxu0 %vm322_vm0, %v7987_v16 }
 0x74a   :  { %5852 = vmatmul.mubr.msk.bf16.gmra.mrb[188].mxu0 %vm322_vm0, %v7985_v34 }
 0x74b   :  { %5855 = vmatprep.mubr.msk.bf16.mxu0 %vm322_vm0, %v7994_v50 }
 0x752   :  { %5856 = vmatmul.mubr.msk.bf16.gmra.mrb[192].mxu0 %vm322_vm0, %v7991_v43 }
 0x753   :  { %5859 = vmatprep.mubr.msk.bf16.mxu0 %vm322_vm0, %v7997_v3 }
 0x75a   :  { %5860 = vmatmul.mubr.msk.bf16.gmra.mrb[196].mxu0 %vm322_vm0, %v8005_v5 }
 0x75b   :  { %5863 = vmatprep.mubr.msk.bf16.mxu0 %vm322_vm0, %v8015_v61 }
 0x762   :  { %5864 = vmatmul.mubr.msk.bf16.gmra.mrb[200].mxu0 %vm322_vm0, %v8029_v59 }
 0x763   :  { %5867 = vmatprep.mubr.msk.bf16.mxu0 %vm322_vm0, %v8043_v54 }
 0x76a   :  { %5868 = vmatmul.mubr.msk.bf16.gmra.mrb[204].mxu0 %vm322_vm0, %v8057_v23 }
 0x76b   :  { %5871 = vmatprep.mubr.msk.bf16.mxu0 %vm322_vm0, %v8071_v7 }
 0x772   :  { %5872 = vmatmul.mubr.msk.bf16.gmra.mrb[208].mxu0 %vm322_vm0, %v8079_v19 }
 0x773   :  { %5875 = vmatprep.mubr.msk.bf16.mxu0 %vm322_vm0, %v8091_v28 }
 0x77a   :  { %5876 = vmatmul.mubr.msk.bf16.gmra.mrb[212].mxu0 %vm322_vm0, %v8099_v2 }
 0x77b   :  { %5879 = vmatprep.mubr.msk.bf16.mxu0 %vm322_vm0, %v8107_v52 }
 0x782   :  { %5880 = vmatmul.mubr.msk.bf16.gmra.mrb[216].mxu0 %vm322_vm0, %v8115_v30 }
 0x783   :  { %5883 = vmatprep.mubr.msk.bf16.mxu0 %vm322_vm0, %v8123_v40 }
 0x78a   :  { %5884 = vmatmul.mubr.msk.bf16.gmra.mrb[220].mxu0 %vm322_vm0, %v8131_v27 }
 0x78b   :  { %5887 = vmatprep.mubr.msk.bf16.mxu0 %vm322_vm0, %v2601_v44 }
 0x792   :  { %5888 = vmatmul.mubr.msk.bf16.gmra.mrb[224].mxu0 %vm322_vm0, %v2602_v39 }
 0x793   :  { %5907 = vmatprep.mubr.bf16.mxu0 %v6817_v33 }
 0x80d   :  { %v5845_v32 = vpop.f32.mrb[180].mxu0 }
 0x80e   :  { %v2885_v63 = vpop.f32.mrb[181].mxu0 }
 0x80f   :  { %v5846_v20 = vpop.f32.mrb[182].mxu0 }
 0x810   :  { %v3077_v34 = vpack.c.bf16 %v5846_v20, %v5845_v32  ;;  %v2888_v16 = vpop.f32.mrb[183].mxu0 }
 0x811   :  { %v3076_v43 = vpack.c.bf16 %v2888_v16, %v2885_v63  ;;  %v6820_v16 = vld [vmem:[%s9202_s0 + $0x18] ss:$12 sps:$4 sm:$0xff]  }
 0x813   :  { %3109 = vmatpush1.bf16.msra.mxu1 %v3076_v43  ;;  %v6821_v43 = vld [vmem:[%s9202_s0 + $0x34] ss:$12 sps:$4 sm:$0xff]  }
 0x814   :  { %3110 = vmatprep.subr.bf16.mxu1 %v6960_v26 }
 0x815   :  { %v5849_v50 = vpop.f32.mrb[184].mxu0 }
 0x816   :  { %v2901_v3 = vpop.f32.mrb[185].mxu0 }
 0x817   :  { %v5850_v5 = vpop.f32.mrb[186].mxu0  ;;  %3111 = vmatpush1.bf16.msra.mxu1 %v3077_v34 }
 0x818   :  { %v3079_v61 = vpack.c.bf16 %v5850_v5, %v5849_v50  ;;  %v2904_v59 = vpop.f32.mrb[187].mxu0  ;;  %3112 = vmatprep.subr.bf16.mxu1 %v6960_v26 }
 0x819   :  { %v3078_v54 = vpack.c.bf16 %v2904_v59, %v2901_v3 }
 0x81b   :  { %3113 = vmatpush1.bf16.msra.mxu1 %v3078_v54 }
 0x81c   :  { %3114 = vmatprep.subr.bf16.mxu1 %v6960_v26 }
 0x81d   :  { %v5853_v23 = vpop.f32.mrb[188].mxu0 }
 0x81e   :  { %v2917_v7 = vpop.f32.mrb[189].mxu0 }
 0x81f   :  { %v5854_v19 = vpop.f32.mrb[190].mxu0  ;;  %3115 = vmatpush1.bf16.msra.mxu1 %v3079_v61 }
 0x820   :  { %v3081_v28 = vpack.c.bf16 %v5854_v19, %v5853_v23  ;;  %v2920_v2 = vpop.f32.mrb[191].mxu0  ;;  %3116 = vmatprep.subr.bf16.mxu1 %v6960_v26  ;;  %v6822_v23 = vld [vmem:[%s9202_s0 + $0x30] ss:$12 sps:$4 sm:$0xff]  }
 0x821   :  { %v3080_v52 = vpack.c.bf16 %v2920_v2, %v2917_v7  ;;  %v6823_v7 = vld [vmem:[%s9202_s0 + $0x4c] ss:$12 sps:$4 sm:$0xff]  }
 0x823   :  { %3117 = vmatpush1.bf16.msra.mxu1 %v3080_v52 }
 0x824   :  { %3118 = vmatprep.subr.bf16.mxu1 %v6960_v26 }
 0x825   :  { %v5857_v30 = vpop.f32.mrb[192].mxu0 }
 0x826   :  { %v2933_v40 = vpop.f32.mrb[193].mxu0 }
 0x827   :  { %v5858_v1 = vpop.f32.mrb[194].mxu0  ;;  %3119 = vmatpush1.bf16.msra.mxu1 %v3081_v28 }
 0x828   :  { %v3083_v10 = vpack.c.bf16 %v5858_v1, %v5857_v30  ;;  %v2936_v53 = vpop.f32.mrb[195].mxu0  ;;  %3120 = vmatprep.subr.bf16.mxu1 %v6960_v26  ;;  %v6824_v1 = vld [vmem:[%s9202_s0 + $0x48] ss:$12 sps:$4 sm:$0xff]  }
 0x829   :  { %v3082_v24 = vpack.c.bf16 %v2936_v53, %v2933_v40  ;;  %v6826_v53 = vld [vmem:[%s9202_s0 + $0x60] ss:$12 sps:$4 sm:$0xff]  }
 0x82b   :  { %3121 = vmatpush1.bf16.msra.mxu1 %v3082_v24  ;;  %v6827_v24 = vld [vmem:[%s9202_s0 + $0x20] ss:$12 sps:$4 sm:$0xff]  }
 0x82c   :  { %3122 = vmatprep.subr.bf16.mxu1 %v6960_v26 }
 0x82d   :  { %v5861_v58 = vpop.f32.mrb[196].mxu0 }
 0x82e   :  { %v2949_v4 = vpop.f32.mrb[197].mxu0 }
 0x82f   :  { %v5862_v41 = vpop.f32.mrb[198].mxu0  ;;  %3123 = vmatpush1.bf16.msra.mxu1 %v3083_v10  ;;  %v6825_v10 = vld [vmem:[%s9202_s0 + $0x64] ss:$12 sps:$4 sm:$0xff]  }
 0x830   :  { %v3085_v49 = vpack.c.bf16 %v5862_v41, %v5861_v58  ;;  %v2952_v27 = vpop.f32.mrb[199].mxu0  ;;  %3124 = vmatprep.subr.bf16.mxu1 %v6960_v26  ;;  %v6828_v58 = vld [vmem:[%s9202_s0 + $0x7c] ss:$12 sps:$4 sm:$0xff]   ;;  %v6830_v41 = vld [vmem:[%s9202_s0 + $0x78] ss:$12 sps:$4 sm:$0xff]  }
 0x831   :  { %v3084_v9 = vpack.c.bf16 %v2952_v27, %v2949_v4  ;;  %v6829_v4 = vld [vmem:[%s9202_s0 + $0x38] ss:$12 sps:$4 sm:$0xff]   ;;  %v6832_v27 = vld [vmem:[%s9202_s0 + $0x94] ss:$12 sps:$4 sm:$0xff]  }
 0x833   :  { %3125 = vmatpush1.bf16.msra.mxu1 %v3084_v9  ;;  %v6833_v9 = vld [vmem:[%s9202_s0 + $0x68] ss:$12 sps:$4 sm:$0xff]  }
 0x834   :  { %3126 = vmatprep.subr.bf16.mxu1 %v6960_v26 }
 0x835   :  { %v5865_v18 = vpop.f32.mrb[200].mxu0 }
 0x836   :  { %v2965_v13 = vpop.f32.mrb[201].mxu0 }
 0x837   :  { %v5866_v55 = vpop.f32.mrb[202].mxu0  ;;  %3127 = vmatpush1.bf16.msra.mxu1 %v3085_v49  ;;  %v6831_v49 = vld [vmem:[%s9202_s0 + $0x50] ss:$12 sps:$4 sm:$0xff]  }
 0x838   :  { %v3087_v37 = vpack.c.bf16 %v5866_v55, %v5865_v18  ;;  %v2968_v35 = vpop.f32.mrb[203].mxu0  ;;  %3128 = vmatprep.subr.bf16.mxu1 %v6960_v26  ;;  %v6834_v18 = vld [vmem:[%s9202_s0 + $0x90] ss:$12 sps:$4 sm:$0xff]   ;;  %v6836_v55 = vld [vmem:[%s9202_s0 + $0xac] ss:$12 sps:$4 sm:$0xff]  }
 0x839   :  { %v3086_v44 = vpack.c.bf16 %v2968_v35, %v2965_v13  ;;  %v6835_v13 = vld [vmem:[%s9202_s0 + $0x80] ss:$12 sps:$4 sm:$0xff]   ;;  %v6838_v35 = vld [vmem:[%s9202_s0 + $0xa8] ss:$12 sps:$4 sm:$0xff]  }
 0x83b   :  { %3129 = vmatpush1.bf16.msra.mxu1 %v3086_v44  ;;  %v6839_v44 = vld [vmem:[%s9202_s0 + $0xb0] ss:$12 sps:$4 sm:$0xff]  }
 0x83c   :  { %3130 = vmatprep.subr.bf16.mxu1 %v6960_v26 }
 0x83d   :  { %v5869_v22 = vpop.f32.mrb[204].mxu0 }
 0x83e   :  { %v2981_v25 = vpop.f32.mrb[205].mxu0 }
 0x83f   :  { %v5870_v39 = vpop.f32.mrb[206].mxu0  ;;  %3131 = vmatpush1.bf16.msra.mxu1 %v3087_v37  ;;  %v6837_v37 = vld [vmem:[%s9202_s0 + $0x98] ss:$12 sps:$4 sm:$0xff]  }
 0x840   :  { %v3089_v0 = vpack.c.bf16 %v5870_v39, %v5869_v22  ;;  %v2984_v51 = vpop.f32.mrb[207].mxu0  ;;  %3132 = vmatprep.subr.bf16.mxu1 %v6960_v26  ;;  %v6840_v22 = vld [vmem:[%s9202_s0 + $0xc4] ss:$12 sps:$4 sm:$0xff]   ;;  %v6842_v39 = vld [vmem:[%s9202_s0 + $0xc0] ss:$12 sps:$4 sm:$0xff]  }
 0x841   :  { %v3088_v36 = vpack.c.bf16 %v2984_v51, %v2981_v25  ;;  %v6841_v25 = vld [vmem:[%s9202_s0 + $0xc8] ss:$12 sps:$4 sm:$0xff]  }
 0x842   :  { %v6844_v51 = vld [vmem:[%s9202_s0 + $0xdc] ss:$12 sps:$4 sm:$0xff]  }
 0x843   :  { %3133 = vmatpush1.bf16.msra.mxu1 %v3088_v36  ;;  %v6845_v36 = vld [vmem:[%s9202_s0 + $0xf8] ss:$12 sps:$4 sm:$0xff]  }
 0x844   :  { %3134 = vmatprep.subr.bf16.mxu1 %v6960_v26 }
 0x845   :  { %v5873_v15 = vpop.f32.mrb[208].mxu0 }
 0x846   :  { %v2997_v6 = vpop.f32.mrb[209].mxu0 }
 0x847   :  { %v5874_v8 = vpop.f32.mrb[210].mxu0  ;;  %3135 = vmatpush1.bf16.msra.mxu1 %v3089_v0  ;;  %v6843_v0 = vld [vmem:[%s9202_s0 + $0xe0] ss:$12 sps:$4 sm:$0xff]  }
 0x848   :  { %v3091_v60 = vpack.c.bf16 %v5874_v8, %v5873_v15  ;;  %v3000_v11 = vpop.f32.mrb[211].mxu0  ;;  %3136 = vmatprep.subr.bf16.mxu1 %v6960_v26  ;;  %v6846_v15 = vld [vmem:[%s9202_s0 + $0xd8] ss:$12 sps:$4 sm:$0xff]   ;;  %v6848_v8 = vld [vmem:[%s9202_s0 + $0x110] ss:$12 sps:$4 sm:$0xff]  }
 0x849   :  { %v3090_v12 = vpack.c.bf16 %v3000_v11, %v2997_v6  ;;  %v6847_v6 = vld [vmem:[%s9202_s0 + $0xf4] ss:$12 sps:$4 sm:$0xff]   ;;  %v6850_v11 = vld [vmem:[%s9202_s0 + $0xf0] ss:$12 sps:$4 sm:$0xff]  }
 0x84b   :  { %3137 = vmatpush1.bf16.msra.mxu1 %v3090_v12  ;;  %v6851_v12 = vld [vmem:[%s9202_s0 + $0x10c] ss:$12 sps:$4 sm:$0xff]  }
 0x84c   :  { %3138 = vmatprep.subr.bf16.mxu1 %v6960_v26 }
 0x84d   :  { %v5877_v56 = vpop.f32.mrb[212].mxu0 }
 0x84e   :  { %v3013_v38 = vpop.f32.mrb[213].mxu0 }
 0x84f   :  { %v5878_v45 = vpop.f32.mrb[214].mxu0  ;;  %3139 = vmatpush1.bf16.msra.mxu1 %v3091_v60  ;;  %v6849_v60 = vld [vmem:[%s9202_s0 + $0x128] ss:$12 sps:$4 sm:$0xff]  }
 0x850   :  { %v3093_v17 = vpack.c.bf16 %v5878_v45, %v5877_v56  ;;  %v3016_v46 = vpop.f32.mrb[215].mxu0  ;;  %4135 = vmatprep.subr.bf16.mxu1 %v6960_v26  ;;  %v6852_v56 = vld [vmem:[%s9202_s0 + $0x140] ss:$12 sps:$4 sm:$0xff]   ;;  %v6854_v45 = vld [vmem:[%s9202_s0 + $0x108] ss:$12 sps:$4 sm:$0xff]  }
 0x851   :  { %v3092_v57 = vpack.c.bf16 %v3016_v46, %v3013_v38  ;;  %v6853_v38 = vld [vmem:[%s9202_s0 + $0x158] ss:$12 sps:$4 sm:$0xff]   ;;  %v6856_v46 = vld [vmem:[%s9202_s0 + $0x170] ss:$12 sps:$4 sm:$0xff]  }
 0x852   :  { %3141 = vmatmul.mubr.bf16.vlgmr.msra.gmra.mrb[224].mxu1 %v6818_v29  ;;  %v6858_v29 = vld [vmem:[%s9202_s0 + $0x120] ss:$12 sps:$4 sm:$0xff]  }
 0x853   :  { %5891 = vmatprep.subr.bf16.mxu0 %v3092_v57  ;;  %3148 = vmatprep.mubr.bf16.mxu1 %v6819_v31  ;;  %v6859_v31 = vld [vmem:[%s9202_s0 + $0x13c] ss:$12 sps:$4 sm:$0xff]  }
 0x854   :  { %5892 = vmatpush3.bf16.msra.mxu0 %v3092_v57  ;;  %v6857_v57 = vld [vmem:[%s9202_s0 + $0x188] ss:$12 sps:$4 sm:$0xff]  }
 0x855   :  { %v5881_v62 = vpop.f32.mrb[216].mxu0  ;;  %5893 = vmatprep.subr.bf16.mxu0 %v3093_v17 }
 0x856   :  { %v3029_v33 = vpop.f32.mrb[217].mxu0 }
 0x857   :  { %v5882_v32 = vpop.f32.mrb[218].mxu0 }
 0x858   :  { %v3095_v63 = vpack.c.bf16 %v5882_v32, %v5881_v62  ;;  %v3032_v20 = vpop.f32.mrb[219].mxu0  ;;  %5894 = vmatpush3.bf16.msra.mxu0 %v3093_v17  ;;  %v6855_v17 = vld [vmem:[%s9202_s0 + $0x124] ss:$12 sps:$4 sm:$0xff]   ;;  %v6860_v62 = vld [vmem:[%s9202_s0 + $0x1a0] ss:$12 sps:$4 sm:$0xff]  }
 0x859   :  { %v3094_v34 = vpack.c.bf16 %v3032_v20, %v3029_v33  ;;  %v6861_v33 = vld [vmem:[%s9202_s0 + $0x1b8] ss:$12 sps:$4 sm:$0xff]   ;;  %v6864_v20 = vld [vmem:[%s9202_s0 + $0x1d0] ss:$12 sps:$4 sm:$0xff]  }
 0x85a   :  { %3149 = vmatmul.mubr.bf16.gmra.mrb[228].mxu1 %v6820_v16  ;;  %v6862_v32 = vld [vmem:[%s9202_s0 + $0x138] ss:$12 sps:$4 sm:$0xff]   ;;  %v6866_v16 = vld [vmem:[%s9202_s0 + $0x150] ss:$12 sps:$4 sm:$0xff]  }
 0x85b   :  { %5895 = vmatprep.subr.bf16.mxu0 %v3094_v34  ;;  %3156 = vmatprep.mubr.bf16.mxu1 %v6821_v43  ;;  %v6867_v43 = vld [vmem:[%s9202_s0 + $0x16c] ss:$12 sps:$4 sm:$0xff]  }
 0x85c   :  { %5896 = vmatpush3.bf16.msra.mxu0 %v3094_v34  ;;  %v6865_v34 = vld [vmem:[%s9202_s0 + $0x1e8] ss:$12 sps:$4 sm:$0xff]  }
 0x85d   :  { %v5885_v50 = vpop.f32.mrb[220].mxu0  ;;  %5897 = vmatprep.subr.bf16.mxu0 %v3095_v63 }
 0x85e   :  { %v3045_v3 = vpop.f32.mrb[221].mxu0 }
 0x85f   :  { %v5886_v5 = vpop.f32.mrb[222].mxu0 }
 0x860   :  { %v3097_v61 = vpack.c.bf16 %v5886_v5, %v5885_v50  ;;  %v3048_v59 = vpop.f32.mrb[223].mxu0  ;;  %5898 = vmatpush3.bf16.msra.mxu0 %v3095_v63  ;;  %v6863_v63 = vld [vmem:[%s9202_s0 + $0x154] ss:$12 sps:$4 sm:$0xff]  }
 0x861   :  { %v3096_v54 = vpack.c.bf16 %v3048_v59, %v3045_v3  ;;  %v6868_v50 = vld [vmem:[%s9202_s0 + $0x200] ss:$12 sps:$4 sm:$0xff]   ;;  %v6869_v3 = vld [vmem:[%s9202_s0 + $0x218] ss:$12 sps:$4 sm:$0xff]   ;;  %v6870_v5 = vld [vmem:[%s9202_s0 + $0x168] ss:$12 sps:$4 sm:$0xff]  }
 0x862   :  { %3157 = vmatmul.mubr.bf16.gmra.mrb[232].mxu1 %v6822_v23  ;;  %v6872_v59 = vld [vmem:[%s9202_s0 + $0x230] ss:$12 sps:$4 sm:$0xff]  }
 0x863   :  { %5899 = vmatprep.subr.bf16.mxu0 %v3096_v54  ;;  %3164 = vmatprep.mubr.bf16.mxu1 %v6823_v7  ;;  %v6874_v23 = vld [vmem:[%s9202_s0 + $0x19c] ss:$12 sps:$4 sm:$0xff]   ;;  %v6875_v7 = vld [vmem:[%s9202_s0 + $0x198] ss:$12 sps:$4 sm:$0xff]  }
 0x864   :  { %5900 = vmatpush3.bf16.msra.mxu0 %v3096_v54  ;;  %v6873_v54 = vld [vmem:[%s9202_s0 + $0x180] ss:$12 sps:$4 sm:$0xff]  }
 0x865   :  { %v5889_v19 = vpop.f32.mrb[224].mxu0  ;;  %5901 = vmatprep.subr.bf16.mxu0 %v3097_v61 }
 0x866   :  { %v3061_v28 = vpop.f32.mrb[225].mxu0 }
 0x867   :  { %v5890_v2 = vpop.f32.mrb[226].mxu0 }
 0x868   :  { %v3099_v52 = vpack.c.bf16 %v5890_v2, %v5889_v19  ;;  %v3064_v30 = vpop.f32.mrb[227].mxu0  ;;  %5902 = vmatpush3.bf16.msra.mxu0 %v3097_v61  ;;  %v6871_v61 = vld [vmem:[%s9202_s0 + $0x184] ss:$12 sps:$4 sm:$0xff]   ;;  %v6876_v19 = vld [vmem:[%s9202_s0 + $0x1b4] ss:$12 sps:$4 sm:$0xff]  }
 0x869   :  { %v3098_v40 = vpack.c.bf16 %v3064_v30, %v3061_v28  ;;  %v6877_v28 = vld [vmem:[%s9202_s0 + $0x1b0] ss:$12 sps:$4 sm:$0xff]   ;;  %v6878_v2 = vld [vmem:[%s9202_s0 + $0x1cc] ss:$12 sps:$4 sm:$0xff]  }
 0x86a   :  { %3165 = vmatmul.mubr.bf16.gmra.mrb[236].mxu1 %v6824_v1  ;;  %v6880_v30 = vld [vmem:[%s9202_s0 + $0x1e4] ss:$12 sps:$4 sm:$0xff]   ;;  %v6882_v1 = vld [vmem:[%s9202_s0 + $0x1fc] ss:$12 sps:$4 sm:$0xff]  }
 0x86b   :  { %5903 = vmatprep.subr.bf16.mxu0 %v3098_v40  ;;  %3172 = vmatprep.mubr.bf16.mxu1 %v6825_v10  ;;  %v6883_v10 = vld [vmem:[%s9202_s0 + $0x1f8] ss:$12 sps:$4 sm:$0xff]  }
 0x86c   :  { %5904 = vmatpush3.bf16.msra.mxu0 %v3098_v40  ;;  %v6881_v40 = vld [vmem:[%s9202_s0 + $0x1e0] ss:$12 sps:$4 sm:$0xff]  }
 0x86d   :  { %5905 = vmatprep.subr.bf16.mxu0 %v3099_v52 }
 0x870   :  { %5906 = vmatpush3.bf16.msra.mxu0 %v3099_v52  ;;  %v6879_v52 = vld [vmem:[%s9202_s0 + $0x1c8] ss:$12 sps:$4 sm:$0xff]  }
 0x872   :  { %3173 = vmatmul.mubr.bf16.gmra.mrb[240].mxu1 %v6826_v53  ;;  %v6884_v53 = vld [vmem:[%s9202_s0 + $0x214] ss:$12 sps:$4 sm:$0xff]  }
 0x873   :  { %5908 = vmatmul.mubr.bf16.vlgmr.msra.gmra.mrb[228].mxu0 %v6827_v24  ;;  %3180 = vmatprep.mubr.bf16.mxu1 %v6828_v58  ;;  %v6885_v24 = vld [vmem:[%s9202_s0 + $0x210] ss:$12 sps:$4 sm:$0xff]   ;;  %v6886_v58 = vld [vmem:[%s9202_s0 + $0x22c] ss:$12 sps:$4 sm:$0xff]  }
 0x874   :  { %5911 = vmatprep.mubr.bf16.mxu0 %v6829_v4  ;;  %v6887_v4 = vld [vmem:[%s9202_s0 + $0x228] ss:$12 sps:$4 sm:$0xff]  }
 0x87a   :  { %3181 = vmatmul.mubr.bf16.gmra.mrb[244].mxu1 %v6830_v41  ;;  %v6888_v41 = vld [vmem:[%s9202_s0 + $0x4] ss:$12 sps:$4 sm:$0xff]  }
 0x87b   :  { %5912 = vmatmul.mubr.bf16.gmra.mrb[232].mxu0 %v6831_v49  ;;  %3188 = vmatprep.mubr.bf16.mxu1 %v6832_v27 }
 0x87c   :  { %5915 = vmatprep.mubr.bf16.mxu0 %v6833_v9 }
 0x882   :  { %3189 = vmatmul.mubr.bf16.gmra.mrb[248].mxu1 %v6834_v18 }
 0x883   :  { %5916 = vmatmul.mubr.bf16.gmra.mrb[236].mxu0 %v6835_v13  ;;  %3196 = vmatprep.mubr.bf16.mxu1 %v6836_v55 }
 0x884   :  { %5919 = vmatprep.mubr.bf16.mxu0 %v6837_v37 }
 0x88a   :  { %3197 = vmatmul.mubr.bf16.gmra.mrb[252].mxu1 %v6838_v35 }
 0x88b   :  { %5920 = vmatmul.mubr.bf16.gmra.mrb[240].mxu0 %v6839_v44  ;;  %3204 = vmatprep.mubr.bf16.mxu1 %v6840_v22 }
 0x88c   :  { %5923 = vmatprep.mubr.bf16.mxu0 %v6841_v25 }
 0x892   :  { %3205 = vmatmul.mubr.bf16.gmra.mrb[0].mxu1 %v6842_v39 }
 0x893   :  { %5924 = vmatmul.mubr.bf16.gmra.mrb[244].mxu0 %v6843_v0  ;;  %3212 = vmatprep.mubr.bf16.mxu1 %v6844_v51 }
 0x894   :  { %5927 = vmatprep.mubr.bf16.mxu0 %v6845_v36 }
 0x89a   :  { %3213 = vmatmul.mubr.bf16.gmra.mrb[4].mxu1 %v6846_v15 }
 0x89b   :  { %3220 = vmatprep.mubr.bf16.mxu1 %v6847_v6  ;;  %5928 = vmatmul.mubr.bf16.gmra.mrb[248].mxu0 %v6848_v8  ;;  %v8445_v6 = vld [vmem:[%s9203_s3 + $0x2] ss:$0 sm:$0xff] }
 0x89c   :  { %5931 = vmatprep.mubr.bf16.mxu0 %v6849_v60 }
 0x8a2   :  { %3221 = vmatmul.mubr.bf16.gmra.mrb[8].mxu1 %v6850_v11 }
 0x8a3   :  { %3228 = vmatprep.mubr.bf16.mxu1 %v6851_v12  ;;  %5932 = vmatmul.mubr.bf16.gmra.mrb[252].mxu0 %v6852_v56 }
 0x8a4   :  { %5935 = vmatprep.mubr.bf16.mxu0 %v6853_v38 }
 0x8aa   :  { %3229 = vmatmul.mubr.bf16.gmra.mrb[12].mxu1 %v6854_v45 }
 0x8ab   :  { %3236 = vmatprep.mubr.bf16.mxu1 %v6855_v17  ;;  %5936 = vmatmul.mubr.bf16.gmra.mrb[0].mxu0 %v6856_v46 }
 0x8ac   :  { %5939 = vmatprep.mubr.bf16.mxu0 %v6857_v57 }
 0x8b2   :  { %3237 = vmatmul.mubr.bf16.gmra.mrb[16].mxu1 %v6858_v29 }
 0x8b3   :  { %3244 = vmatprep.mubr.bf16.mxu1 %v6859_v31  ;;  %5940 = vmatmul.mubr.bf16.gmra.mrb[4].mxu0 %v6860_v62 }
 0x8b4   :  { %5943 = vmatprep.mubr.bf16.mxu0 %v6861_v33 }
 0x8ba   :  { %3245 = vmatmul.mubr.bf16.gmra.mrb[20].mxu1 %v6862_v32 }
 0x8bb   :  { %3252 = vmatprep.mubr.bf16.mxu1 %v6863_v63  ;;  %5944 = vmatmul.mubr.bf16.gmra.mrb[8].mxu0 %v6864_v20 }
 0x8bc   :  { %5947 = vmatprep.mubr.bf16.mxu0 %v6865_v34 }
 0x8c2   :  { %3253 = vmatmul.mubr.bf16.gmra.mrb[24].mxu1 %v6866_v16 }
 0x8c3   :  { %3260 = vmatprep.mubr.bf16.mxu1 %v6867_v43  ;;  %5948 = vmatmul.mubr.bf16.gmra.mrb[12].mxu0 %v6868_v50 }
 0x8c4   :  { %5951 = vmatprep.mubr.bf16.mxu0 %v6869_v3 }
 0x8ca   :  { %3261 = vmatmul.mubr.bf16.gmra.mrb[28].mxu1 %v6870_v5 }
 0x8cb   :  { %3268 = vmatprep.mubr.bf16.mxu1 %v6871_v61  ;;  %5952 = vmatmul.mubr.bf16.gmra.mrb[16].mxu0 %v6872_v59 }
 0x8cc   :  { %3662 = vmatprep.mubr.bf16.mxu0 %v7422_v21 }
 0x8d2   :  { %3269 = vmatmul.mubr.bf16.gmra.mrb[32].mxu1 %v6873_v54 }
 0x8d3   :  { %3276 = vmatprep.mubr.bf16.mxu1 %v6874_v23 }
 0x8da   :  { %3277 = vmatmul.mubr.bf16.gmra.mrb[36].mxu1 %v6875_v7 }
 0x8db   :  { %3284 = vmatprep.mubr.bf16.mxu1 %v6876_v19 }
 0x8e2   :  { %3285 = vmatmul.mubr.bf16.gmra.mrb[40].mxu1 %v6877_v28 }
 0x8e3   :  { %3292 = vmatprep.mubr.bf16.mxu1 %v6878_v2 }
 0x8ea   :  { %3293 = vmatmul.mubr.bf16.gmra.mrb[44].mxu1 %v6879_v52 }
 0x8eb   :  { %3300 = vmatprep.mubr.bf16.mxu1 %v6880_v30 }
 0x8f2   :  { %3301 = vmatmul.mubr.bf16.gmra.mrb[48].mxu1 %v6881_v40 }
 0x8f3   :  { %3308 = vmatprep.mubr.bf16.mxu1 %v6882_v1 }
 0x8fa   :  { %3309 = vmatmul.mubr.bf16.gmra.mrb[52].mxu1 %v6883_v10 }
 0x8fb   :  { %3316 = vmatprep.mubr.bf16.mxu1 %v6884_v53 }
 0x902   :  { %3317 = vmatmul.mubr.bf16.gmra.mrb[56].mxu1 %v6885_v24 }
 0x903   :  { %3324 = vmatprep.mubr.bf16.mxu1 %v6886_v58 }
 0x90a   :  { %3325 = vmatmul.mubr.bf16.gmra.mrb[60].mxu1 %v6887_v4 }
 0x90b   :  { %4167 = vmatprep.mubr.bf16.mxu1 %v6888_v41 }
 0x925   :  { %v3142_v49 = vpop.f32.mrb[224].mxu1 }
 0x926   :  { %v3144_v27 = vpop.f32.mrb[225].mxu1  ;;  %v3143_v11 = vadd.f32 %v8445_v6, %v3142_v49 }
 0x927   :  { %v3145_v9 = vpop.f32.mrb[226].mxu1 }
 0x928   :  { %v3147_v18 = vpop.f32.mrb[227].mxu1  ;;  %v3146_v57 = vadd.f32 %v8445_v6, %v3145_v9 }
 0x92d   :  { %v3150_v13 = vpop.f32.mrb[228].mxu1 }
 0x92e   :  { %v3152_v55 = vpop.f32.mrb[229].mxu1  ;;  %v3151_v8 = vadd.f32 %v8445_v6, %v3150_v13 }
 0x92f   :  { %v3153_v37 = vpop.f32.mrb[230].mxu1 }
 0x930   :  { %v3155_v35 = vpop.f32.mrb[231].mxu1  ;;  %v3154_v38 = vadd.f32 %v8445_v6, %v3153_v37 }
 0x935   :  { %v3158_v44 = vpop.f32.mrb[232].mxu1 }
 0x936   :  { %v3160_v22 = vpop.f32.mrb[233].mxu1  ;;  %v3159_v16 = vadd.f32 %v8445_v6, %v3158_v44 }
 0x937   :  { %v3161_v25 = vpop.f32.mrb[234].mxu1 }
 0x938   :  { %v3163_v39 = vpop.f32.mrb[235].mxu1  ;;  %v3162_v54 = vadd.f32 %v8445_v6, %v3161_v25 }
 0x93d   :  { %v3166_v0 = vpop.f32.mrb[236].mxu1 }
 0x93e   :  { %v3168_v51 = vpop.f32.mrb[237].mxu1  ;;  %v3167_v20 = vadd.f32 %v8445_v6, %v3166_v0 }
 0x93f   :  { %v3169_v36 = vpop.f32.mrb[238].mxu1 }
 0x940   :  { %v3171_v15 = vpop.f32.mrb[239].mxu1  ;;  %v3170_v3 = vadd.f32 %v8445_v6, %v3169_v36 }
 0x945   :  { %v3174_v60 = vpop.f32.mrb[240].mxu1 }
 0x946   :  { %v3176_v12 = vpop.f32.mrb[241].mxu1  ;;  %v5909_v56 = vpop.f32.mrb[228].mxu0  ;;  %v3175_v58 = vadd.f32 %v8445_v6, %v3174_v60 }
 0x947   :  { %v3376_v45 = vadd.f32 %v5909_v56, %v3151_v8  ;;  %v3177_v17 = vpop.f32.mrb[242].mxu1  ;;  %v3367_v46 = vpop.f32.mrb[229].mxu0 }
 0x948   :  { %v3368_v29 = vadd.f32 %v3367_v46, %v3143_v11  ;;  %v3179_v31 = vpop.f32.mrb[243].mxu1  ;;  %v5910_v62 = vpop.f32.mrb[230].mxu0  ;;  %v3178_v37 = vadd.f32 %v8445_v6, %v3177_v17 }
 0x949   :  { %6553 = vtanh.f32 %v3376_v45  ;;  %v3379_v33 = vadd.f32 %v5910_v62, %v3154_v38  ;;  %v3370_v32 = vpop.f32.mrb[231].mxu0 }
 0x94a   :  { %6555 = vtanh.f32 %v3368_v29  ;;  %v3371_v63 = vadd.f32 %v3370_v32, %v3146_v57 }
 0x94b   :  { %6557 = vtanh.f32 %v3379_v33 }
 0x94c   :  { %6559 = vtanh.f32 %v3371_v63 }
 0x94d   :  { %v3182_v34 = vpop.f32.mrb[244].mxu1 }
 0x94e   :  { %v3184_v43 = vpop.f32.mrb[245].mxu1  ;;  %v5913_v50 = vpop.f32.mrb[232].mxu0  ;;  %v3183_v10 = vadd.f32 %v8445_v6, %v3182_v34 }
 0x94f   :  { %v3392_v5 = vadd.f32 %v5913_v50, %v3167_v20  ;;  %v3185_v61 = vpop.f32.mrb[246].mxu1  ;;  %v3383_v59 = vpop.f32.mrb[233].mxu0 }
 0x950   :  { %v3384_v23 = vadd.f32 %v3383_v59, %v3159_v16  ;;  %v3187_v7 = vpop.f32.mrb[247].mxu1  ;;  %v5914_v19 = vpop.f32.mrb[234].mxu0  ;;  %v3186_v27 = vadd.f32 %v8445_v6, %v3185_v61 }
 0x951   :  { %6561 = vtanh.f32 %v3392_v5  ;;  %v3395_v28 = vadd.f32 %v5914_v19, %v3170_v3  ;;  %v3386_v2 = vpop.f32.mrb[235].mxu0 }
 0x952   :  { %6563 = vtanh.f32 %v3384_v23  ;;  %v3387_v52 = vadd.f32 %v3386_v2, %v3162_v54 }
 0x953   :  { %v6554_v30 = vpop.eup %6553  ;;  %6565 = vtanh.f32 %v3395_v28 }
 0x954   :  { %v6556_v40 = vpop.eup %6555  ;;  %6567 = vtanh.f32 %v3387_v52 }
 0x955   :  { %v6558_v1 = vpop.eup %6557  ;;  %v3190_v53 = vpop.f32.mrb[248].mxu1 }
 0x956   :  { %v6560_v24 = vpop.eup %6559  ;;  %v3192_v4 = vpop.f32.mrb[249].mxu1  ;;  %v8457_v49 = vpack.c.bf16 %v6558_v1, %v6554_v30  ;;  %v3191_v11 = vadd.f32 %v8445_v6, %v3190_v53 }
 0x957   :  { %v5917_v41 = vpop.f32.mrb[236].mxu0  ;;  %v3193_v18 = vpop.f32.mrb[250].mxu1  ;;  %v8460_v55 = vpack.c.bf16 %v6560_v24, %v6556_v40 }
 0x958   :  { %v3408_v9 = vadd.f32 %v5917_v41, %v3183_v10  ;;  %v3399_v13 = vpop.f32.mrb[237].mxu0  ;;  %v3195_v44 = vpop.f32.mrb[251].mxu1  ;;  %v3194_v29 = vadd.f32 %v8445_v6, %v3193_v18 }
 0x959   :  { %v3400_v35 = vadd.f32 %v3399_v13, %v3175_v58  ;;  %v5918_v22 = vpop.f32.mrb[238].mxu0 }
 0x95a   :  { %6569 = vtanh.f32 %v3408_v9  ;;  %v3411_v25 = vadd.f32 %v5918_v22, %v3186_v27  ;;  %v3402_v39 = vpop.f32.mrb[239].mxu0 }
 0x95b   :  { %6571 = vtanh.f32 %v3400_v35  ;;  %v3403_v0 = vadd.f32 %v3402_v39, %v3178_v37  ;;  %v6562_v51 = vpop.eup %6561 }
 0x95c   :  { %6573 = vtanh.f32 %v3411_v25  ;;  %v6564_v36 = vpop.eup %6563 }
 0x95d   :  { %6575 = vtanh.f32 %v3403_v0  ;;  %v6566_v15 = vpop.eup %6565  ;;  %v3198_v8 = vpop.f32.mrb[252].mxu1 }
 0x95e   :  { %v6568_v60 = vpop.eup %6567  ;;  %v3199_v12 = vadd.f32 %v8445_v6, %v3198_v8  ;;  %v3200_v56 = vpop.f32.mrb[253].mxu1  ;;  %v8465_v45 = vpack.c.bf16 %v6566_v15, %v6562_v51 }
 0x95f   :  { %v5921_v38 = vpop.f32.mrb[240].mxu0  ;;  %v3201_v17 = vpop.f32.mrb[254].mxu1  ;;  %v8467_v57 = vpack.c.bf16 %v6568_v60, %v6564_v36 }
 0x960   :  { %v3415_v46 = vpop.f32.mrb[241].mxu0  ;;  %v3424_v31 = vadd.f32 %v5921_v38, %v3199_v12  ;;  %v3202_v62 = vadd.f32 %v8445_v6, %v3201_v17  ;;  %v3203_v32 = vpop.f32.mrb[255].mxu1 }
 0x961   :  { %v3416_v33 = vadd.f32 %v3415_v46, %v3191_v11  ;;  %v5922_v63 = vpop.f32.mrb[242].mxu0 }
 0x962   :  { %v3418_v20 = vpop.f32.mrb[243].mxu0  ;;  %6577 = vtanh.f32 %v3424_v31  ;;  %v3427_v34 = vadd.f32 %v5922_v63, %v3202_v62 }
 0x963   :  { %v3419_v16 = vadd.f32 %v3418_v20, %v3194_v29  ;;  %6579 = vtanh.f32 %v3416_v33 }
 0x964   :  { %v6570_v43 = vpop.eup %6569  ;;  %6581 = vtanh.f32 %v3427_v34 }
 0x965   :  { %v6572_v50 = vpop.eup %6571  ;;  %6583 = vtanh.f32 %v3419_v16  ;;  %v3206_v5 = vpop.f32.mrb[0].mxu1 }
 0x966   :  { %v6574_v3 = vpop.eup %6573  ;;  %v3207_v59 = vadd.f32 %v8445_v6, %v3206_v5  ;;  %v3208_v54 = vpop.f32.mrb[1].mxu1 }
 0x967   :  { %v6576_v61 = vpop.eup %6575  ;;  %v5925_v23 = vpop.f32.mrb[244].mxu0  ;;  %v8472_v7 = vpack.c.bf16 %v6574_v3, %v6570_v43 }
 0x968   :  { %v3209_v19 = vpop.f32.mrb[2].mxu1  ;;  %v3431_v28 = vpop.f32.mrb[245].mxu0  ;;  %v8474_v2 = vpack.c.bf16 %v6576_v61, %v6572_v50 }
 0x969   :  { %v3210_v52 = vadd.f32 %v8445_v6, %v3209_v19  ;;  %v3432_v30 = vadd.f32 %v3431_v28, %v3207_v59  ;;  %v3211_v40 = vpop.f32.mrb[3].mxu1  ;;  %v5926_v1 = vpop.f32.mrb[246].mxu0 }
 0x96a   :  { %v3434_v10 = vpop.f32.mrb[247].mxu0 }
 0x96b   :  { %v3435_v53 = vadd.f32 %v3434_v10, %v3210_v52  ;;  %6585 = vtanh.f32 %v3432_v30 }
 0x96c   :  { %v6578_v24 = vpop.eup %6577 }
 0x96d   :  { %6587 = vtanh.f32 %v3435_v53  ;;  %v6580_v58 = vpop.eup %6579  ;;  %v3214_v4 = vpop.f32.mrb[4].mxu1 }
 0x96e   :  { %v6582_v41 = vpop.eup %6581  ;;  %v3215_v27 = vadd.f32 %v8445_v6, %v3214_v4  ;;  %v3216_v9 = vpop.f32.mrb[5].mxu1 }
 0x96f   :  { %v5929_v18 = vpop.f32.mrb[248].mxu0  ;;  %v6584_v13 = vpop.eup %6583  ;;  %v8478_v44 = vpack.c.bf16 %v6582_v41, %v6578_v24 }
 0x970   :  { %v3217_v37 = vpop.f32.mrb[6].mxu1  ;;  %v3447_v35 = vpop.f32.mrb[249].mxu0  ;;  %v3440_v22 = vadd.f32 %v5925_v23, %v3215_v27  ;;  %v8481_v51 = vpack.c.bf16 %v6584_v13, %v6580_v58 }
 0x971   :  { %v3218_v25 = vadd.f32 %v8445_v6, %v3217_v37  ;;  %v3219_v39 = vpop.f32.mrb[7].mxu1  ;;  %v5930_v0 = vpop.f32.mrb[250].mxu0 }
 0x972   :  { %v3450_v36 = vpop.f32.mrb[251].mxu0  ;;  %6589 = vtanh.f32 %v3440_v22 }
 0x973   :  { %v3443_v15 = vadd.f32 %v5926_v1, %v3218_v25 }
 0x975   :  { %6591 = vtanh.f32 %v3443_v15  ;;  %v6586_v8 = vpop.eup %6585  ;;  %v3222_v60 = vpop.f32.mrb[8].mxu1 }
 0x976   :  { %v3223_v12 = vadd.f32 %v8445_v6, %v3222_v60  ;;  %v3224_v56 = vpop.f32.mrb[9].mxu1  ;;  %v5933_v38 = vpop.f32.mrb[252].mxu0 }
 0x977   :  { %v6588_v11 = vpop.eup %6587  ;;  %v3225_v17 = vpop.f32.mrb[10].mxu1 }
 0x978   :  { %v8484_v46 = vpack.c.bf16 %v6588_v11, %v6586_v8  ;;  %v3463_v29 = vpop.f32.mrb[253].mxu0  ;;  %v3226_v31 = vadd.f32 %v8445_v6, %v3225_v17  ;;  %v3448_v62 = vadd.f32 %v3447_v35, %v3223_v12  ;;  %v3227_v33 = vpop.f32.mrb[11].mxu1 }
 0x979   :  { %v5934_v32 = vpop.f32.mrb[254].mxu0 }
 0x97a   :  { %5398 = vmatprep.subr.bf16.mxu0 %v8484_v46  ;;  %v3466_v63 = vpop.f32.mrb[255].mxu0  ;;  %v3451_v20 = vadd.f32 %v3450_v36, %v3226_v31  ;;  %6593 = vtanh.f32 %v3448_v62 }
 0x97b   :  { %5399 = vmatpush3.bf16.msra.mxu0 %v8460_v55 }
 0x97c   :  { %6595 = vtanh.f32 %v3451_v20  ;;  %v6590_v34 = vpop.eup %6589 }
 0x97d   :  { %v3230_v16 = vpop.f32.mrb[12].mxu1 }
 0x97e   :  { %v3231_v50 = vadd.f32 %v8445_v6, %v3230_v16  ;;  %v3232_v3 = vpop.f32.mrb[13].mxu1  ;;  %v8490_v5 = vpop.f32.mrb[0].mxu0 }
 0x97f   :  { %v6592_v43 = vpop.eup %6591  ;;  %v3233_v61 = vpop.f32.mrb[14].mxu1 }
 0x980   :  { %v8492_v59 = vpack.c.bf16 %v6592_v43, %v6590_v34  ;;  %v3479_v54 = vpop.f32.mrb[1].mxu0  ;;  %v3456_v23 = vadd.f32 %v5929_v18, %v3231_v50  ;;  %v3234_v19 = vadd.f32 %v8445_v6, %v3233_v61  ;;  %v3235_v28 = vpop.f32.mrb[15].mxu1 }
 0x981   :  { %v8495_v52 = vpop.f32.mrb[2].mxu0 }
 0x982   :  { %5400 = vmatprep.subr.bf16.mxu0 %v8492_v59  ;;  %v3482_v30 = vpop.f32.mrb[3].mxu0  ;;  %v3459_v40 = vadd.f32 %v5930_v0, %v3234_v19  ;;  %6597 = vtanh.f32 %v3456_v23 }
 0x983   :  { %5401 = vmatpush3.bf16.msra.mxu0 %v8457_v49 }
 0x984   :  { %6599 = vtanh.f32 %v3459_v40  ;;  %v6594_v1 = vpop.eup %6593 }
 0x985   :  { %v3238_v10 = vpop.f32.mrb[16].mxu1 }
 0x986   :  { %v6596_v53 = vpop.eup %6595  ;;  %v3239_v24 = vadd.f32 %v8445_v6, %v3238_v10  ;;  %v3240_v58 = vpop.f32.mrb[17].mxu1 }
 0x987   :  { %v8500_v4 = vpop.f32.mrb[4].mxu0  ;;  %v3241_v41 = vpop.f32.mrb[18].mxu1  ;;  %v8502_v27 = vpack.c.bf16 %v6596_v53, %v6594_v1 }
 0x988   :  { %v8504_v9 = vpop.f32.mrb[5].mxu0  ;;  %v3242_v18 = vadd.f32 %v8445_v6, %v3241_v41  ;;  %v3464_v13 = vadd.f32 %v3463_v29, %v3239_v24  ;;  %v3243_v37 = vpop.f32.mrb[19].mxu1 }
 0x989   :  { %v8507_v35 = vpop.f32.mrb[6].mxu0  ;;  %5402 = vmatprep.subr.bf16.mxu0 %v8502_v27 }
 0x98a   :  { %v8510_v22 = vpop.f32.mrb[7].mxu0  ;;  %v3467_v25 = vadd.f32 %v3466_v63, %v3242_v18  ;;  %5403 = vmatpush3.bf16.msra.mxu0 %v8467_v57  ;;  %6601 = vtanh.f32 %v3464_v13 }
 0x98c   :  { %6603 = vtanh.f32 %v3467_v25  ;;  %v6598_v39 = vpop.eup %6597 }
 0x98d   :  { %v3246_v0 = vpop.f32.mrb[20].mxu1 }
 0x98e   :  { %v6600_v36 = vpop.eup %6599  ;;  %v3247_v15 = vadd.f32 %v8445_v6, %v3246_v0  ;;  %v3248_v8 = vpop.f32.mrb[21].mxu1 }
 0x98f   :  { %v8514_v60 = vpop.f32.mrb[8].mxu0  ;;  %v3249_v11 = vpop.f32.mrb[22].mxu1  ;;  %v8516_v12 = vpack.c.bf16 %v6600_v36, %v6598_v39 }
 0x990   :  { %v8518_v56 = vpop.f32.mrb[9].mxu0  ;;  %v3472_v17 = vadd.f32 %v5933_v38, %v3247_v15  ;;  %v3250_v29 = vadd.f32 %v8445_v6, %v3249_v11  ;;  %v3251_v31 = vpop.f32.mrb[23].mxu1 }
 0x991   :  { %v8521_v62 = vpop.f32.mrb[10].mxu0  ;;  %5404 = vmatprep.subr.bf16.mxu0 %v8516_v12 }
 0x992   :  { %v8524_v33 = vpop.f32.mrb[11].mxu0  ;;  %v3475_v63 = vadd.f32 %v5934_v32, %v3250_v29  ;;  %5405 = vmatpush3.bf16.msra.mxu0 %v8465_v45  ;;  %6605 = vtanh.f32 %v3472_v17 }
 0x994   :  { %6607 = vtanh.f32 %v3475_v63  ;;  %v6602_v20 = vpop.eup %6601 }
 0x995   :  { %v3254_v34 = vpop.f32.mrb[24].mxu1 }
 0x996   :  { %v6604_v16 = vpop.eup %6603  ;;  %v3255_v43 = vadd.f32 %v8445_v6, %v3254_v34  ;;  %v3256_v38 = vpop.f32.mrb[25].mxu1 }
 0x997   :  { %v8528_v50 = vpop.f32.mrb[12].mxu0  ;;  %v3257_v3 = vpop.f32.mrb[26].mxu1  ;;  %v8530_v61 = vpack.c.bf16 %v6604_v16, %v6602_v20 }
 0x998   :  { %v8532_v23 = vpop.f32.mrb[13].mxu0  ;;  %v3258_v19 = vadd.f32 %v8445_v6, %v3257_v3  ;;  %v3480_v32 = vadd.f32 %v3479_v54, %v3255_v43  ;;  %v3259_v28 = vpop.f32.mrb[27].mxu1 }
 0x999   :  { %v8535_v40 = vpop.f32.mrb[14].mxu0  ;;  %5406 = vmatprep.subr.bf16.mxu0 %v8530_v61 }
 0x99a   :  { %v8538_v1 = vpop.f32.mrb[15].mxu0  ;;  %v3483_v10 = vadd.f32 %v3482_v30, %v3258_v19  ;;  %5407 = vmatpush3.bf16.msra.mxu0 %v8474_v2  ;;  %6609 = vtanh.f32 %v3480_v32 }
 0x99c   :  { %6611 = vtanh.f32 %v3483_v10  ;;  %v6606_v53 = vpop.eup %6605 }
 0x99d   :  { %v3262_v24 = vpop.f32.mrb[28].mxu1 }
 0x99e   :  { %v6608_v58 = vpop.eup %6607  ;;  %v3263_v41 = vadd.f32 %v8445_v6, %v3262_v24  ;;  %v3264_v18 = vpop.f32.mrb[29].mxu1 }
 0x99f   :  { %v8542_v13 = vpop.f32.mrb[16].mxu0  ;;  %v3265_v54 = vpop.f32.mrb[30].mxu1  ;;  %v8544_v37 = vpack.c.bf16 %v6608_v58, %v6606_v53 }
 0x9a0   :  { %v8546_v25 = vpop.f32.mrb[17].mxu0  ;;  %v3488_v39 = vadd.f32 %v8490_v5, %v3263_v41  ;;  %v3266_v30 = vadd.f32 %v8445_v6, %v3265_v54  ;;  %v3267_v0 = vpop.f32.mrb[31].mxu1 }
 0x9a1   :  { %v8550_v36 = vpop.f32.mrb[18].mxu0  ;;  %5408 = vmatprep.subr.bf16.mxu0 %v8544_v37 }
 0x9a2   :  { %v8553_v15 = vpop.f32.mrb[19].mxu0  ;;  %v3491_v8 = vadd.f32 %v8495_v52, %v3266_v30  ;;  %5409 = vmatpush3.bf16.msra.mxu0 %v8472_v7  ;;  %6613 = vtanh.f32 %v3488_v39 }
 0x9a4   :  { %6615 = vtanh.f32 %v3491_v8  ;;  %v6610_v11 = vpop.eup %6609 }
 0x9a5   :  { %v3270_v17 = vpop.f32.mrb[32].mxu1 }
 0x9a6   :  { %v6612_v29 = vpop.eup %6611  ;;  %v3271_v5 = vadd.f32 %v8445_v6, %v3270_v17  ;;  %v3272_v31 = vpop.f32.mrb[33].mxu1 }
 0x9a7   :  { %v3273_v63 = vpop.f32.mrb[34].mxu1  ;;  %v8558_v20 = vpack.c.bf16 %v6612_v29, %v6610_v11 }
 0x9a8   :  { %v3274_v34 = vadd.f32 %v8445_v6, %v3273_v63  ;;  %v3496_v16 = vadd.f32 %v8504_v9, %v3271_v5  ;;  %v3275_v43 = vpop.f32.mrb[35].mxu1 }
 0x9a9   :  { %5410 = vmatprep.subr.bf16.mxu0 %v8558_v20 }
 0x9aa   :  { %v3499_v52 = vadd.f32 %v8510_v22, %v3274_v34  ;;  %5411 = vmatpush3.bf16.msra.mxu0 %v8481_v51  ;;  %6617 = vtanh.f32 %v3496_v16 }
 0x9ac   :  { %6619 = vtanh.f32 %v3499_v52  ;;  %v6614_v38 = vpop.eup %6613 }
 0x9ad   :  { %v3278_v3 = vpop.f32.mrb[36].mxu1 }
 0x9ae   :  { %v6616_v19 = vpop.eup %6615  ;;  %v3279_v32 = vadd.f32 %v8445_v6, %v3278_v3  ;;  %v3280_v28 = vpop.f32.mrb[37].mxu1 }
 0x9af   :  { %v3281_v10 = vpop.f32.mrb[38].mxu1  ;;  %v8566_v53 = vpack.c.bf16 %v6616_v19, %v6614_v38 }
 0x9b0   :  { %v3504_v9 = vadd.f32 %v8500_v4, %v3279_v32  ;;  %v3282_v24 = vadd.f32 %v8445_v6, %v3281_v10  ;;  %v3283_v58 = vpop.f32.mrb[39].mxu1 }
 0x9b1   :  { %5412 = vmatprep.subr.bf16.mxu0 %v8566_v53 }
 0x9b2   :  { %v3507_v22 = vadd.f32 %v8507_v35, %v3282_v24  ;;  %5413 = vmatpush3.bf16.msra.mxu0 %v8478_v44  ;;  %6621 = vtanh.f32 %v3504_v9 }
 0x9b3   :  { %5955 = vmatprep.subr.bf16.mxu0 %v6962_v48 }
 0x9b4   :  { %6623 = vtanh.f32 %v3507_v22  ;;  %v6618_v41 = vpop.eup %6617 }
 0x9b5   :  { %v3286_v18 = vpop.f32.mrb[40].mxu1  ;;  %3663 = vmatmul.mubr.bf16.vlgmr.msra.gmra.mrb[20].mxu0 %v7417_v14 }
 0x9b6   :  { %v6620_v54 = vpop.eup %6619  ;;  %v3287_v4 = vadd.f32 %v8445_v6, %v3286_v18  ;;  %v3288_v39 = vpop.f32.mrb[41].mxu1  ;;  %5971 = vmatprep.mubr.msk.bf16.mxu0 %vm6963_vm1, %v6962_v48 }
 0x9b7   :  { %v3289_v30 = vpop.f32.mrb[42].mxu1  ;;  %v8578_v0 = vpack.c.bf16 %v6620_v54, %v6618_v41 }
 0x9b8   :  { %v3290_v35 = vadd.f32 %v8445_v6, %v3289_v30  ;;  %v3512_v8 = vadd.f32 %v8518_v56, %v3287_v4  ;;  %v3291_v11 = vpop.f32.mrb[43].mxu1 }
 0x9b9   :  { %5956 = vmatpush3.bf16.msra.mxu0 %v8578_v0 }
 0x9ba   :  { %v3515_v17 = vadd.f32 %v8524_v33, %v3290_v35  ;;  %5957 = vmatprep.subr.bf16.mxu0 %v6962_v48  ;;  %6625 = vtanh.f32 %v3512_v8 }
 0x9bc   :  { %6627 = vtanh.f32 %v3515_v17  ;;  %v6622_v29 = vpop.eup %6621 }
 0x9bd   :  { %v3294_v5 = vpop.f32.mrb[44].mxu1 }
 0x9be   :  { %v6624_v31 = vpop.eup %6623  ;;  %v3295_v63 = vadd.f32 %v8445_v6, %v3294_v5  ;;  %v3296_v34 = vpop.f32.mrb[45].mxu1 }
 0x9bf   :  { %v3297_v16 = vpop.f32.mrb[46].mxu1  ;;  %v8586_v43 = vpack.c.bf16 %v6624_v31, %v6622_v29 }
 0x9c0   :  { %v3520_v56 = vadd.f32 %v8514_v60, %v3295_v63  ;;  %v3298_v52 = vadd.f32 %v8445_v6, %v3297_v16  ;;  %v3299_v38 = vpop.f32.mrb[47].mxu1 }
 0x9c1   :  { %5958 = vmatpush3.bf16.msra.mxu0 %v8586_v43 }
 0x9c2   :  { %v3523_v33 = vadd.f32 %v8521_v62, %v3298_v52  ;;  %5959 = vmatprep.subr.bf16.mxu0 %v6962_v48  ;;  %6629 = vtanh.f32 %v3520_v56 }
 0x9c4   :  { %6631 = vtanh.f32 %v3523_v33  ;;  %v6626_v3 = vpop.eup %6625 }
 0x9c5   :  { %v3302_v19 = vpop.f32.mrb[48].mxu1 }
 0x9c6   :  { %v6628_v32 = vpop.eup %6627  ;;  %v3303_v28 = vadd.f32 %v8445_v6, %v3302_v19  ;;  %v3304_v10 = vpop.f32.mrb[49].mxu1 }
 0x9c7   :  { %v3305_v9 = vpop.f32.mrb[50].mxu1  ;;  %v8594_v24 = vpack.c.bf16 %v6628_v32, %v6626_v3 }
 0x9c8   :  { %v3306_v60 = vadd.f32 %v8445_v6, %v3305_v9  ;;  %v3528_v58 = vadd.f32 %v8532_v23, %v3303_v28  ;;  %v3307_v22 = vpop.f32.mrb[51].mxu1 }
 0x9c9   :  { %5960 = vmatpush3.bf16.msra.mxu0 %v8594_v24 }
 0x9ca   :  { %v3531_v62 = vadd.f32 %v8538_v1, %v3306_v60  ;;  %5961 = vmatprep.subr.bf16.mxu0 %v6962_v48  ;;  %6633 = vtanh.f32 %v3528_v58 }
 0x9cc   :  { %6635 = vtanh.f32 %v3531_v62  ;;  %v6630_v41 = vpop.eup %6629 }
 0x9cd   :  { %v3310_v18 = vpop.f32.mrb[52].mxu1 }
 0x9ce   :  { %v6632_v54 = vpop.eup %6631  ;;  %v3311_v4 = vadd.f32 %v8445_v6, %v3310_v18  ;;  %v3312_v39 = vpop.f32.mrb[53].mxu1 }
 0x9cf   :  { %v3313_v30 = vpop.f32.mrb[54].mxu1  ;;  %v8602_v35 = vpack.c.bf16 %v6632_v54, %v6630_v41  ;;  %v5111_v54 = vld [vmem:[%s9205_s5 + $0x50] sm:$0xff]  ;;  %v5112_v39 = vld [vmem:[%s9205_s5 + $0x58] sm:$0xff] }
 0x9d0   :  { %v3536_v23 = vadd.f32 %v8528_v50, %v3311_v4  ;;  %v3314_v8 = vadd.f32 %v8445_v6, %v3313_v30  ;;  %v3315_v11 = vpop.f32.mrb[55].mxu1  ;;  %v6184_v30 = vpack.c.bf16 %v5112_v39, %v5111_v54 }
 0x9d1   :  { %5962 = vmatpush3.bf16.msra.mxu0 %v8602_v35 }
 0x9d2   :  { %v3539_v1 = vadd.f32 %v8535_v40, %v3314_v8  ;;  %5963 = vmatprep.subr.bf16.mxu0 %v6962_v48  ;;  %6637 = vtanh.f32 %v3536_v23  ;;  %v6359_v23 = vld [vmem:[%s9200_s2 + $0x30] sm:$0xff]  }
 0x9d4   :  { %6639 = vtanh.f32 %v3539_v1  ;;  %v6634_v17 = vpop.eup %6633 }
 0x9d5   :  { %v3318_v29 = vpop.f32.mrb[56].mxu1 }
 0x9d6   :  { %v6636_v5 = vpop.eup %6635  ;;  %v3319_v31 = vadd.f32 %v8445_v6, %v3318_v29  ;;  %v3320_v63 = vpop.f32.mrb[57].mxu1 }
 0x9d7   :  { %v3321_v34 = vpop.f32.mrb[58].mxu1  ;;  %v8610_v16 = vpack.c.bf16 %v6636_v5, %v6634_v17 }
 0x9d8   :  { %v3322_v50 = vadd.f32 %v8445_v6, %v3321_v34  ;;  %v3544_v56 = vadd.f32 %v8546_v25, %v3319_v31  ;;  %v3323_v52 = vpop.f32.mrb[59].mxu1  ;;  %v6360_v34 = vld [vmem:[%s9200_s2 + $0x38] sm:$0xff]  }
 0x9d9   :  { %5964 = vmatpush3.bf16.msra.mxu0 %v8610_v16 }
 0x9da   :  { %v3547_v40 = vadd.f32 %v8553_v15, %v3322_v50  ;;  %5965 = vmatprep.subr.bf16.mxu0 %v6962_v48  ;;  %6641 = vtanh.f32 %v3544_v56 }
 0x9dc   :  { %6643 = vtanh.f32 %v3547_v40  ;;  %v6638_v38 = vpop.eup %6637 }
 0x9dd   :  { %v3326_v33 = vpop.f32.mrb[60].mxu1 }
 0x9de   :  { %v6640_v3 = vpop.eup %6639  ;;  %v3327_v19 = vadd.f32 %v8445_v6, %v3326_v33  ;;  %v3328_v32 = vpop.f32.mrb[61].mxu1 }
 0x9df   :  { %v3329_v28 = vpop.f32.mrb[62].mxu1  ;;  %v8618_v10 = vpack.c.bf16 %v6640_v3, %v6638_v38 }
 0x9e0   :  { %v3552_v25 = vadd.f32 %v8542_v13, %v3327_v19  ;;  %v3330_v9 = vadd.f32 %v8445_v6, %v3329_v28  ;;  %v3331_v60 = vpop.f32.mrb[63].mxu1  ;;  %v5109_v6 = vld [vmem:[%s9205_s5 + $0x40] sm:$0xff] }
 0x9e1   :  { %5966 = vmatpush3.bf16.msra.mxu0 %v8618_v10 }
 0x9e2   :  { %v3555_v15 = vadd.f32 %v8550_v36, %v3330_v9  ;;  %5967 = vmatprep.subr.bf16.mxu0 %v6962_v48  ;;  %6645 = vtanh.f32 %v3552_v25  ;;  %v5110_v36 = vld [vmem:[%s9205_s5 + $0x48] sm:$0xff] }
 0x9e3   :  { %v6181_v4 = vpack.c.bf16 %v5110_v36, %v5109_v6 }
 0x9e4   :  { %6647 = vtanh.f32 %v3555_v15  ;;  %v6642_v58 = vpop.eup %6641 }
 0x9e6   :  { %v6644_v22 = vpop.eup %6643 }
 0x9e7   :  { %v3628_v62 = vpack.c.bf16 %v6644_v22, %v6642_v58 }
 0x9e9   :  { %5968 = vmatpush3.bf16.msra.mxu0 %v3628_v62 }
 0x9ea   :  { %5969 = vmatprep.subr.bf16.mxu0 %v6962_v48 }
 0x9ec   :  { %v6646_v41 = vpop.eup %6645 }
 0x9ee   :  { %v6648_v18 = vpop.eup %6647 }
 0x9ef   :  { %v3629_v13 = vpack.c.bf16 %v6648_v18, %v6646_v41 }
 0x9f1   :  { %5970 = vmatpush3.bf16.msra.mxu0 %v3629_v13 }
 0x9f2   :  { %6180 = vmatprep.subr.bf16.mxu0 %v6964_v47 }
 0x9f4   :  { %5972 = vmatmul.mubr.bf16.vlgmr.msra.gmra.mrb[24].mxu0 %v7517_v42 }
 0x9f5   :  { %5983 = vmatprep.mubr.msk.f32.mxu0 %vm6963_vm1, %v6962_v48  ;;  %6182 = vmatpush3.bf16.msra.mxu0 %v6181_v4 }
 0x9f6   :  { %6183 = vmatprep.subr.bf16.mxu0 %v6964_v47 }
 0x9f9   :  { %6185 = vmatpush3.bf16.msra.mxu0 %v6184_v30 }
 0x9fa   :  { %5986 = vmatprep.subr.bf16.mxu0 %v6359_v23 }
 0xa88   :  { %v5414_v8 = vpop.f32.mrb[20].mxu0 }
 0xa89   :  { %v5415_v11 = vpop.f32.mrb[21].mxu0 }
 0xa8a   :  { %v5416_v1 = vadd.f32 %v5415_v11, %v5414_v8  ;;  %v5417_v17 = vpop.f32.mrb[22].mxu0 }
 0xa8b   :  { %v5418_v29 = vpop.f32.mrb[23].mxu0 }
 0xac7   :  { %v3704_v5 = vpop.f32.mrb[24].mxu0 }
 0xac8   :  { %v3705_v31 = vadd.f32 %v5416_v1, %v3704_v5  ;;  %v5973_v63 = vpop.f32.mrb[25].mxu0 }
 0xac9   :  { %v3707_v50 = vpop.f32.mrb[26].mxu0 }
 0xaca   :  { %v5974_v56 = vpop.f32.mrb[27].mxu0  ;;  %5984 = vmatmul.mubr.msk.f32.vlgmr.msra.gmra.mrb[72].mxu0 %vm322_vm0, %v3705_v31  ;;  %v6891_v50 = vld [vmem:[%s9202_s0 + $0x1c] ss:$12 sps:$4 sm:$0xff]  }
 0xacb   :  { %5987 = vmatpush3.bf16.msra.mxu0 %v6359_v23  ;;  %5990 = vmatprep.mubr.msk.bf16.mxu0 %vm322_vm0, %v8460_v55 }
 0xacc   :  { %5988 = vmatprep.subr.bf16.mxu0 %v6360_v34 }
 0xacf   :  { %5989 = vmatpush3.bf16.msra.mxu0 %v6360_v34  ;;  %v6890_v34 = vld [vmem:[%s9202_s0] ss:$12 sps:$4 sm:$0xff]  }
 0xad2   :  { %5991 = vmatmul.mubr.msk.bf16.vlgmr.msra.gmra.mrb[28].mxu0 %vm322_vm0, %v8457_v49  ;;  %v6889_v49 = vld [vmem:[%s9202_s0 + $0x8] ss:$12 sps:$4 sm:$0xff]  }
 0xad3   :  { %5994 = vmatprep.mubr.msk.bf16.mxu0 %vm322_vm0, %v8467_v57 }
 0xada   :  { %5995 = vmatmul.mubr.msk.bf16.gmra.mrb[32].mxu0 %vm322_vm0, %v8465_v45 }
 0xadb   :  { %5998 = vmatprep.mubr.msk.bf16.mxu0 %vm322_vm0, %v8474_v2 }
 0xae2   :  { %5999 = vmatmul.mubr.msk.bf16.gmra.mrb[36].mxu0 %vm322_vm0, %v8472_v7 }
 0xae3   :  { %6002 = vmatprep.mubr.msk.bf16.mxu0 %vm322_vm0, %v8481_v51 }
 0xaea   :  { %6003 = vmatmul.mubr.msk.bf16.gmra.mrb[40].mxu0 %vm322_vm0, %v8478_v44 }
 0xaeb   :  { %6006 = vmatprep.mubr.msk.bf16.mxu0 %vm322_vm0, %v8484_v46 }
 0xaf2   :  { %6007 = vmatmul.mubr.msk.bf16.gmra.mrb[44].mxu0 %vm322_vm0, %v8492_v59 }
 0xaf3   :  { %6010 = vmatprep.mubr.msk.bf16.mxu0 %vm322_vm0, %v8502_v27 }
 0xafa   :  { %6011 = vmatmul.mubr.msk.bf16.gmra.mrb[48].mxu0 %vm322_vm0, %v8516_v12 }
 0xafb   :  { %6014 = vmatprep.mubr.msk.bf16.mxu0 %vm322_vm0, %v8530_v61 }
 0xb02   :  { %6015 = vmatmul.mubr.msk.bf16.gmra.mrb[52].mxu0 %vm322_vm0, %v8544_v37 }
 0xb03   :  { %6018 = vmatprep.mubr.msk.bf16.mxu0 %vm322_vm0, %v8558_v20 }
 0xb0a   :  { %6019 = vmatmul.mubr.msk.bf16.gmra.mrb[56].mxu0 %vm322_vm0, %v8566_v53 }
 0xb0b   :  { %6022 = vmatprep.mubr.msk.bf16.mxu0 %vm322_vm0, %v8578_v0 }
 0xb12   :  { %6023 = vmatmul.mubr.msk.bf16.gmra.mrb[60].mxu0 %vm322_vm0, %v8586_v43 }
 0xb13   :  { %6026 = vmatprep.mubr.msk.bf16.mxu0 %vm322_vm0, %v8594_v24 }
 0xb1a   :  { %6027 = vmatmul.mubr.msk.bf16.gmra.mrb[64].mxu0 %vm322_vm0, %v8602_v35 }
 0xb1b   :  { %6030 = vmatprep.mubr.msk.bf16.mxu0 %vm322_vm0, %v8610_v16 }
 0xb22   :  { %6031 = vmatmul.mubr.msk.bf16.gmra.mrb[68].mxu0 %vm322_vm0, %v8618_v10 }
 0xb23   :  { %6034 = vmatprep.mubr.msk.bf16.mxu0 %vm322_vm0, %v3628_v62 }
 0xb2a   :  { %6035 = vmatmul.mubr.msk.bf16.gmra.mrb[76].mxu0 %vm322_vm0, %v3629_v13 }
 0xb2b   :  { %6054 = vmatprep.mubr.bf16.mxu0 %v6889_v49 }
 0xba5   :  { %v5992_v55 = vpop.f32.mrb[28].mxu0 }
 0xba6   :  { %v3912_v45 = vpop.f32.mrb[29].mxu0 }
 0xba7   :  { %v5993_v57 = vpop.f32.mrb[30].mxu0 }
 0xba8   :  { %v4104_v7 = vpack.c.bf16 %v5993_v57, %v5992_v55  ;;  %v3915_v2 = vpop.f32.mrb[31].mxu0 }
 0xba9   :  { %v4103_v44 = vpack.c.bf16 %v3915_v2, %v3912_v45  ;;  %v6893_v2 = vld [vmem:[%s9202_s0 + $0x34] ss:$12 sps:$4 sm:$0xff]  }
 0xbab   :  { %4136 = vmatpush1.bf16.msra.mxu1 %v4103_v44 }
 0xbac   :  { %4137 = vmatprep.subr.bf16.mxu1 %v6960_v26 }
 0xbad   :  { %v5996_v51 = vpop.f32.mrb[32].mxu0 }
 0xbae   :  { %v3928_v46 = vpop.f32.mrb[33].mxu0 }
 0xbaf   :  { %v5997_v59 = vpop.f32.mrb[34].mxu0  ;;  %4138 = vmatpush1.bf16.msra.mxu1 %v4104_v7  ;;  %v6892_v7 = vld [vmem:[%s9202_s0 + $0x18] ss:$12 sps:$4 sm:$0xff]  }
 0xbb0   :  { %v4106_v27 = vpack.c.bf16 %v5997_v59, %v5996_v51  ;;  %v3931_v12 = vpop.f32.mrb[35].mxu0  ;;  %4139 = vmatprep.subr.bf16.mxu1 %v6960_v26 }
 0xbb1   :  { %v4105_v61 = vpack.c.bf16 %v3931_v12, %v3928_v46 }
 0xbb3   :  { %4140 = vmatpush1.bf16.msra.mxu1 %v4105_v61  ;;  %v6894_v61 = vld [vmem:[%s9202_s0 + $0x30] ss:$12 sps:$4 sm:$0xff]  }
 0xbb4   :  { %4141 = vmatprep.subr.bf16.mxu1 %v6960_v26 }
 0xbb5   :  { %v6000_v37 = vpop.f32.mrb[36].mxu0 }
 0xbb6   :  { %v3944_v20 = vpop.f32.mrb[37].mxu0 }
 0xbb7   :  { %v6001_v53 = vpop.f32.mrb[38].mxu0  ;;  %4142 = vmatpush1.bf16.msra.mxu1 %v4106_v27 }
 0xbb8   :  { %v4108_v0 = vpack.c.bf16 %v6001_v53, %v6000_v37  ;;  %v3947_v43 = vpop.f32.mrb[39].mxu0  ;;  %4143 = vmatprep.subr.bf16.mxu1 %v6960_v26  ;;  %v6895_v37 = vld [vmem:[%s9202_s0 + $0x4c] ss:$12 sps:$4 sm:$0xff]  }
 0xbb9   :  { %v4107_v24 = vpack.c.bf16 %v3947_v43, %v3944_v20 }
 0xbbb   :  { %4144 = vmatpush1.bf16.msra.mxu1 %v4107_v24 }
 0xbbc   :  { %4145 = vmatprep.subr.bf16.mxu1 %v6960_v26 }
 0xbbd   :  { %v6004_v35 = vpop.f32.mrb[40].mxu0 }
 0xbbe   :  { %v3960_v16 = vpop.f32.mrb[41].mxu0 }
 0xbbf   :  { %v6005_v52 = vpop.f32.mrb[42].mxu0  ;;  %4146 = vmatpush1.bf16.msra.mxu1 %v4108_v0 }
 0xbc0   :  { %v4110_v40 = vpack.c.bf16 %v6005_v52, %v6004_v35  ;;  %v3963_v38 = vpop.f32.mrb[43].mxu0  ;;  %4147 = vmatprep.subr.bf16.mxu1 %v6960_v26  ;;  %v6897_v52 = vld [vmem:[%s9202_s0 + $0x64] ss:$12 sps:$4 sm:$0xff]  }
 0xbc1   :  { %v4109_v33 = vpack.c.bf16 %v3963_v38, %v3960_v16  ;;  %v6896_v16 = vld [vmem:[%s9202_s0 + $0x48] ss:$12 sps:$4 sm:$0xff]   ;;  %v6899_v38 = vld [vmem:[%s9202_s0 + $0x20] ss:$12 sps:$4 sm:$0xff]  }
 0xbc3   :  { %4148 = vmatpush1.bf16.msra.mxu1 %v4109_v33  ;;  %v6900_v33 = vld [vmem:[%s9202_s0 + $0x7c] ss:$12 sps:$4 sm:$0xff]  }
 0xbc4   :  { %4149 = vmatprep.subr.bf16.mxu1 %v6960_v26 }
 0xbc5   :  { %v6008_v3 = vpop.f32.mrb[44].mxu0 }
 0xbc6   :  { %v3976_v19 = vpop.f32.mrb[45].mxu0 }
 0xbc7   :  { %v6009_v32 = vpop.f32.mrb[46].mxu0  ;;  %4150 = vmatpush1.bf16.msra.mxu1 %v4110_v40  ;;  %v6898_v40 = vld [vmem:[%s9202_s0 + $0x60] ss:$12 sps:$4 sm:$0xff]  }
 0xbc8   :  { %v4112_v28 = vpack.c.bf16 %v6009_v32, %v6008_v3  ;;  %v3979_v10 = vpop.f32.mrb[47].mxu0  ;;  %4151 = vmatprep.subr.bf16.mxu1 %v6960_v26  ;;  %v6901_v3 = vld [vmem:[%s9202_s0 + $0x38] ss:$12 sps:$4 sm:$0xff]   ;;  %v6903_v32 = vld [vmem:[%s9202_s0 + $0x50] ss:$12 sps:$4 sm:$0xff]  }
 0xbc9   :  { %v4111_v25 = vpack.c.bf16 %v3979_v10, %v3976_v19  ;;  %v6902_v19 = vld [vmem:[%s9202_s0 + $0x78] ss:$12 sps:$4 sm:$0xff]   ;;  %v6905_v10 = vld [vmem:[%s9202_s0 + $0x68] ss:$12 sps:$4 sm:$0xff]  }
 0xbcb   :  { %4152 = vmatpush1.bf16.msra.mxu1 %v4111_v25  ;;  %v6906_v25 = vld [vmem:[%s9202_s0 + $0x90] ss:$12 sps:$4 sm:$0xff]  }
 0xbcc   :  { %4153 = vmatprep.subr.bf16.mxu1 %v6960_v26 }
 0xbcd   :  { %v6012_v9 = vpop.f32.mrb[48].mxu0 }
 0xbce   :  { %v3992_v60 = vpop.f32.mrb[49].mxu0 }
 0xbcf   :  { %v6013_v15 = vpop.f32.mrb[50].mxu0  ;;  %4154 = vmatpush1.bf16.msra.mxu1 %v4112_v28  ;;  %v6904_v28 = vld [vmem:[%s9202_s0 + $0x94] ss:$12 sps:$4 sm:$0xff]  }
 0xbd0   :  { %v4114_v58 = vpack.c.bf16 %v6013_v15, %v6012_v9  ;;  %v3995_v22 = vpop.f32.mrb[51].mxu0  ;;  %4155 = vmatprep.subr.bf16.mxu1 %v6960_v26  ;;  %v6907_v9 = vld [vmem:[%s9202_s0 + $0x80] ss:$12 sps:$4 sm:$0xff]   ;;  %v6909_v15 = vld [vmem:[%s9202_s0 + $0x98] ss:$12 sps:$4 sm:$0xff]  }
 0xbd1   :  { %v4113_v62 = vpack.c.bf16 %v3995_v22, %v3992_v60  ;;  %v6908_v60 = vld [vmem:[%s9202_s0 + $0xac] ss:$12 sps:$4 sm:$0xff]   ;;  %v6911_v22 = vld [vmem:[%s9202_s0 + $0xb0] ss:$12 sps:$4 sm:$0xff]  }
 0xbd3   :  { %4156 = vmatpush1.bf16.msra.mxu1 %v4113_v62  ;;  %v6912_v62 = vld [vmem:[%s9202_s0 + $0xc4] ss:$12 sps:$4 sm:$0xff]  }
 0xbd4   :  { %4157 = vmatprep.subr.bf16.mxu1 %v6960_v26 }
 0xbd5   :  { %v6016_v41 = vpop.f32.mrb[52].mxu0 }
 0xbd6   :  { %v4008_v18 = vpop.f32.mrb[53].mxu0 }
 0xbd7   :  { %v6017_v13 = vpop.f32.mrb[54].mxu0  ;;  %4158 = vmatpush1.bf16.msra.mxu1 %v4114_v58  ;;  %v6910_v58 = vld [vmem:[%s9202_s0 + $0xa8] ss:$12 sps:$4 sm:$0xff]  }
 0xbd8   :  { %v4116_v6 = vpack.c.bf16 %v6017_v13, %v6016_v41  ;;  %v4011_v36 = vpop.f32.mrb[55].mxu0  ;;  %4159 = vmatprep.subr.bf16.mxu1 %v6960_v26  ;;  %v6913_v41 = vld [vmem:[%s9202_s0 + $0xc8] ss:$12 sps:$4 sm:$0xff]   ;;  %v6915_v13 = vld [vmem:[%s9202_s0 + $0xe0] ss:$12 sps:$4 sm:$0xff]  }
 0xbd9   :  { %v4115_v54 = vpack.c.bf16 %v4011_v36, %v4008_v18  ;;  %v6914_v18 = vld [vmem:[%s9202_s0 + $0xc0] ss:$12 sps:$4 sm:$0xff]   ;;  %v6917_v36 = vld [vmem:[%s9202_s0 + $0xf8] ss:$12 sps:$4 sm:$0xff]  }
 0xbdb   :  { %4160 = vmatpush1.bf16.msra.mxu1 %v4115_v54  ;;  %v6918_v54 = vld [vmem:[%s9202_s0 + $0xd8] ss:$12 sps:$4 sm:$0xff]  }
 0xbdc   :  { %4161 = vmatprep.subr.bf16.mxu1 %v6960_v26 }
 0xbdd   :  { %v6020_v4 = vpop.f32.mrb[56].mxu0 }
 0xbde   :  { %v4024_v39 = vpop.f32.mrb[57].mxu0 }
 0xbdf   :  { %v6021_v30 = vpop.f32.mrb[58].mxu0  ;;  %4162 = vmatpush1.bf16.msra.mxu1 %v4116_v6  ;;  %v6916_v6 = vld [vmem:[%s9202_s0 + $0xdc] ss:$12 sps:$4 sm:$0xff]  }
 0xbe0   :  { %v4118_v23 = vpack.c.bf16 %v6021_v30, %v6020_v4  ;;  %v4027_v8 = vpop.f32.mrb[59].mxu0  ;;  %4163 = vmatprep.subr.bf16.mxu1 %v6960_v26  ;;  %v6919_v4 = vld [vmem:[%s9202_s0 + $0xf4] ss:$12 sps:$4 sm:$0xff]  }
 0xbe1   :  { %v4117_v11 = vpack.c.bf16 %v4027_v8, %v4024_v39  ;;  %v6920_v39 = vld [vmem:[%s9202_s0 + $0x110] ss:$12 sps:$4 sm:$0xff]   ;;  %v6921_v30 = vld [vmem:[%s9202_s0 + $0x128] ss:$12 sps:$4 sm:$0xff]   ;;  %v6923_v8 = vld [vmem:[%s9202_s0 + $0x10c] ss:$12 sps:$4 sm:$0xff]  }
 0xbe3   :  { %4164 = vmatpush1.bf16.msra.mxu1 %v4117_v11  ;;  %v6924_v11 = vld [vmem:[%s9202_s0 + $0x140] ss:$12 sps:$4 sm:$0xff]  }
 0xbe4   :  { %4165 = vmatprep.subr.bf16.mxu1 %v6960_v26 }
 0xbe5   :  { %v6024_v1 = vpop.f32.mrb[60].mxu0 }
 0xbe6   :  { %v4040_v17 = vpop.f32.mrb[61].mxu0 }
 0xbe7   :  { %v6025_v29 = vpop.f32.mrb[62].mxu0  ;;  %4166 = vmatpush1.bf16.msra.mxu1 %v4118_v23  ;;  %v6922_v23 = vld [vmem:[%s9202_s0 + $0xf0] ss:$12 sps:$4 sm:$0xff]  }
 0xbe8   :  { %v4120_v5 = vpack.c.bf16 %v6025_v29, %v6024_v1  ;;  %v4043_v31 = vpop.f32.mrb[63].mxu0  ;;  %6102 = vmatprep.subr.bf16.mxu1 %v6962_v48  ;;  %v6925_v1 = vld [vmem:[%s9202_s0 + $0x158] ss:$12 sps:$4 sm:$0xff]  }
 0xbe9   :  { %v4119_v63 = vpack.c.bf16 %v4043_v31, %v4040_v17  ;;  %v6926_v17 = vld [vmem:[%s9202_s0 + $0x108] ss:$12 sps:$4 sm:$0xff]   ;;  %v6927_v29 = vld [vmem:[%s9202_s0 + $0x124] ss:$12 sps:$4 sm:$0xff]  }
 0xbea   :  { %4168 = vmatmul.mubr.bf16.vlgmr.msra.gmra.mrb[64].mxu1 %v6890_v34  ;;  %v6929_v31 = vld [vmem:[%s9202_s0 + $0x188] ss:$12 sps:$4 sm:$0xff]  }
 0xbeb   :  { %6038 = vmatprep.subr.bf16.mxu0 %v4119_v63  ;;  %4175 = vmatprep.mubr.bf16.mxu1 %v6891_v50  ;;  %v6931_v34 = vld [vmem:[%s9202_s0 + $0x13c] ss:$12 sps:$4 sm:$0xff]   ;;  %v6932_v50 = vld [vmem:[%s9202_s0 + $0x1a0] ss:$12 sps:$4 sm:$0xff]  }
 0xbec   :  { %6039 = vmatpush3.bf16.msra.mxu0 %v4119_v63  ;;  %v6930_v63 = vld [vmem:[%s9202_s0 + $0x120] ss:$12 sps:$4 sm:$0xff]  }
 0xbed   :  { %v6028_v26 = vpop.f32.mrb[64].mxu0  ;;  %6040 = vmatprep.subr.bf16.mxu0 %v4120_v5 }
 0xbee   :  { %v4056_v56 = vpop.f32.mrb[65].mxu0 }
 0xbef   :  { %v6029_v49 = vpop.f32.mrb[66].mxu0 }
 0xbf0   :  { %v4122_v55 = vpack.c.bf16 %v6029_v49, %v6028_v26  ;;  %v4059_v45 = vpop.f32.mrb[67].mxu0  ;;  %6041 = vmatpush3.bf16.msra.mxu0 %v4120_v5  ;;  %v6928_v5 = vld [vmem:[%s9202_s0 + $0x170] ss:$12 sps:$4 sm:$0xff]   ;;  %v6933_v26 = vld [vmem:[%s9202_s0 + $0x1b8] ss:$12 sps:$4 sm:$0xff]  }
 0xbf1   :  { %v4121_v57 = vpack.c.bf16 %v4059_v45, %v4056_v56  ;;  %v6934_v56 = vld [vmem:[%s9202_s0 + $0x138] ss:$12 sps:$4 sm:$0xff]   ;;  %v6935_v49 = vld [vmem:[%s9202_s0 + $0x154] ss:$12 sps:$4 sm:$0xff]  }
 0xbf2   :  { %4176 = vmatmul.mubr.bf16.gmra.mrb[68].mxu1 %v6892_v7  ;;  %v6937_v45 = vld [vmem:[%s9202_s0 + $0x1e8] ss:$12 sps:$4 sm:$0xff]   ;;  %v6939_v7 = vld [vmem:[%s9202_s0 + $0x16c] ss:$12 sps:$4 sm:$0xff]  }
 0xbf3   :  { %6042 = vmatprep.subr.bf16.mxu0 %v4121_v57  ;;  %4183 = vmatprep.mubr.bf16.mxu1 %v6893_v2  ;;  %v6940_v2 = vld [vmem:[%s9202_s0 + $0x200] ss:$12 sps:$4 sm:$0xff]  }
 0xbf4   :  { %6043 = vmatpush3.bf16.msra.mxu0 %v4121_v57  ;;  %v6938_v57 = vld [vmem:[%s9202_s0 + $0x150] ss:$12 sps:$4 sm:$0xff]  }
 0xbf5   :  { %v6032_v44 = vpop.f32.mrb[68].mxu0  ;;  %6044 = vmatprep.subr.bf16.mxu0 %v4122_v55 }
 0xbf6   :  { %v4072_v51 = vpop.f32.mrb[69].mxu0 }
 0xbf7   :  { %v6033_v46 = vpop.f32.mrb[70].mxu0 }
 0xbf8   :  { %v4124_v59 = vpack.c.bf16 %v6033_v46, %v6032_v44  ;;  %v4075_v27 = vpop.f32.mrb[71].mxu0  ;;  %6045 = vmatpush3.bf16.msra.mxu0 %v4122_v55  ;;  %v6936_v55 = vld [vmem:[%s9202_s0 + $0x1d0] ss:$12 sps:$4 sm:$0xff]   ;;  %v6941_v44 = vld [vmem:[%s9202_s0 + $0x218] ss:$12 sps:$4 sm:$0xff]  }
 0xbf9   :  { %v4123_v12 = vpack.c.bf16 %v4075_v27, %v4072_v51  ;;  %v6942_v51 = vld [vmem:[%s9202_s0 + $0x168] ss:$12 sps:$4 sm:$0xff]   ;;  %v6943_v46 = vld [vmem:[%s9202_s0 + $0x184] ss:$12 sps:$4 sm:$0xff]   ;;  %v6945_v27 = vld [vmem:[%s9202_s0 + $0x180] ss:$12 sps:$4 sm:$0xff]  }
 0xbfa   :  { %4184 = vmatmul.mubr.bf16.gmra.mrb[72].mxu1 %v6894_v61  ;;  %v6947_v61 = vld [vmem:[%s9202_s0 + $0x198] ss:$12 sps:$4 sm:$0xff]  }
 0xbfb   :  { %6046 = vmatprep.subr.bf16.mxu0 %v4123_v12  ;;  %4191 = vmatprep.mubr.bf16.mxu1 %v6895_v37  ;;  %v6948_v37 = vld [vmem:[%s9202_s0 + $0x1b4] ss:$12 sps:$4 sm:$0xff]  }
 0xbfc   :  { %6047 = vmatpush3.bf16.msra.mxu0 %v4123_v12  ;;  %v6946_v12 = vld [vmem:[%s9202_s0 + $0x19c] ss:$12 sps:$4 sm:$0xff]  }
 0xbfd   :  { %v6036_v20 = vpop.f32.mrb[76].mxu0  ;;  %6048 = vmatprep.subr.bf16.mxu0 %v4124_v59 }
 0xbfe   :  { %v4088_v53 = vpop.f32.mrb[77].mxu0 }
 0xbff   :  { %v6037_v0 = vpop.f32.mrb[78].mxu0 }
 0xc00   :  { %v4126_v43 = vpack.c.bf16 %v6037_v0, %v6036_v20  ;;  %v4091_v24 = vpop.f32.mrb[79].mxu0  ;;  %6049 = vmatpush3.bf16.msra.mxu0 %v4124_v59  ;;  %v6944_v59 = vld [vmem:[%s9202_s0 + $0x230] ss:$12 sps:$4 sm:$0xff]   ;;  %v6950_v20 = vld [vmem:[%s9202_s0 + $0x1cc] ss:$12 sps:$4 sm:$0xff]  }
 0xc01   :  { %v4125_v35 = vpack.c.bf16 %v4091_v24, %v4088_v53  ;;  %v6951_v53 = vld [vmem:[%s9202_s0 + $0x1c8] ss:$12 sps:$4 sm:$0xff]   ;;  %v6952_v0 = vld [vmem:[%s9202_s0 + $0x1e4] ss:$12 sps:$4 sm:$0xff]  }
 0xc02   :  { %4192 = vmatmul.mubr.bf16.gmra.mrb[76].mxu1 %v6896_v16  ;;  %v6954_v24 = vld [vmem:[%s9202_s0 + $0x1fc] ss:$12 sps:$4 sm:$0xff]   ;;  %v6956_v16 = vld [vmem:[%s9202_s0 + $0x214] ss:$12 sps:$4 sm:$0xff]  }
 0xc03   :  { %6050 = vmatprep.subr.bf16.mxu0 %v4125_v35  ;;  %4199 = vmatprep.mubr.bf16.mxu1 %v6897_v52  ;;  %v6957_v52 = vld [vmem:[%s9202_s0 + $0x210] ss:$12 sps:$4 sm:$0xff]  }
 0xc04   :  { %6051 = vmatpush3.bf16.msra.mxu0 %v4125_v35  ;;  %v6955_v35 = vld [vmem:[%s9202_s0 + $0x1f8] ss:$12 sps:$4 sm:$0xff]  }
 0xc05   :  { %6052 = vmatprep.subr.bf16.mxu0 %v4126_v43 }
 0xc08   :  { %6053 = vmatpush3.bf16.msra.mxu0 %v4126_v43  ;;  %v6953_v43 = vld [vmem:[%s9202_s0 + $0x1e0] ss:$12 sps:$4 sm:$0xff]  }
 0xc0a   :  { %4200 = vmatmul.mubr.bf16.gmra.mrb[80].mxu1 %v6898_v40  ;;  %v6958_v40 = vld [vmem:[%s9202_s0 + $0x22c] ss:$12 sps:$4 sm:$0xff]  }
 0xc0b   :  { %6055 = vmatmul.mubr.bf16.vlgmr.msra.gmra.mrb[80].mxu0 %v6899_v38  ;;  %4207 = vmatprep.mubr.bf16.mxu1 %v6900_v33  ;;  %v6959_v38 = vld [vmem:[%s9202_s0 + $0x228] ss:$12 sps:$4 sm:$0xff]  }
 0xc0c   :  { %6058 = vmatprep.mubr.bf16.mxu0 %v6901_v3 }
 0xc12   :  { %4208 = vmatmul.mubr.bf16.gmra.mrb[84].mxu1 %v6902_v19 }
 0xc13   :  { %6059 = vmatmul.mubr.bf16.gmra.mrb[84].mxu0 %v6903_v32  ;;  %4215 = vmatprep.mubr.bf16.mxu1 %v6904_v28 }
 0xc14   :  { %6062 = vmatprep.mubr.bf16.mxu0 %v6905_v10 }
 0xc1a   :  { %4216 = vmatmul.mubr.bf16.gmra.mrb[88].mxu1 %v6906_v25 }
 0xc1b   :  { %6063 = vmatmul.mubr.bf16.gmra.mrb[88].mxu0 %v6907_v9  ;;  %4223 = vmatprep.mubr.bf16.mxu1 %v6908_v60 }
 0xc1c   :  { %6066 = vmatprep.mubr.bf16.mxu0 %v6909_v15 }
 0xc22   :  { %4224 = vmatmul.mubr.bf16.gmra.mrb[92].mxu1 %v6910_v58 }
 0xc23   :  { %6067 = vmatmul.mubr.bf16.gmra.mrb[92].mxu0 %v6911_v22  ;;  %4231 = vmatprep.mubr.bf16.mxu1 %v6912_v62 }
 0xc24   :  { %6070 = vmatprep.mubr.bf16.mxu0 %v6913_v41 }
 0xc2a   :  { %4232 = vmatmul.mubr.bf16.gmra.mrb[96].mxu1 %v6914_v18 }
 0xc2b   :  { %6071 = vmatmul.mubr.bf16.gmra.mrb[96].mxu0 %v6915_v13  ;;  %4239 = vmatprep.mubr.bf16.mxu1 %v6916_v6  ;;  %v8931_v6 = vld [vmem:[%s9203_s3 + $0x3] ss:$0 sm:$0xff] }
 0xc2c   :  { %6074 = vmatprep.mubr.bf16.mxu0 %v6917_v36 }
 0xc32   :  { %4240 = vmatmul.mubr.bf16.gmra.mrb[100].mxu1 %v6918_v54 }
 0xc33   :  { %4247 = vmatprep.mubr.bf16.mxu1 %v6919_v4  ;;  %6075 = vmatmul.mubr.bf16.gmra.mrb[100].mxu0 %v6920_v39 }
 0xc34   :  { %6078 = vmatprep.mubr.bf16.mxu0 %v6921_v30 }
 0xc3a   :  { %4248 = vmatmul.mubr.bf16.gmra.mrb[104].mxu1 %v6922_v23 }
 0xc3b   :  { %4255 = vmatprep.mubr.bf16.mxu1 %v6923_v8  ;;  %6079 = vmatmul.mubr.bf16.gmra.mrb[104].mxu0 %v6924_v11 }
 0xc3c   :  { %6082 = vmatprep.mubr.bf16.mxu0 %v6925_v1 }
 0xc42   :  { %4256 = vmatmul.mubr.bf16.gmra.mrb[108].mxu1 %v6926_v17 }
 0xc43   :  { %4263 = vmatprep.mubr.bf16.mxu1 %v6927_v29  ;;  %6083 = vmatmul.mubr.bf16.gmra.mrb[108].mxu0 %v6928_v5 }
 0xc44   :  { %6086 = vmatprep.mubr.bf16.mxu0 %v6929_v31 }
 0xc4a   :  { %4264 = vmatmul.mubr.bf16.gmra.mrb[112].mxu1 %v6930_v63 }
 0xc4b   :  { %4271 = vmatprep.mubr.bf16.mxu1 %v6931_v34  ;;  %6087 = vmatmul.mubr.bf16.gmra.mrb[112].mxu0 %v6932_v50 }
 0xc4c   :  { %6090 = vmatprep.mubr.bf16.mxu0 %v6933_v26 }
 0xc52   :  { %4272 = vmatmul.mubr.bf16.gmra.mrb[116].mxu1 %v6934_v56 }
 0xc53   :  { %4279 = vmatprep.mubr.bf16.mxu1 %v6935_v49  ;;  %6091 = vmatmul.mubr.bf16.gmra.mrb[116].mxu0 %v6936_v55 }
 0xc54   :  { %6094 = vmatprep.mubr.bf16.mxu0 %v6937_v45 }
 0xc5a   :  { %4280 = vmatmul.mubr.bf16.gmra.mrb[120].mxu1 %v6938_v57 }
 0xc5b   :  { %4287 = vmatprep.mubr.bf16.mxu1 %v6939_v7  ;;  %6095 = vmatmul.mubr.bf16.gmra.mrb[120].mxu0 %v6940_v2 }
 0xc5c   :  { %6098 = vmatprep.mubr.bf16.mxu0 %v6941_v44 }
 0xc62   :  { %4288 = vmatmul.mubr.bf16.gmra.mrb[124].mxu1 %v6942_v51 }
 0xc63   :  { %4295 = vmatprep.mubr.bf16.mxu1 %v6943_v46  ;;  %6099 = vmatmul.mubr.bf16.gmra.mrb[124].mxu0 %v6944_v59 }
 0xc64   :  { %4689 = vmatprep.mubr.bf16.mxu0 %v7422_v21  ;;  %v6949_v21 = vld [vmem:[%s9202_s0 + $0x1b0] ss:$12 sps:$4 sm:$0xff]  }
 0xc6a   :  { %4296 = vmatmul.mubr.bf16.gmra.mrb[128].mxu1 %v6945_v27 }
 0xc6b   :  { %4303 = vmatprep.mubr.bf16.mxu1 %v6946_v12 }
 0xc72   :  { %4304 = vmatmul.mubr.bf16.gmra.mrb[132].mxu1 %v6947_v61 }
 0xc73   :  { %4311 = vmatprep.mubr.bf16.mxu1 %v6948_v37 }
 0xc7a   :  { %4312 = vmatmul.mubr.bf16.gmra.mrb[136].mxu1 %v6949_v21 }
 0xc7b   :  { %4319 = vmatprep.mubr.bf16.mxu1 %v6950_v20 }
 0xc82   :  { %4320 = vmatmul.mubr.bf16.gmra.mrb[140].mxu1 %v6951_v53 }
 0xc83   :  { %4327 = vmatprep.mubr.bf16.mxu1 %v6952_v0 }
 0xc8a   :  { %4328 = vmatmul.mubr.bf16.gmra.mrb[144].mxu1 %v6953_v43 }
 0xc8b   :  { %4335 = vmatprep.mubr.bf16.mxu1 %v6954_v24 }
 0xc92   :  { %4336 = vmatmul.mubr.bf16.gmra.mrb[148].mxu1 %v6955_v35 }
 0xc93   :  { %4343 = vmatprep.mubr.bf16.mxu1 %v6956_v16 }
 0xc9a   :  { %4344 = vmatmul.mubr.bf16.gmra.mrb[152].mxu1 %v6957_v52 }
 0xc9b   :  { %4351 = vmatprep.mubr.bf16.mxu1 %v6958_v40 }
 0xca2   :  { %4352 = vmatmul.mubr.bf16.gmra.mrb[156].mxu1 %v6959_v38 }
 0xca3   :  { %6118 = vmatprep.mubr.msk.bf16.mxu1 %vm6963_vm1, %v6962_v48 }
 0xcbd   :  { %v4169_v33 = vpop.f32.mrb[64].mxu1 }
 0xcbe   :  { %v4171_v3 = vpop.f32.mrb[65].mxu1  ;;  %v4170_v4 = vadd.f32 %v8931_v6, %v4169_v33 }
 0xcbf   :  { %v4172_v19 = vpop.f32.mrb[66].mxu1 }
 0xcc0   :  { %v4174_v32 = vpop.f32.mrb[67].mxu1  ;;  %v4173_v17 = vadd.f32 %v8931_v6, %v4172_v19 }
 0xcc5   :  { %v4177_v28 = vpop.f32.mrb[68].mxu1 }
 0xcc6   :  { %v4179_v10 = vpop.f32.mrb[69].mxu1  ;;  %v4178_v36 = vadd.f32 %v8931_v6, %v4177_v28 }
 0xcc7   :  { %v4180_v25 = vpop.f32.mrb[70].mxu1 }
 0xcc8   :  { %v4182_v9 = vpop.f32.mrb[71].mxu1  ;;  %v4181_v23 = vadd.f32 %v8931_v6, %v4180_v25 }
 0xccd   :  { %v4185_v60 = vpop.f32.mrb[72].mxu1 }
 0xcce   :  { %v4187_v15 = vpop.f32.mrb[73].mxu1  ;;  %v4186_v49 = vadd.f32 %v8931_v6, %v4185_v60 }
 0xccf   :  { %v4188_v58 = vpop.f32.mrb[74].mxu1 }
 0xcd0   :  { %v4190_v22 = vpop.f32.mrb[75].mxu1  ;;  %v4189_v51 = vadd.f32 %v8931_v6, %v4188_v58 }
 0xcd5   :  { %v4193_v62 = vpop.f32.mrb[76].mxu1 }
 0xcd6   :  { %v4195_v41 = vpop.f32.mrb[77].mxu1  ;;  %v4194_v26 = vadd.f32 %v8931_v6, %v4193_v62 }
 0xcd7   :  { %v4196_v18 = vpop.f32.mrb[78].mxu1 }
 0xcd8   :  { %v4198_v13 = vpop.f32.mrb[79].mxu1  ;;  %v4197_v57 = vadd.f32 %v8931_v6, %v4196_v18 }
 0xcdd   :  { %v4201_v54 = vpop.f32.mrb[80].mxu1 }
 0xcde   :  { %v4203_v39 = vpop.f32.mrb[81].mxu1  ;;  %v6056_v30 = vpop.f32.mrb[80].mxu0  ;;  %v4202_v35 = vadd.f32 %v8931_v6, %v4201_v54 }
 0xcdf   :  { %v4403_v8 = vadd.f32 %v6056_v30, %v4178_v36  ;;  %v4204_v11 = vpop.f32.mrb[82].mxu1  ;;  %v4394_v1 = vpop.f32.mrb[81].mxu0 }
 0xce0   :  { %v4395_v29 = vadd.f32 %v4394_v1, %v4170_v4  ;;  %v4206_v5 = vpop.f32.mrb[83].mxu1  ;;  %v6057_v31 = vpop.f32.mrb[82].mxu0  ;;  %v4205_v28 = vadd.f32 %v8931_v6, %v4204_v11 }
 0xce1   :  { %6649 = vtanh.f32 %v4403_v8  ;;  %v4406_v63 = vadd.f32 %v6057_v31, %v4181_v23  ;;  %v4397_v34 = vpop.f32.mrb[83].mxu0 }
 0xce2   :  { %6651 = vtanh.f32 %v4395_v29  ;;  %v4398_v50 = vadd.f32 %v4397_v34, %v4173_v17 }
 0xce3   :  { %6653 = vtanh.f32 %v4406_v63 }
 0xce4   :  { %6655 = vtanh.f32 %v4398_v50 }
 0xce5   :  { %v4209_v56 = vpop.f32.mrb[84].mxu1 }
 0xce6   :  { %v4211_v55 = vpop.f32.mrb[85].mxu1  ;;  %v6060_v45 = vpop.f32.mrb[84].mxu0  ;;  %v4210_v0 = vadd.f32 %v8931_v6, %v4209_v56 }
 0xce7   :  { %v4419_v7 = vadd.f32 %v6060_v45, %v4194_v26  ;;  %v4212_v2 = vpop.f32.mrb[86].mxu1  ;;  %v4410_v44 = vpop.f32.mrb[85].mxu0 }
 0xce8   :  { %v4411_v46 = vadd.f32 %v4410_v44, %v4186_v49  ;;  %v4214_v59 = vpop.f32.mrb[87].mxu1  ;;  %v6061_v27 = vpop.f32.mrb[86].mxu0  ;;  %v4213_v38 = vadd.f32 %v8931_v6, %v4212_v2 }
 0xce9   :  { %6657 = vtanh.f32 %v4419_v7  ;;  %v4422_v12 = vadd.f32 %v6061_v27, %v4197_v57  ;;  %v4413_v61 = vpop.f32.mrb[87].mxu0 }
 0xcea   :  { %6659 = vtanh.f32 %v4411_v46  ;;  %v4414_v37 = vadd.f32 %v4413_v61, %v4189_v51 }
 0xceb   :  { %v8941_v21 = vpop.eup %6649  ;;  %6661 = vtanh.f32 %v4422_v12 }
 0xcec   :  { %v8943_v20 = vpop.eup %6651  ;;  %6663 = vtanh.f32 %v4414_v37 }
 0xced   :  { %v8945_v53 = vpop.eup %6653  ;;  %v4217_v43 = vpop.f32.mrb[88].mxu1 }
 0xcee   :  { %v8948_v24 = vpop.eup %6655  ;;  %v4219_v16 = vpop.f32.mrb[89].mxu1  ;;  %v4634_v40 = vpack.c.bf16 %v8945_v53, %v8941_v21  ;;  %v4218_v36 = vadd.f32 %v8931_v6, %v4217_v43 }
 0xcef   :  { %v6064_v52 = vpop.f32.mrb[88].mxu0  ;;  %v4220_v3 = vpop.f32.mrb[90].mxu1  ;;  %v4633_v32 = vpack.c.bf16 %v8948_v24, %v8943_v20 }
 0xcf0   :  { %v4435_v33 = vadd.f32 %v6064_v52, %v4210_v0  ;;  %v4426_v19 = vpop.f32.mrb[89].mxu0  ;;  %v4222_v25 = vpop.f32.mrb[91].mxu1  ;;  %v4221_v1 = vadd.f32 %v8931_v6, %v4220_v3 }
 0xcf1   :  { %v4427_v10 = vadd.f32 %v4426_v19, %v4202_v35  ;;  %v6065_v9 = vpop.f32.mrb[90].mxu0 }
 0xcf2   :  { %6665 = vtanh.f32 %v4435_v33  ;;  %v4438_v60 = vadd.f32 %v6065_v9, %v4213_v38  ;;  %v4429_v15 = vpop.f32.mrb[91].mxu0 }
 0xcf3   :  { %6667 = vtanh.f32 %v4427_v10  ;;  %v4430_v58 = vadd.f32 %v4429_v15, %v4205_v28  ;;  %v8957_v22 = vpop.eup %6657 }
 0xcf4   :  { %6669 = vtanh.f32 %v4438_v60  ;;  %v8959_v62 = vpop.eup %6659 }
 0xcf5   :  { %6671 = vtanh.f32 %v4430_v58  ;;  %v8961_v41 = vpop.eup %6661  ;;  %v4225_v18 = vpop.f32.mrb[92].mxu1 }
 0xcf6   :  { %v8963_v13 = vpop.eup %6663  ;;  %v4226_v54 = vadd.f32 %v8931_v6, %v4225_v18  ;;  %v4227_v4 = vpop.f32.mrb[93].mxu1  ;;  %v4636_v30 = vpack.c.bf16 %v8961_v41, %v8957_v22 }
 0xcf7   :  { %v6068_v39 = vpop.f32.mrb[92].mxu0  ;;  %v4228_v23 = vpop.f32.mrb[94].mxu1  ;;  %v4635_v11 = vpack.c.bf16 %v8963_v13, %v8959_v62 }
 0xcf8   :  { %v4442_v8 = vpop.f32.mrb[93].mxu0  ;;  %v4451_v17 = vadd.f32 %v6068_v39, %v4226_v54  ;;  %v4229_v29 = vadd.f32 %v8931_v6, %v4228_v23  ;;  %v4230_v31 = vpop.f32.mrb[95].mxu1 }
 0xcf9   :  { %v4443_v5 = vadd.f32 %v4442_v8, %v4218_v36  ;;  %v6069_v63 = vpop.f32.mrb[94].mxu0 }
 0xcfa   :  { %v4445_v34 = vpop.f32.mrb[95].mxu0  ;;  %6673 = vtanh.f32 %v4451_v17  ;;  %v4454_v50 = vadd.f32 %v6069_v63, %v4229_v29 }
 0xcfb   :  { %v4446_v26 = vadd.f32 %v4445_v34, %v4221_v1  ;;  %6675 = vtanh.f32 %v4443_v5 }
 0xcfc   :  { %v8973_v56 = vpop.eup %6665  ;;  %6677 = vtanh.f32 %v4454_v50 }
 0xcfd   :  { %v8975_v49 = vpop.eup %6667  ;;  %6679 = vtanh.f32 %v4446_v26  ;;  %v4233_v45 = vpop.f32.mrb[96].mxu1 }
 0xcfe   :  { %v8977_v55 = vpop.eup %6669  ;;  %v4234_v7 = vadd.f32 %v8931_v6, %v4233_v45  ;;  %v4235_v2 = vpop.f32.mrb[97].mxu1 }
 0xcff   :  { %v8979_v57 = vpop.eup %6671  ;;  %v6072_v44 = vpop.f32.mrb[96].mxu0  ;;  %v4638_v51 = vpack.c.bf16 %v8977_v55, %v8973_v56 }
 0xd00   :  { %v4236_v46 = vpop.f32.mrb[98].mxu1  ;;  %v4458_v59 = vpop.f32.mrb[97].mxu0  ;;  %v4637_v27 = vpack.c.bf16 %v8979_v57, %v8975_v49 }
 0xd01   :  { %v4237_v12 = vadd.f32 %v8931_v6, %v4236_v46  ;;  %v4459_v61 = vadd.f32 %v4458_v59, %v4234_v7  ;;  %v4238_v37 = vpop.f32.mrb[99].mxu1  ;;  %v6073_v0 = vpop.f32.mrb[98].mxu0 }
 0xd02   :  { %v4461_v43 = vpop.f32.mrb[99].mxu0 }
 0xd03   :  { %v4462_v35 = vadd.f32 %v4461_v43, %v4237_v12  ;;  %6681 = vtanh.f32 %v4459_v61 }
 0xd04   :  { %v8987_v16 = vpop.eup %6673 }
 0xd05   :  { %6683 = vtanh.f32 %v4462_v35  ;;  %v8989_v52 = vpop.eup %6675  ;;  %v4241_v38 = vpop.f32.mrb[100].mxu1 }
 0xd06   :  { %v8991_v33 = vpop.eup %6677  ;;  %v4242_v3 = vadd.f32 %v8931_v6, %v4241_v38  ;;  %v4243_v19 = vpop.f32.mrb[101].mxu1 }
 0xd07   :  { %v6076_v28 = vpop.f32.mrb[100].mxu0  ;;  %v8994_v10 = vpop.eup %6679  ;;  %v4640_v60 = vpack.c.bf16 %v8991_v33, %v8987_v16 }
 0xd08   :  { %v4244_v25 = vpop.f32.mrb[102].mxu1  ;;  %v4474_v9 = vpop.f32.mrb[101].mxu0  ;;  %v4467_v15 = vadd.f32 %v6072_v44, %v4242_v3  ;;  %v4639_v54 = vpack.c.bf16 %v8994_v10, %v8989_v52 }
 0xd09   :  { %v4245_v58 = vadd.f32 %v8931_v6, %v4244_v25  ;;  %v4246_v18 = vpop.f32.mrb[103].mxu1  ;;  %v6077_v36 = vpop.f32.mrb[102].mxu0 }
 0xd0a   :  { %v4477_v4 = vpop.f32.mrb[103].mxu0  ;;  %6685 = vtanh.f32 %v4467_v15 }
 0xd0b   :  { %v4470_v39 = vadd.f32 %v6073_v0, %v4245_v58 }
 0xd0d   :  { %6687 = vtanh.f32 %v4470_v39  ;;  %v6682_v23 = vpop.eup %6681  ;;  %v4249_v8 = vpop.f32.mrb[104].mxu1 }
 0xd0e   :  { %v4250_v17 = vadd.f32 %v8931_v6, %v4249_v8  ;;  %v4251_v29 = vpop.f32.mrb[105].mxu1  ;;  %v6080_v5 = vpop.f32.mrb[104].mxu0 }
 0xd0f   :  { %v6684_v1 = vpop.eup %6683  ;;  %v4252_v31 = vpop.f32.mrb[106].mxu1 }
 0xd10   :  { %v4641_v63 = vpack.c.bf16 %v6684_v1, %v6682_v23  ;;  %v4490_v34 = vpop.f32.mrb[105].mxu0  ;;  %v4253_v50 = vadd.f32 %v8931_v6, %v4252_v31  ;;  %v4475_v26 = vadd.f32 %v4474_v9, %v4250_v17  ;;  %v4254_v45 = vpop.f32.mrb[107].mxu1 }
 0xd11   :  { %v6081_v7 = vpop.f32.mrb[106].mxu0 }
 0xd12   :  { %5492 = vmatprep.subr.bf16.mxu0 %v4641_v63  ;;  %v4493_v2 = vpop.f32.mrb[107].mxu0  ;;  %v4478_v44 = vadd.f32 %v4477_v4, %v4253_v50  ;;  %6689 = vtanh.f32 %v4475_v26 }
 0xd13   :  { %5493 = vmatpush3.bf16.msra.mxu0 %v4633_v32 }
 0xd14   :  { %6691 = vtanh.f32 %v4478_v44  ;;  %v6686_v46 = vpop.eup %6685 }
 0xd15   :  { %v4257_v59 = vpop.f32.mrb[108].mxu1 }
 0xd16   :  { %v4258_v61 = vadd.f32 %v8931_v6, %v4257_v59  ;;  %v4259_v37 = vpop.f32.mrb[109].mxu1  ;;  %v9007_v0 = vpop.f32.mrb[108].mxu0 }
 0xd17   :  { %v6688_v12 = vpop.eup %6687  ;;  %v4260_v43 = vpop.f32.mrb[110].mxu1 }
 0xd18   :  { %v4642_v35 = vpack.c.bf16 %v6688_v12, %v6686_v46  ;;  %v4506_v38 = vpop.f32.mrb[109].mxu0  ;;  %v4483_v3 = vadd.f32 %v6076_v28, %v4258_v61  ;;  %v4261_v19 = vadd.f32 %v8931_v6, %v4260_v43  ;;  %v4262_v25 = vpop.f32.mrb[111].mxu1 }
 0xd19   :  { %v9010_v9 = vpop.f32.mrb[110].mxu0 }
 0xd1a   :  { %5494 = vmatprep.subr.bf16.mxu0 %v4642_v35  ;;  %v4509_v20 = vpop.f32.mrb[111].mxu0  ;;  %v4486_v24 = vadd.f32 %v6077_v36, %v4261_v19  ;;  %6693 = vtanh.f32 %v4483_v3 }
 0xd1b   :  { %5495 = vmatpush3.bf16.msra.mxu0 %v4634_v40 }
 0xd1c   :  { %6695 = vtanh.f32 %v4486_v24  ;;  %v6690_v32 = vpop.eup %6689 }
 0xd1d   :  { %v4265_v15 = vpop.f32.mrb[112].mxu1 }
 0xd1e   :  { %v6692_v58 = vpop.eup %6691  ;;  %v4266_v18 = vadd.f32 %v8931_v6, %v4265_v15  ;;  %v4267_v28 = vpop.f32.mrb[113].mxu1 }
 0xd1f   :  { %v9016_v4 = vpop.f32.mrb[112].mxu0  ;;  %v4268_v39 = vpop.f32.mrb[114].mxu1  ;;  %v4643_v23 = vpack.c.bf16 %v6692_v58, %v6690_v32 }
 0xd20   :  { %v9018_v8 = vpop.f32.mrb[113].mxu0  ;;  %v4269_v36 = vadd.f32 %v8931_v6, %v4268_v39  ;;  %v4491_v1 = vadd.f32 %v4490_v34, %v4266_v18  ;;  %v4270_v17 = vpop.f32.mrb[115].mxu1 }
 0xd21   :  { %v9021_v21 = vpop.f32.mrb[114].mxu0  ;;  %5496 = vmatprep.subr.bf16.mxu0 %v4643_v23 }
 0xd22   :  { %v9023_v53 = vpop.f32.mrb[115].mxu0  ;;  %v4494_v40 = vadd.f32 %v4493_v2, %v4269_v36  ;;  %5497 = vmatpush3.bf16.msra.mxu0 %v4635_v11  ;;  %6697 = vtanh.f32 %v4491_v1 }
 0xd24   :  { %6699 = vtanh.f32 %v4494_v40  ;;  %v6694_v29 = vpop.eup %6693 }
 0xd25   :  { %v4273_v31 = vpop.f32.mrb[116].mxu1 }
 0xd26   :  { %v6696_v63 = vpop.eup %6695  ;;  %v4274_v50 = vadd.f32 %v8931_v6, %v4273_v31  ;;  %v4275_v26 = vpop.f32.mrb[117].mxu1 }
 0xd27   :  { %v9029_v34 = vpop.f32.mrb[116].mxu0  ;;  %v4276_v45 = vpop.f32.mrb[118].mxu1  ;;  %v4644_v44 = vpack.c.bf16 %v6696_v63, %v6694_v29 }
 0xd28   :  { %v9031_v46 = vpop.f32.mrb[117].mxu0  ;;  %v4499_v59 = vadd.f32 %v6080_v5, %v4274_v50  ;;  %v4277_v2 = vadd.f32 %v8931_v6, %v4276_v45  ;;  %v4278_v12 = vpop.f32.mrb[119].mxu1 }
 0xd29   :  { %v9034_v62 = vpop.f32.mrb[118].mxu0  ;;  %5498 = vmatprep.subr.bf16.mxu0 %v4644_v44 }
 0xd2a   :  { %v9036_v13 = vpop.f32.mrb[119].mxu0  ;;  %v4502_v11 = vadd.f32 %v6081_v7, %v4277_v2  ;;  %5499 = vmatpush3.bf16.msra.mxu0 %v4636_v30  ;;  %6701 = vtanh.f32 %v4499_v59 }
 0xd2c   :  { %6703 = vtanh.f32 %v4502_v11  ;;  %v6698_v61 = vpop.eup %6697 }
 0xd2d   :  { %v4281_v37 = vpop.f32.mrb[120].mxu1 }
 0xd2e   :  { %v6700_v43 = vpop.eup %6699  ;;  %v4282_v5 = vadd.f32 %v8931_v6, %v4281_v37  ;;  %v4283_v35 = vpop.f32.mrb[121].mxu1 }
 0xd2f   :  { %v9042_v3 = vpop.f32.mrb[120].mxu0  ;;  %v4284_v19 = vpop.f32.mrb[122].mxu1  ;;  %v4645_v25 = vpack.c.bf16 %v6700_v43, %v6698_v61  ;;  %v5146_v43 = vld [vmem:[%s9205_s5 + $0x60] sm:$0xff] }
 0xd30   :  { %v9044_v24 = vpop.f32.mrb[121].mxu0  ;;  %v4285_v7 = vadd.f32 %v8931_v6, %v4284_v19  ;;  %v4507_v32 = vadd.f32 %v4506_v38, %v4282_v5  ;;  %v4286_v15 = vpop.f32.mrb[123].mxu1 }
 0xd31   :  { %v9047_v22 = vpop.f32.mrb[122].mxu0  ;;  %5500 = vmatprep.subr.bf16.mxu0 %v4645_v25 }
 0xd32   :  { %v9049_v41 = vpop.f32.mrb[123].mxu0  ;;  %v4510_v30 = vadd.f32 %v4509_v20, %v4285_v7  ;;  %5501 = vmatpush3.bf16.msra.mxu0 %v4637_v27  ;;  %6705 = vtanh.f32 %v4507_v32 }
 0xd34   :  { %6707 = vtanh.f32 %v4510_v30  ;;  %v6702_v58 = vpop.eup %6701 }
 0xd35   :  { %v4289_v18 = vpop.f32.mrb[124].mxu1 }
 0xd36   :  { %v6704_v28 = vpop.eup %6703  ;;  %v4290_v39 = vadd.f32 %v8931_v6, %v4289_v18  ;;  %v4291_v23 = vpop.f32.mrb[125].mxu1 }
 0xd37   :  { %v9055_v38 = vpop.f32.mrb[124].mxu0  ;;  %v4292_v36 = vpop.f32.mrb[126].mxu1  ;;  %v4646_v1 = vpack.c.bf16 %v6704_v28, %v6702_v58 }
 0xd38   :  { %v9057_v17 = vpop.f32.mrb[125].mxu0  ;;  %v4515_v20 = vadd.f32 %v9007_v0, %v4290_v39  ;;  %v4293_v40 = vadd.f32 %v8931_v6, %v4292_v36  ;;  %v4294_v49 = vpop.f32.mrb[127].mxu1 }
 0xd39   :  { %v9061_v57 = vpop.f32.mrb[126].mxu0  ;;  %5502 = vmatprep.subr.bf16.mxu0 %v4646_v1 }
 0xd3a   :  { %v9063_v27 = vpop.f32.mrb[127].mxu0  ;;  %v4518_v29 = vadd.f32 %v9010_v9, %v4293_v40  ;;  %5503 = vmatpush3.bf16.msra.mxu0 %v4638_v51  ;;  %6709 = vtanh.f32 %v4515_v20 }
 0xd3c   :  { %6711 = vtanh.f32 %v4518_v29  ;;  %v6706_v31 = vpop.eup %6705 }
 0xd3d   :  { %v4297_v63 = vpop.f32.mrb[128].mxu1 }
 0xd3e   :  { %v6708_v50 = vpop.eup %6707  ;;  %v4298_v0 = vadd.f32 %v8931_v6, %v4297_v63  ;;  %v4299_v26 = vpop.f32.mrb[129].mxu1 }
 0xd3f   :  { %v4300_v45 = vpop.f32.mrb[130].mxu1  ;;  %v4647_v44 = vpack.c.bf16 %v6708_v50, %v6706_v31 }
 0xd40   :  { %v4523_v59 = vadd.f32 %v9018_v8, %v4298_v0  ;;  %v4301_v2 = vadd.f32 %v8931_v6, %v4300_v45  ;;  %v4302_v12 = vpop.f32.mrb[131].mxu1 }
 0xd41   :  { %5504 = vmatprep.subr.bf16.mxu0 %v4647_v44 }
 0xd42   :  { %v4526_v9 = vadd.f32 %v9023_v53, %v4301_v2  ;;  %5505 = vmatpush3.bf16.msra.mxu0 %v4639_v54  ;;  %6713 = vtanh.f32 %v4523_v59  ;;  %v5147_v53 = vld [vmem:[%s9205_s5 + $0x68] sm:$0xff] }
 0xd43   :  { %v6187_v35 = vpack.c.bf16 %v5147_v53, %v5146_v43 }
 0xd44   :  { %6715 = vtanh.f32 %v4526_v9  ;;  %v6710_v56 = vpop.eup %6709 }
 0xd45   :  { %v4305_v55 = vpop.f32.mrb[132].mxu1 }
 0xd46   :  { %v6712_v51 = vpop.eup %6711  ;;  %v4306_v11 = vadd.f32 %v8931_v6, %v4305_v55  ;;  %v4307_v61 = vpop.f32.mrb[133].mxu1 }
 0xd47   :  { %v4308_v37 = vpop.f32.mrb[134].mxu1  ;;  %v4648_v8 = vpack.c.bf16 %v6712_v51, %v6710_v56 }
 0xd48   :  { %v4531_v52 = vadd.f32 %v9016_v4, %v4306_v11  ;;  %v4309_v10 = vadd.f32 %v8931_v6, %v4308_v37  ;;  %v4310_v54 = vpop.f32.mrb[135].mxu1 }
 0xd49   :  { %5506 = vmatprep.subr.bf16.mxu0 %v4648_v8 }
 0xd4a   :  { %v4534_v5 = vadd.f32 %v9021_v21, %v4309_v10  ;;  %5507 = vmatpush3.bf16.msra.mxu0 %v4640_v60  ;;  %6717 = vtanh.f32 %v4531_v52 }
 0xd4b   :  { %6186 = vmatprep.subr.bf16.mxu0 %v6964_v47 }
 0xd4c   :  { %6719 = vtanh.f32 %v4534_v5  ;;  %v6714_v19 = vpop.eup %6713 }
 0xd4d   :  { %v4313_v25 = vpop.f32.mrb[136].mxu1  ;;  %4690 = vmatmul.mubr.bf16.vlgmr.msra.gmra.mrb[128].mxu0 %v7417_v14 }
 0xd4e   :  { %v6716_v4 = vpop.eup %6715  ;;  %v4314_v7 = vadd.f32 %v8931_v6, %v4313_v25  ;;  %v4315_v32 = vpop.f32.mrb[137].mxu1  ;;  %6188 = vmatpush3.bf16.msra.mxu0 %v6187_v35  ;;  %6130 = vmatprep.mubr.msk.f32.mxu0 %vm6963_vm1, %v6962_v48 }
 0xd4f   :  { %v4649_v21 = vpack.c.bf16 %v6716_v4, %v6714_v19  ;;  %v4316_v16 = vpop.f32.mrb[138].mxu1  ;;  %6189 = vmatprep.subr.bf16.mxu0 %v6964_v47 }
 0xd50   :  { %v4317_v33 = vadd.f32 %v8931_v6, %v4316_v16  ;;  %v4539_v60 = vadd.f32 %v9031_v46, %v4314_v7  ;;  %v4318_v15 = vpop.f32.mrb[139].mxu1 }
 0xd51   :  { %6103 = vmatpush3.bf16.msra.mxu1 %v4649_v21 }
 0xd52   :  { %6104 = vmatprep.subr.bf16.mxu1 %v6962_v48  ;;  %v4542_v14 = vadd.f32 %v9036_v13, %v4317_v33  ;;  %6721 = vtanh.f32 %v4539_v60 }
 0xd54   :  { %6723 = vtanh.f32 %v4542_v14  ;;  %v6718_v30 = vpop.eup %6717 }
 0xd55   :  { %v4321_v58 = vpop.f32.mrb[140].mxu1 }
 0xd56   :  { %v6720_v18 = vpop.eup %6719  ;;  %v4322_v28 = vadd.f32 %v8931_v6, %v4321_v58  ;;  %v4323_v39 = vpop.f32.mrb[141].mxu1 }
 0xd57   :  { %v4650_v23 = vpack.c.bf16 %v6720_v18, %v6718_v30  ;;  %v4324_v36 = vpop.f32.mrb[142].mxu1 }
 0xd58   :  { %v4547_v1 = vadd.f32 %v9029_v34, %v4322_v28  ;;  %v4325_v46 = vadd.f32 %v8931_v6, %v4324_v36  ;;  %v4326_v20 = vpop.f32.mrb[143].mxu1  ;;  %v4817_v28 = vld [vmem:[%s9206_s7] sm:$0xff] }
 0xd59   :  { %6105 = vmatpush3.bf16.msra.mxu1 %v4650_v23  ;;  %v4820_v23 = vld [vmem:[%s9206_s7 + $0x18] sm:$0xff] }
 0xd5a   :  { %v4550_v40 = vadd.f32 %v9034_v62, %v4325_v46  ;;  %6106 = vmatprep.subr.bf16.mxu1 %v6962_v48  ;;  %6725 = vtanh.f32 %v4547_v1  ;;  %v4821_v1 = vld [vmem:[%s9206_s7 + $0x20] sm:$0xff]  ;;  %v4822_v46 = vld [vmem:[%s9206_s7 + $0x28] sm:$0xff] }
 0xd5b   :  { %v6199_v20 = vpack.c.bf16 %v4822_v46, %v4821_v1 }
 0xd5c   :  { %6727 = vtanh.f32 %v4550_v40  ;;  %v6722_v13 = vpop.eup %6721  ;;  %v4823_v40 = vld [vmem:[%s9206_s7 + $0x30] sm:$0xff] }
 0xd5d   :  { %v4329_v49 = vpop.f32.mrb[144].mxu1 }
 0xd5e   :  { %v6724_v29 = vpop.eup %6723  ;;  %v4330_v31 = vadd.f32 %v8931_v6, %v4329_v49  ;;  %v4331_v63 = vpop.f32.mrb[145].mxu1 }
 0xd5f   :  { %v4332_v50 = vpop.f32.mrb[146].mxu1  ;;  %v4651_v0 = vpack.c.bf16 %v6724_v29, %v6722_v13  ;;  %v4824_v13 = vld [vmem:[%s9206_s7 + $0x38] sm:$0xff]  ;;  %v4825_v29 = vld [vmem:[%s9206_s7 + $0x40] sm:$0xff] }
 0xd60   :  { %v4333_v34 = vadd.f32 %v8931_v6, %v4332_v50  ;;  %v4555_v26 = vadd.f32 %v9044_v24, %v4330_v31  ;;  %v4334_v45 = vpop.f32.mrb[147].mxu1  ;;  %v6202_v49 = vpack.c.bf16 %v4824_v13, %v4823_v40  ;;  %v4826_v31 = vld [vmem:[%s9206_s7 + $0x48] sm:$0xff]  ;;  %v4827_v50 = vld [vmem:[%s9206_s7 + $0x50] sm:$0xff] }
 0xd61   :  { %6107 = vmatpush3.bf16.msra.mxu1 %v4651_v0  ;;  %v6205_v63 = vpack.c.bf16 %v4826_v31, %v4825_v29  ;;  %v4828_v0 = vld [vmem:[%s9206_s7 + $0x58] sm:$0xff]  ;;  %v4830_v45 = vld [vmem:[%s9206_s7 + $0x68] sm:$0xff] }
 0xd62   :  { %v4558_v62 = vadd.f32 %v9049_v41, %v4333_v34  ;;  %6108 = vmatprep.subr.bf16.mxu1 %v6962_v48  ;;  %6729 = vtanh.f32 %v4555_v26  ;;  %v6208_v34 = vpack.c.bf16 %v4828_v0, %v4827_v50  ;;  %v4829_v26 = vld [vmem:[%s9206_s7 + $0x60] sm:$0xff] }
 0xd64   :  { %6731 = vtanh.f32 %v4558_v62  ;;  %v6726_v44 = vpop.eup %6725  ;;  %v6211_v62 = vpack.c.bf16 %v4830_v45, %v4829_v26 }
 0xd65   :  { %v4337_v59 = vpop.f32.mrb[148].mxu1 }
 0xd66   :  { %v6728_v2 = vpop.eup %6727  ;;  %v4338_v12 = vadd.f32 %v8931_v6, %v4337_v59  ;;  %v4339_v9 = vpop.f32.mrb[149].mxu1 }
 0xd67   :  { %v4340_v56 = vpop.f32.mrb[150].mxu1  ;;  %v4652_v55 = vpack.c.bf16 %v6728_v2, %v6726_v44 }
 0xd68   :  { %v4563_v51 = vadd.f32 %v9042_v3, %v4338_v12  ;;  %v4341_v24 = vadd.f32 %v8931_v6, %v4340_v56  ;;  %v4342_v11 = vpop.f32.mrb[151].mxu1 }
 0xd69   :  { %6109 = vmatpush3.bf16.msra.mxu1 %v4652_v55 }
 0xd6a   :  { %v4566_v41 = vadd.f32 %v9047_v22, %v4341_v24  ;;  %6110 = vmatprep.subr.bf16.mxu1 %v6962_v48  ;;  %6733 = vtanh.f32 %v4563_v51 }
 0xd6c   :  { %6735 = vtanh.f32 %v4566_v41  ;;  %v6730_v61 = vpop.eup %6729  ;;  %v4831_v41 = vld [vmem:[%s9206_s7 + $0x70] sm:$0xff] }
 0xd6d   :  { %v4345_v37 = vpop.f32.mrb[152].mxu1 }
 0xd6e   :  { %v6732_v8 = vpop.eup %6731  ;;  %v4346_v43 = vadd.f32 %v8931_v6, %v4345_v37  ;;  %v4347_v53 = vpop.f32.mrb[153].mxu1  ;;  %v4915_v37 = vld [vmem:[%s9207_s6] ss:$0 sm:$0xff] }
 0xd6f   :  { %v4348_v52 = vpop.f32.mrb[154].mxu1  ;;  %v4653_v10 = vpack.c.bf16 %v6732_v8, %v6730_v61 }
 0xd70   :  { %v4349_v3 = vadd.f32 %v8931_v6, %v4348_v52  ;;  %v4571_v54 = vadd.f32 %v9057_v17, %v4346_v43  ;;  %v4350_v5 = vpop.f32.mrb[155].mxu1 }
 0xd71   :  { %6111 = vmatpush3.bf16.msra.mxu1 %v4653_v10  ;;  %v5151_v10 = vld [vmem:[%s9208_s8] ss:$0 sm:$0xff] }
 0xd72   :  { %v4574_v22 = vadd.f32 %v9063_v27, %v4349_v3  ;;  %6112 = vmatprep.subr.bf16.mxu1 %v6962_v48  ;;  %6737 = vtanh.f32 %v4571_v54 }
 0xd74   :  { %6739 = vtanh.f32 %v4574_v22  ;;  %v6734_v35 = vpop.eup %6733 }
 0xd75   :  { %v4353_v19 = vpop.f32.mrb[156].mxu1 }
 0xd76   :  { %v6736_v25 = vpop.eup %6735  ;;  %v4354_v4 = vadd.f32 %v8931_v6, %v4353_v19  ;;  %v4355_v7 = vpop.f32.mrb[157].mxu1 }
 0xd77   :  { %v4356_v32 = vpop.f32.mrb[158].mxu1  ;;  %v4654_v21 = vpack.c.bf16 %v6736_v25, %v6734_v35 }
 0xd78   :  { %v4579_v16 = vadd.f32 %v9055_v38, %v4354_v4  ;;  %v4357_v17 = vadd.f32 %v8931_v6, %v4356_v32  ;;  %v4358_v33 = vpop.f32.mrb[159].mxu1  ;;  %v5148_v6 = vld [vmem:[%s9205_s5 + $0x70] sm:$0xff]  ;;  %v5149_v38 = vld [vmem:[%s9205_s5 + $0x78] sm:$0xff] }
 0xd79   :  { %6113 = vmatpush3.bf16.msra.mxu1 %v4654_v21 }
 0xd7a   :  { %v4582_v27 = vadd.f32 %v9061_v57, %v4357_v17  ;;  %6114 = vmatprep.subr.bf16.mxu1 %v6962_v48  ;;  %6741 = vtanh.f32 %v4579_v16  ;;  %v6190_v57 = vpack.c.bf16 %v5149_v38, %v5148_v6 }
 0xd7c   :  { %6743 = vtanh.f32 %v4582_v27  ;;  %v6738_v60 = vpop.eup %6737  ;;  %6191 = vmatpush3.bf16.msra.mxu0 %v6190_v57 }
 0xd7e   :  { %v6740_v15 = vpop.eup %6739 }
 0xd7f   :  { %v4655_v14 = vpack.c.bf16 %v6740_v15, %v6738_v60 }
 0xd81   :  { %6115 = vmatpush3.bf16.msra.mxu1 %v4655_v14 }
 0xd82   :  { %6116 = vmatprep.subr.bf16.mxu1 %v6962_v48 }
 0xd84   :  { %v6742_v30 = vpop.eup %6741 }
 0xd86   :  { %v6744_v58 = vpop.eup %6743 }
 0xd87   :  { %v4656_v18 = vpack.c.bf16 %v6744_v58, %v6742_v30 }
 0xd89   :  { %6117 = vmatpush3.bf16.msra.mxu1 %v4656_v18 }
 0xd8a   :  { %6192 = vmatprep.subr.bf16.mxu1 %v6964_v47 }
 0xd8c   :  { %6119 = vmatmul.mubr.bf16.vlgmr.msra.gmra.mrb[160].mxu1 %v7517_v42  ;;  %v4818_v42 = vld [vmem:[%s9206_s7 + $0x8] sm:$0xff] }
 0xd8d   :  { %6165 = vmatprep.mubr.msk.f32.mxu1 %vm6963_vm1, %v6962_v48  ;;  %v4819_v48 = vld [vmem:[%s9206_s7 + $0x10] sm:$0xff]  ;;  %v6193_v39 = vpack.c.bf16 %v4818_v42, %v4817_v28 }
 0xd8e   :  { %v6196_v36 = vpack.c.bf16 %v4820_v23, %v4819_v48 }
 0xd8f   :  { %6194 = vmatpush3.bf16.msra.mxu1 %v6193_v39 }
 0xd90   :  { %6195 = vmatprep.subr.bf16.mxu1 %v6964_v47 }
 0xd93   :  { %6197 = vmatpush3.bf16.msra.mxu1 %v6196_v36 }
 0xd94   :  { %6198 = vmatprep.subr.bf16.mxu1 %v6964_v47 }
 0xd97   :  { %6200 = vmatpush3.bf16.msra.mxu1 %v6199_v20 }
 0xd98   :  { %6201 = vmatprep.subr.bf16.mxu1 %v6964_v47 }
 0xd9b   :  { %6203 = vmatpush3.bf16.msra.mxu1 %v6202_v49 }
 0xd9c   :  { %6204 = vmatprep.subr.bf16.mxu1 %v6964_v47 }
 0xd9f   :  { %6206 = vmatpush3.bf16.msra.mxu1 %v6205_v63 }
 0xda0   :  { %6207 = vmatprep.subr.bf16.mxu1 %v6964_v47 }
 0xda3   :  { %6209 = vmatpush3.bf16.msra.mxu1 %v6208_v34 }
 0xda4   :  { %6210 = vmatprep.subr.bf16.mxu1 %v6964_v47 }
 0xda7   :  { %6212 = vmatpush3.bf16.msra.mxu1 %v6211_v62 }
 0xda8   :  { %6213 = vmatprep.subr.bf16.mxu1 %v6964_v47  ;;  %v4832_v47 = vld [vmem:[%s9206_s7 + $0x78] sm:$0xff] }
 0xda9   :  { %v6214_v61 = vpack.c.bf16 %v4832_v47, %v4831_v41 }
 0xdab   :  { %6215 = vmatpush3.bf16.msra.mxu1 %v6214_v61 }
 0xe20   :  { %v5508_v44 = vpop.f32.mrb[128].mxu0 }
 0xe21   :  { %v5509_v59 = vpop.f32.mrb[129].mxu0 }
 0xe22   :  { %v5510_v2 = vadd.f32 %v5509_v59, %v5508_v44  ;;  %v5511_v12 = vpop.f32.mrb[130].mxu0 }
 0xe23   :  { %v5512_v9 = vpop.f32.mrb[131].mxu0 }
 0xe5f   :  { %v4731_v56 = vpop.f32.mrb[160].mxu1 }
 0xe60   :  { %v4732_v55 = vadd.f32 %v5510_v2, %v4731_v56  ;;  %v6120_v51 = vpop.f32.mrb[161].mxu1 }
 0xe61   :  { %v4734_v24 = vpop.f32.mrb[162].mxu1 }
 0xe62   :  { %6131 = vmatmul.mubr.msk.f32.vlgmr.msra.gmra.mrb[72].mxu0 %vm322_vm0, %v4732_v55  ;;  %v6121_v11 = vpop.f32.mrb[163].mxu1 }
 0xf35   :  { %v4811_v8 = vpop.f32.mrb[72].mxu0 }
 0xf36   :  { %v6220_v43 = vadd.f32 %v4915_v37, %v4811_v8  ;;  %v6132_v53 = vpop.f32.mrb[73].mxu0 }
 0xf38   :  { %v4816_v52 = vmax.f32 %v6220_v43, 0.0 }
 0xf3a   :  { %6166 = vmatmul.mubr.f32.vlgmr.msra.gmra.mrb[164].mxu1 %v4816_v52 }
0x100d   :  { %v4906_v3 = vpop.f32.mrb[164].mxu1 }
0x100e   :  { %v4907_v54 = vadd.f32 %v5151_v10, %v4906_v3  ;;  %v6167_v5 = vpop.f32.mrb[165].mxu1 }
0x1010   :  { %4910 = vst [vmem:[%s9209_s9] sm:$0xf] %v4907_v54 }

</bundles_post_ra>
